<compile_context>
chip_gen: v5e
topology: v5e:2x2
jax: 0.10.0
libtpu: 0.0.40
codegen_flags: <defaults>
</compile_context>

<pallas_src>
import math

import jax
import jax.numpy as jnp
from jax.experimental import pallas as pl
from jax.experimental.pallas import tpu as pltpu


# ----------------------------------------------------------------------------
# Pallas kernel: conv-as-matmul + ConvLSTM gate math (pixels on lanes)
# ----------------------------------------------------------------------------
def _lstm_gate_kernel(w_ref, b_ref, patch_ref, c_ref, h_out_ref, c_out_ref):
    # w_ref    : (4*hid, K)   bf16  conv weight, K = Cin*9 padded to mult of 16
    # b_ref    : (4*hid, 1)   f32   bias column (broadcast over lanes)
    # patch_ref: (K, TM)      bf16  im2col patch tile, pixels on the lane axis
    # c_ref    : (hid, TM)    f32   current cell-state tile
    # h_out_ref: (hid, TM)    bf16  next hidden-state tile
    # c_out_ref: (hid, TM)    f32   next cell-state tile
    hid = c_ref.shape[0]

    # conv-as-matmul on the MXU; bf16 inputs, f32 accumulation; lane-broadcast bias.
    acc = jnp.dot(w_ref[...], patch_ref[...],
                  preferred_element_type=jnp.float32) + b_ref[...]

    # Gate split = sublane slices at multiples of hid (requires hid % 8 == 0).
    # Activations applied per (hid, TM) slab to keep live f32 temps small.
    i = jax.nn.sigmoid(acc[0 * hid:1 * hid, :])
    f = jax.nn.sigmoid(acc[1 * hid:2 * hid, :])
    o = jax.nn.sigmoid(acc[2 * hid:3 * hid, :])
    g = jnp.tanh(acc[3 * hid:4 * hid, :])

    c_next = f * c_ref[...] + i * g
    c_out_ref[...] = c_next
    h_out_ref[...] = (o * jnp.tanh(c_next)).astype(h_out_ref.dtype)


# ----------------------------------------------------------------------------
# Generation-aware tiling / VMEM helpers
# ----------------------------------------------------------------------------
def _round_up(x, m):
    return int(pl.cdiv(x, m) * m)


def _vmem_capacity_bytes():
    try:
        return int(pltpu.get_tpu_info().vmem_capacity_bytes)
    except Exception:
        return 64 << 20           # conservative (v7x-sized) fallback


def _device_kind():
    try:
        return jax.devices()[0].device_kind.lower()
    except Exception:
        return ""


def _vmem_need_bytes(tm, k_pad, hid):
    h4 = 4 * hid
    return (2 * k_pad * tm * 2            # patch tile  (double-buffered, bf16)
            + 2 * hid * tm * 4            # c tile      (double-buffered, f32)
            + 2 * hid * tm * 2            # h_next tile (double-buffered, bf16)
            + 2 * hid * tm * 4            # c_next tile (double-buffered, f32)
            + 2 * (h4 * k_pad * 2 + h4 * 4))   # resident W + bias (2 bufs each)


def _pick_tile(n_pixels, k_pad, hid, vmem_cap):
    # Mem-bound streaming kernel: pick the biggest lane tile whose
    # double-buffered working set stays well inside physical VMEM
    # (big tiles amortize the ~0.35 us/grid-step overhead).
    tm = 2048
    while tm > 256 and _vmem_need_bytes(tm, k_pad, hid) > vmem_cap // 2:
        tm //= 2
    return min(tm, _round_up(n_pixels, 128))


def _dim_semantics(grid):
    # On v7x (2 TensorCores/chip) shard the pixel-tile axis across the cores;
    # on v5e/v6e a single TC per chip makes plain "parallel" sufficient.
    if "v7" in _device_kind() and grid[-1] % 2 == 0:
        return (pltpu.PARALLEL,) * (len(grid) - 1) + (pltpu.CORE_PARALLEL,)
    return (pltpu.PARALLEL,) * len(grid)


# ----------------------------------------------------------------------------
# Pallas wrapper for the gate math
# ----------------------------------------------------------------------------
def lstm_gates_pallas(patches, w_mat, b_col, c_flat, hidden_dim):
    """patches:(B,K,N) bf16, w_mat:(4h,K) bf16, b_col:(4h,1) f32,
       c_flat:(B,h,N) f32 -> h_next (B,h,N) bf16, c_next (B,h,N) f32."""
    B, k_pad, n = patches.shape
    hid = hidden_dim
    h4 = 4 * hid
    assert w_mat.shape == (h4, k_pad)

    vmem_cap = _vmem_capacity_bytes()
    tm = _pick_tile(n, k_pad, hid, vmem_cap)
    n_pad = _round_up(n, tm)
    if n_pad != n:
        patches = jnp.pad(patches, ((0, 0), (0, 0), (0, n_pad - n)))
        c_flat = jnp.pad(c_flat, ((0, 0), (0, 0), (0, n_pad - n)))

    grid = (B, n_pad // tm)
    vmem_limit = int(min(max(2 * _vmem_need_bytes(tm, k_pad, hid) + (8 << 20),
                             32 << 20),
                         int(0.72 * vmem_cap)))

    out_shape = (
        jax.ShapeDtypeStruct((B, hid, n_pad), jnp.bfloat16),   # h_next
        jax.ShapeDtypeStruct((B, hid, n_pad), jnp.float32),    # c_next
    )
    in_specs = [
        # TODO(synk): single-buffer the resident W / bias blocks with
        # pipeline_mode=pl.Buffered(1) once verified on this toolchain; default
        # double-buffering wastes a little VMEM on never-refetched blocks.
        pl.BlockSpec((h4, k_pad), lambda b, i: (0, 0)),           # W (resident)
        pl.BlockSpec((h4, 1), lambda b, i: (0, 0)),               # bias
        pl.BlockSpec((None, k_pad, tm), lambda b, i: (b, 0, i)),  # patch tile
        pl.BlockSpec((None, hid, tm), lambda b, i: (b, 0, i)),    # c tile
    ]
    out_specs = (
        pl.BlockSpec((None, hid, tm), lambda b, i: (b, 0, i)),    # h_next tile
        pl.BlockSpec((None, hid, tm), lambda b, i: (b, 0, i)),    # c_next tile
    )

    def run(dim_sem):
        return pl.pallas_call(
            _lstm_gate_kernel,
            out_shape=out_shape,
            grid=grid,
            in_specs=in_specs,
            out_specs=out_specs,
            compiler_params=pltpu.CompilerParams(
                dimension_semantics=dim_sem,
                vmem_limit_bytes=vmem_limit),
        )(w_mat, b_col, patches, c_flat)

    dim_sem = _dim_semantics(grid)
    default = (pltpu.PARALLEL,) * len(grid)
    if dim_sem == default:
        h_next, c_next = run(default)
    else:
        try:   # v7x core-parallel path; fall back if unsupported on this build
            h_next, c_next = jax.block_until_ready(run(dim_sem))
        except Exception:
            h_next, c_next = run(default)

    return h_next[:, :, :n], c_next[:, :, :n]


# ----------------------------------------------------------------------------
# Spherical (gnomonic) 3x3 sampling grid for an equirectangular H x W image
# ----------------------------------------------------------------------------
def _sphere_sampling_grid(H, W):
    d_lat = math.pi / H
    d_lon = 2.0 * math.pi / W
    # tangent-plane kernel offsets (gnomonic projection, 3x3 kernel)
    ker_x = math.tan(d_lon) * jnp.array([-1.0, 0.0, 1.0], jnp.float32)
    ker_y = math.tan(d_lat) * jnp.array([-1.0, 0.0, 1.0], jnp.float32)
    ky, kx = jnp.meshgrid(ker_y, ker_x, indexing="ij")           # (3,3)

    ys = jnp.arange(H, dtype=jnp.float32) + 0.5
    xs = jnp.arange(W, dtype=jnp.float32) + 0.5
    lat0 = (0.5 - ys / H) * math.pi                               # +pi/2 .. -pi/2
    lon0 = (xs / W - 0.5) * 2.0 * math.pi                         # -pi .. +pi
    lat0 = lat0[:, None, None, None]                              # (H,1,1,1)
    lon0 = lon0[None, :, None, None]                              # (1,W,1,1)
    x = kx[None, None]                                            # (1,1,3,3)
    y = ky[None, None]

    rho = jnp.sqrt(x * x + y * y)
    nu = jnp.arctan(rho)
    safe_rho = jnp.where(rho == 0, 1.0, rho)
    lat = jnp.arcsin(jnp.cos(nu) * jnp.sin(lat0)
                     + y * jnp.sin(nu) * jnp.cos(lat0) / safe_rho)
    lon = lon0 + jnp.arctan2(
        x * jnp.sin(nu),
        safe_rho * jnp.cos(lat0) * jnp.cos(nu) - y * jnp.sin(lat0) * jnp.sin(nu))
    lat = jnp.where(rho == 0, jnp.broadcast_to(lat0, lat.shape), lat)
    lon = jnp.where(rho == 0, jnp.broadcast_to(lon0, lon.shape), lon)

    # back to fractional pixel coordinates
    py = (0.5 - lat / math.pi) * H - 0.5                          # (H,W,3,3)
    px = (lon / (2.0 * math.pi) + 0.5) * W - 0.5                  # (H,W,3,3)
    return py, px


def make_sphere_sampler(H, W):
    """Precompute (once per (H, W)) the bilinear corner indices + weights of the
    spherical 3x3 sampling pattern.  Hoist this across timesteps: it depends
    only on the image size, not on the data."""
    py, px = _sphere_sampling_grid(H, W)                          # (H,W,3,3)
    y0 = jnp.floor(py)
    x0 = jnp.floor(px)
    wy = py - y0
    wx = px - x0

    def flat_idx(yy, xx):
        yy = jnp.clip(yy, 0, H - 1).astype(jnp.int32)             # clamp latitude
        xx = jnp.mod(xx, W).astype(jnp.int32)                     # wrap longitude
        return yy * W + xx

    idx = jnp.stack([flat_idx(y0, x0), flat_idx(y0, x0 + 1),
                     flat_idx(y0 + 1, x0), flat_idx(y0 + 1, x0 + 1)])
    wgt = jnp.stack([(1 - wy) * (1 - wx), (1 - wy) * wx,
                     wy * (1 - wx), wy * wx]).astype(jnp.float32)
    # -> (4, 9, H*W): tap index (ky, kx) row-major on axis 1, pixels on axis 2,
    # matching the (c_in, ky, kx) flattening of the conv weight.
    idx = idx.transpose(0, 3, 4, 1, 2).reshape(4, 9, H * W)
    wgt = wgt.transpose(0, 3, 4, 1, 2).reshape(4, 9, H * W)
    return idx, wgt


# ----------------------------------------------------------------------------
# Wrapper-side input preparation (im2col directly in (B, K, N) layout)
# ----------------------------------------------------------------------------
def _prepare_inputs(x, h_cur, c_cur, conv_w, conv_b, hidden_dim, sampler):
    B, _, H, W = x.shape
    idx, wgt = sampler
    n = H * W

    combined = jnp.concatenate([x, h_cur], axis=1)                # (B,Cin,H,W)
    Cin = combined.shape[1]
    src = combined.astype(jnp.bfloat16).reshape(B, Cin, n)

    # TODO(synk): fuse this 4-corner gather + interpolation into the Pallas
    # kernel to remove the ~9x im2col HBM round trip (arbitrary-pixel gather
    # has no rectangular-BlockSpec equivalent, so it stays in JAX for now).
    patches = jnp.zeros((B, Cin, 9, n), jnp.float32)
    for corner in range(4):
        gathered = jnp.take(src, idx[corner].reshape(-1), axis=-1)
        gathered = gathered.reshape(B, Cin, 9, n).astype(jnp.float32)
        patches = patches + gathered * wgt[corner][None, None]
    # (B, K, N): K = Cin*9 in (c, ky, kx) order, pixels on the last (lane) axis.
    patches = patches.reshape(B, Cin * 9, n).astype(jnp.bfloat16)

    k = Cin * 9
    k_pad = _round_up(k, 16)            # bf16 sublane packing = 16 rows
    if k_pad != k:
        patches = jnp.pad(patches, ((0, 0), (0, k_pad - k), (0, 0)))

    w_mat = conv_w.reshape(4 * hidden_dim, k)
    if k_pad != k:
        w_mat = jnp.pad(w_mat, ((0, 0), (0, k_pad - k)))
    w_mat = w_mat.astype(jnp.bfloat16)

    b_col = conv_b.reshape(4 * hidden_dim, 1).astype(jnp.float32)
    c_flat = c_cur.reshape(B, hidden_dim, n).astype(jnp.float32)
    return patches, w_mat, b_col, c_flat


# ----------------------------------------------------------------------------
# SpherConvLSTMCell forward (NCHW in / NCHW out)
# ----------------------------------------------------------------------------
def spher_conv_lstm_cell(x, h_cur, c_cur, conv_w, conv_b, hidden_dim,
                         sampler=None):
    """
    x      : (B, input_dim,  H, W)
    h_cur  : (B, hidden_dim, H, W)
    c_cur  : (B, hidden_dim, H, W)
    conv_w : (4*hidden_dim, input_dim+hidden_dim, 3, 3)  (PyTorch conv layout)
    conv_b : (4*hidden_dim,)
    sampler: optional output of make_sphere_sampler(H, W); pass it in when
             running a T-step recurrence so the spherical grid is built once.
    Gate ordering follows the PyTorch module: (i, f, o, g).
    Returns (h_next [bf16], c_next [f32]), both (B, hidden_dim, H, W).
    """
    if hidden_dim % 8 != 0:
        raise ValueError("hidden_dim must be a multiple of 8 "
                         "(sublane-aligned gate slices in the Pallas kernel)")
    B, _, H, W = x.shape
    if sampler is None:
        sampler = make_sphere_sampler(H, W)
    patches, w_mat, b_col, c_flat = _prepare_inputs(
        x, h_cur, c_cur, conv_w, conv_b, hidden_dim, sampler)
    h_next, c_next = lstm_gates_pallas(patches, w_mat, b_col, c_flat, hidden_dim)
    return (h_next.reshape(B, hidden_dim, H, W),
            c_next.reshape(B, hidden_dim, H, W))


# ----------------------------------------------------------------------------
# Pure-JAX references (correctness checks)
# ----------------------------------------------------------------------------
def _gates_ref(patches, w_mat, b_col, c_flat, hid):
    """Gate math on the identical bf16 patches/weights (kernel-only check)."""
    acc = jnp.einsum("ok,bkn->bon", w_mat.astype(jnp.float32),
                     patches.astype(jnp.float32)) + b_col[None]
    i = jax.nn.sigmoid(acc[:, 0 * hid:1 * hid])
    f = jax.nn.sigmoid(acc[:, 1 * hid:2 * hid])
    o = jax.nn.sigmoid(acc[:, 2 * hid:3 * hid])
    g = jnp.tanh(acc[:, 3 * hid:4 * hid])
    c_next = f * c_flat + i * g
    h_next = o * jnp.tanh(c_next)
    return h_next, c_next


def _cell_ref_f32(x, h_cur, c_cur, conv_w, conv_b, hid, sampler):
    """Full-precision (f32) reference of the whole cell (end-to-end check)."""
    B, _, H, W = x.shape
    idx, wgt = sampler
    n = H * W
    combined = jnp.concatenate([x, h_cur], axis=1).astype(jnp.float32)
    Cin = combined.shape[1]
    src = combined.reshape(B, Cin, n)
    patches = jnp.zeros((B, Cin, 9, n), jnp.float32)
    for corner in range(4):
        g = jnp.take(src, idx[corner].reshape(-1), axis=-1).reshape(B, Cin, 9, n)
        patches = patches + g * wgt[corner][None, None]
    patches = patches.reshape(B, Cin * 9, n)
    w_mat = conv_w.reshape(4 * hid, Cin * 9).astype(jnp.float32)
    acc = jnp.einsum("ok,bkn->bon", w_mat, patches) + conv_b.reshape(1, 4 * hid, 1)
    i = jax.nn.sigmoid(acc[:, 0 * hid:1 * hid])
    f = jax.nn.sigmoid(acc[:, 1 * hid:2 * hid])
    o = jax.nn.sigmoid(acc[:, 2 * hid:3 * hid])
    g = jnp.tanh(acc[:, 3 * hid:4 * hid])
    c_flat = c_cur.reshape(B, hid, n).astype(jnp.float32)
    c_next = f * c_flat + i * g
    h_next = o * jnp.tanh(c_next)
    return h_next.reshape(B, hid, H, W), c_next.reshape(B, hid, H, W)


if __name__ == "__main__":
    B, input_dim, hidden_dim, H, W = 2, 4, 16, 32, 32
    Cin = input_dim + hidden_dim

    key = jax.random.PRNGKey(0)
    kx, kh, kc, kw, kb = jax.random.split(key, 5)
    x = jax.random.normal(kx, (B, input_dim, H, W), jnp.float32)
    h_cur = jax.random.normal(kh, (B, hidden_dim, H, W), jnp.float32) * 0.1
    c_cur = jax.random.normal(kc, (B, hidden_dim, H, W), jnp.float32) * 0.1

    # deterministic "Kaiming-ish" init for the SphereConv2D weights
    fan_in = Cin * 9
    conv_w = jax.random.normal(kw, (4 * hidden_dim, Cin, 3, 3),
                               jnp.float32) / math.sqrt(fan_in)
    conv_b = jax.random.normal(kb, (4 * hidden_dim,), jnp.float32) * 0.01

    sampler = make_sphere_sampler(H, W)     # hoisted across timesteps
    h_next, c_next = spher_conv_lstm_cell(
        x, h_cur, c_cur, conv_w, conv_b, hidden_dim, sampler=sampler)
    jax.block_until_ready((h_next, c_next))
    assert h_next.shape == (B, hidden_dim, H, W)
    assert c_next.shape == (B, hidden_dim, H, W)
    assert h_next.dtype == jnp.bfloat16 and c_next.dtype == jnp.float32

    # (a) Pallas kernel vs plain-JAX gate math on the identical bf16 inputs.
    patches, w_mat, b_col, c_flat = _prepare_inputs(
        x, h_cur, c_cur, conv_w, conv_b, hidden_dim, sampler)
    h_ref_f, c_ref_f = _gates_ref(patches, w_mat, b_col, c_flat, hidden_dim)
    h_ref = h_ref_f.reshape(B, hidden_dim, H, W)
    c_ref = c_ref_f.reshape(B, hidden_dim, H, W)
    assert jnp.allclose(c_next, c_ref, atol=2e-3, rtol=2e-3), \
        float(jnp.max(jnp.abs(c_next - c_ref)))
    assert jnp.allclose(h_next.astype(jnp.float32), h_ref, atol=1e-2, rtol=1e-2), \
        float(jnp.max(jnp.abs(h_next.astype(jnp.float32) - h_ref)))

    # (b) end-to-end vs a full-f32 reference of the same spherical ConvLSTM
    #     cell (validates the bf16 sampling / weight casts, not just the kernel).
    h_f32, c_f32 = _cell_ref_f32(x, h_cur, c_cur, conv_w, conv_b,
                                 hidden_dim, sampler)
    assert jnp.allclose(c_next, c_f32, atol=6e-2, rtol=5e-2), \
        float(jnp.max(jnp.abs(c_next - c_f32)))
    assert jnp.allclose(h_next.astype(jnp.float32), h_f32, atol=6e-2, rtol=5e-2), \
        float(jnp.max(jnp.abs(h_next.astype(jnp.float32) - h_f32)))

    print("KERNEL_OK")
</pallas_src>

<mosaic_0001>
module attributes {stable_mosaic.version = 11 : i64} {
  func.func @_lstm_gate_kernel(%arg0: i32, %arg1: i32, %arg2: memref<64x192xbf16, #tpu.memory_space<vmem>>, %arg3: memref<64x1xf32, #tpu.memory_space<vmem>>, %arg4: memref<1x192x1024xbf16, #tpu.memory_space<vmem>>, %arg5: memref<1x16x1024xf32, #tpu.memory_space<vmem>>, %arg6: memref<1x16x1024xbf16, #tpu.memory_space<vmem>>, %arg7: memref<1x16x1024xf32, #tpu.memory_space<vmem>>) attributes {dimension_semantics = [#tpu.dimension_semantics<parallel>, #tpu.dimension_semantics<parallel>], iteration_bounds = array<i64: 2, 1>, scalar_prefetch = 0 : i64, scratch_operands = 0 : i64, tpu.core_type = #tpu.core_type<tc>, window_params = [{pipeline_mode = #tpu.pipeline_mode<synchronous>, transform_indices = @transform_0, window_bounds = array<i64: 64, 192>}, {pipeline_mode = #tpu.pipeline_mode<synchronous>, transform_indices = @transform_1, window_bounds = array<i64: 64, 1>}, {transform_indices = @transform_2, window_bounds = array<i64: 1, 192, 1024>}, {transform_indices = @transform_3, window_bounds = array<i64: 1, 16, 1024>}, {transform_indices = @transform_4, window_bounds = array<i64: 1, 16, 1024>}, {transform_indices = @transform_5, window_bounds = array<i64: 1, 16, 1024>}]} {
    %c0 = arith.constant 0 : index
    %c0_0 = arith.constant 0 : index
    %0 = vector.load %arg2[%c0, %c0_0] : memref<64x192xbf16, #tpu.memory_space<vmem>>, vector<64x192xbf16>
    %c0_1 = arith.constant 0 : index
    %c0_2 = arith.constant 0 : index
    %c0_3 = arith.constant 0 : index
    %1 = vector.load %arg4[%c0_1, %c0_2, %c0_3] : memref<1x192x1024xbf16, #tpu.memory_space<vmem>>, vector<1x192x1024xbf16>
    %2 = vector.shape_cast %1 : vector<1x192x1024xbf16> to vector<192x1024xbf16>
    %cst = arith.constant dense<0.000000e+00> : vector<64x1024xf32>
    %3 = tpu.matmul %0, %2, %cst {dimension_numbers = #tpu.dot_dimension_numbers<[1], [0], [0], [1], [0, 0, 1, 1], [], []>} : vector<64x192xbf16>, vector<192x1024xbf16>, vector<64x1024xf32> -> vector<64x1024xf32>
    %c0_4 = arith.constant 0 : index
    %c0_5 = arith.constant 0 : index
    %4 = vector.load %arg3[%c0_4, %c0_5] : memref<64x1xf32, #tpu.memory_space<vmem>>, vector<64x1xf32>
    %5 = vector.broadcast %4 : vector<64x1xf32> to vector<64x1024xf32>
    %6 = arith.addf %3, %5 : vector<64x1024xf32>
    %7 = vector.extract_strided_slice %6 {offsets = [0, 0], sizes = [16, 1024], strides = [1, 1]} : vector<64x1024xf32> to vector<16x1024xf32>
    %8 = arith.negf %7 : vector<16x1024xf32>
    %9 = math.exp %8 : vector<16x1024xf32>
    %cst_6 = arith.constant 1.000000e+00 : f32
    %10 = vector.broadcast %cst_6 : f32 to vector<16x1024xf32>
    %11 = arith.addf %10, %9 : vector<16x1024xf32>
    %12 = arith.divf %10, %11 : vector<16x1024xf32>
    %13 = vector.extract_strided_slice %6 {offsets = [16, 0], sizes = [16, 1024], strides = [1, 1]} : vector<64x1024xf32> to vector<16x1024xf32>
    %14 = arith.negf %13 : vector<16x1024xf32>
    %15 = math.exp %14 : vector<16x1024xf32>
    %cst_7 = arith.constant 1.000000e+00 : f32
    %16 = vector.broadcast %cst_7 : f32 to vector<16x1024xf32>
    %17 = arith.addf %16, %15 : vector<16x1024xf32>
    %18 = arith.divf %16, %17 : vector<16x1024xf32>
    %19 = vector.extract_strided_slice %6 {offsets = [32, 0], sizes = [16, 1024], strides = [1, 1]} : vector<64x1024xf32> to vector<16x1024xf32>
    %20 = arith.negf %19 : vector<16x1024xf32>
    %21 = math.exp %20 : vector<16x1024xf32>
    %cst_8 = arith.constant 1.000000e+00 : f32
    %22 = vector.broadcast %cst_8 : f32 to vector<16x1024xf32>
    %23 = arith.addf %22, %21 : vector<16x1024xf32>
    %24 = arith.divf %22, %23 : vector<16x1024xf32>
    %25 = vector.extract_strided_slice %6 {offsets = [48, 0], sizes = [16, 1024], strides = [1, 1]} : vector<64x1024xf32> to vector<16x1024xf32>
    %26 = math.tanh %25 : vector<16x1024xf32>
    %c0_9 = arith.constant 0 : index
    %c0_10 = arith.constant 0 : index
    %c0_11 = arith.constant 0 : index
    %27 = vector.load %arg5[%c0_9, %c0_10, %c0_11] : memref<1x16x1024xf32, #tpu.memory_space<vmem>>, vector<1x16x1024xf32>
    %28 = vector.shape_cast %27 : vector<1x16x1024xf32> to vector<16x1024xf32>
    %29 = arith.mulf %18, %28 : vector<16x1024xf32>
    %30 = arith.mulf %12, %26 : vector<16x1024xf32>
    %31 = arith.addf %29, %30 : vector<16x1024xf32>
    %c0_12 = arith.constant 0 : index
    %c0_13 = arith.constant 0 : index
    %c0_14 = arith.constant 0 : index
    %32 = vector.load %arg7[%c0_12, %c0_13, %c0_14] : memref<1x16x1024xf32, #tpu.memory_space<vmem>>, vector<1x16x1024xf32>
    %33 = vector.shape_cast %32 : vector<1x16x1024xf32> to vector<16x1024xf32>
    %34 = vector.shape_cast %31 : vector<16x1024xf32> to vector<1x16x1024xf32>
    tpu.vector_store %arg7[%c0_12, %c0_13, %c0_14], %34 {strides = array<i32>} : memref<1x16x1024xf32, #tpu.memory_space<vmem>>, vector<1x16x1024xf32>,
    %35 = math.tanh %31 : vector<16x1024xf32>
    %36 = arith.mulf %24, %35 : vector<16x1024xf32>
    %37 = arith.truncf %36 : vector<16x1024xf32> to vector<16x1024xbf16>
    %c0_15 = arith.constant 0 : index
    %c0_16 = arith.constant 0 : index
    %c0_17 = arith.constant 0 : index
    %38 = vector.load %arg6[%c0_15, %c0_16, %c0_17] : memref<1x16x1024xbf16, #tpu.memory_space<vmem>>, vector<1x16x1024xbf16>
    %39 = vector.shape_cast %38 : vector<1x16x1024xbf16> to vector<16x1024xbf16>
    %40 = vector.shape_cast %37 : vector<16x1024xbf16> to vector<1x16x1024xbf16>
    tpu.vector_store %arg6[%c0_15, %c0_16, %c0_17], %40 {strides = array<i32>} : memref<1x16x1024xbf16, #tpu.memory_space<vmem>>, vector<1x16x1024xbf16>,
    return
  }
  func.func @transform_0(%arg0: i32, %arg1: i32) -> (i32, i32) {
    %c0_i32 = arith.constant 0 : i32
    %c0_i32_0 = arith.constant 0 : i32
    %c0_i32_1 = arith.constant 0 : i32
    return %c0_i32, %c0_i32_0 : i32, i32
  }
  func.func @transform_1(%arg0: i32, %arg1: i32) -> (i32, i32) {
    %c0_i32 = arith.constant 0 : i32
    %c0_i32_0 = arith.constant 0 : i32
    %c0_i32_1 = arith.constant 0 : i32
    return %c0_i32, %c0_i32_0 : i32, i32
  }
  func.func @transform_2(%arg0: i32, %arg1: i32) -> (i32, i32, i32) {
    %c0_i32 = arith.constant 0 : i32
    %c0_i32_0 = arith.constant 0 : i32
    return %arg0, %c0_i32, %arg1 : i32, i32, i32
  }
  func.func @transform_3(%arg0: i32, %arg1: i32) -> (i32, i32, i32) {
    %c0_i32 = arith.constant 0 : i32
    %c0_i32_0 = arith.constant 0 : i32
    return %arg0, %c0_i32, %arg1 : i32, i32, i32
  }
  func.func @transform_4(%arg0: i32, %arg1: i32) -> (i32, i32, i32) {
    %c0_i32 = arith.constant 0 : i32
    %c0_i32_0 = arith.constant 0 : i32
    return %arg0, %c0_i32, %arg1 : i32, i32, i32
  }
  func.func @transform_5(%arg0: i32, %arg1: i32) -> (i32, i32, i32) {
    %c0_i32 = arith.constant 0 : i32
    %c0_i32_0 = arith.constant 0 : i32
    return %arg0, %c0_i32, %arg1 : i32, i32, i32
  }
}

</mosaic_0001>

<bundles_post_ra>
// kernel: tpu_custom_call.1
= control target key start
LH: loop header
LB: loop body
LE: loop exit
PB: predicated region body
PF: predicated region fallthrough
CT: control target
= control target key end

     0   :  { %s5967_s0 = inlined_call_operand.vmem [shape: bf16[64,192], index: 0, kind: input, shape index: {}]   ;;  %s5968_s1 = inlined_call_operand.vmem [shape: f32[64,1], index: 1, kind: input, shape index: {}]   ;;  %s5969_s2 = inlined_call_operand.hbm [shape: bf16[2,192,1024], index: 2, kind: input, shape index: {}]   ;;  %s5970_s3 = inlined_call_operand.hbm [shape: f32[2,16,1024], index: 3, kind: input, shape index: {}]   ;;  %s5971_s4 = inlined_call_operand.hbm [shape: bf16[2,16,1024], index: 4, kind: output, shape index: {0}]   ;;  %s5972_s5 = inlined_call_operand.hbm [shape: f32[2,16,1024], index: 5, kind: output, shape index: {1}]  }
   0x1   :  { %5975 = sst [smem:[#allocation17_spill]] %s5969_s2 }
   0x2   :  { %11 = vsyncpa [#allocation3], 0 }
   0x3   :  { %13 = vsyncpa [#allocation3 + $0x1], 0 }
   0x4   :  { %14 = vsyncpa [#allocation6], 0 }
   0x5   :  { %16 = vsyncpa [#allocation6 + $0x1], 0 }
   0x6   :  { %17 = vsyncpa [#allocation4], 0 }
   0x7   :  { %19 = vsyncpa [#allocation4 + $0x1], 0 }
   0x8   :  { %20 = vsyncpa [#allocation9], 0 }
   0x9   :  { %22 = vsyncpa [#allocation9 + $0x1], 0  ;;  %s3904_s18 = smov 0   ;;  %s3906_s19 = smov 0  }
   0xa   :  { %s3908_s20 = smov 0   ;;  %s3910_s21 = smov 0  }
   0xb   :  { %s3912_s22 = smov 0   ;;  %s3914_s23 = smov 0  }
   0xc LB: > { %5976 = sst [smem:[#allocation14_spill]] %s3851_s20  ;;  %s2719_s24 = sadd.s32 4294967295, %s3863_s23   ;;  %s3863_s23 = sphi %s3914_s23, %s28_s23   ;;  %s3859_s22 = sphi %s3912_s22, %s6116_s22   ;;  %s3855_s21 = sphi %s3910_s21, %s6115_s21   ;;  %s3851_s20 = sphi %s3908_s20, %s6111_s20   ;;  %s3847_s19 = sphi %s3906_s19, %s6114_s19   ;;  %s3843_s18 = sphi %s3904_s18, %s6113_s18  }
   0xd   : > { %s2720_s25 = sadd.s32 4294967294, %s3863_s23   ;;  %s40_s26 = sadd.s32 1, %s3859_s22 }
   0xe   : > { %s91_s27 = sadd.s32 1, %s3851_s20  ;;  %p42_p0 = scmp.ge.s32.totalorder %s40_s26, 2 }
   0xf   : > { %p98_p1 = scmp.ne.s32.totalorder %s3851_s20, %s3847_s19  ;;  %p99_p2 = scmp.eq.s32.totalorder %s3863_s23, 0 }
  0x10   : > { %p104_p3 = scmp.ne.s32.totalorder %s3847_s19, %s3843_s18  ;;  %s6118_s26 = smov (%p42_p0, %s40_s26), 0 }
  0x11   : > { %5977 = sst [smem:[#allocation15_spill]] %s6118_s26  ;;  %p3945_p4 = por %p99_p2, %p98_p1 }
  0x12   : > { %p105_p5 = scmp.eq.s32.totalorder %s2719_s24, 0  ;;  %s86_s29 = ssub.s32 %s3859_s22, %s6118_s26 }
  0x13   : > { %p158_p6 = scmp.eq.s32.totalorder %s2719_s24, 1  ;;  %p89_p7 = scmp.eq.s32.totalorder %s86_s29, 0 }
  0x14   : > { %p3951_p8 = por %p105_p5, %p104_p3  ;;  %p164_p10 = scmp.eq.s32.totalorder %s2720_s25, 1 }
  0x15   : > { %p3955_p9 = por %p158_p6, %p98_p1  ;;  %p2722_p12 = scmp.ge.s32.totalorder %s3863_s23, 2 }
  0x16   : > { %s3960_s7 = scalar_select %p89_p7, %s3851_s20, %s91_s27  }
  0x17   : > { %p3962_p11 = por %p164_p10, %p104_p3  ;;  %p3367_p13 = scmp.lt.s32.totalorder %s3863_s23, 2 }
  0x18   : > { %5981 = sst [smem:[#allocation16_spill]] %s3960_s7  ;;  %s3969_s9 = sand.u32 1, %s3851_s20  }
  0x19   : > { %s3342_s10 = smul.u32 768, %s3969_s9  ;;  %p3975_p0 = pnand %p3367_p13, %p3945_p4 }
  0x1a   : > { %s3343_s11 = smul.u32 768, %s3859_s22  ;;  %s5984_s2 = sld [smem:[#allocation17_spill]] }
  0x1b   : > { %s222_s16 = scalar_lea.vmem [#allocation2], %s3342_s10  ;;  %p2727_p1 = scmp.ge.s32.totalorder %s3863_s23, 1 }
  0x1c   : > { %s232_s17 = sshll.u32 %s222_s16, 4  ;;  %s219_s25 = scalar_lea.sflag [#allocation3], %s3969_s9  ;;  %s233_s17 = int_to_ptr.vmem [resolvable:$true] %s232_s17 }
  0x1d   : > { %s3865_s27 = smov 512   ;;  %s3866_s28 = smov 32  }
  0x1e   : > { %p264_p2 = scmp.lt.s32.totalorder %s3863_s23, 3  ;;  %s2724_s29 = sshll.u32 %s3969_s9, 7 }
  0x1f   : > { %s3235_s26 = sshll.u32 %s3859_s22, 7  ;;  %s3867_s7 = smov 1024  }
  0x20   : > { %s229_s15 = scalar_lea.hbm %s5984_s2, %s3343_s11  ;;  %p265_p3 = pnand %p2727_p1, %p264_p2 }
  0x21   : > { %s230_s24 = sshll.u32 %s229_s15, 4  ;;  %s253_s10 = scalar_lea.hbm %s5970_s3, %s3235_s26  ;;  %s231_s24 = int_to_ptr.hbm [resolvable:$true] %s230_s24 }
  0x22   : > { %3356 = dma.hbm_to_vmem [thread:$0]  (!%p3975_p0), %s231_s24, 12288, %s233_s17, %s219_s25, %s3865_s27, %s3865_s27, %s3866_s28  }
  0x23   : > { %s246_s11 = scalar_lea.vmem [#allocation5], %s2724_s29  ;;  %s254_s16 = sshll.u32 %s253_s10, 4  ;;  %s255_s16 = int_to_ptr.hbm [resolvable:$true] %s254_s16 }
  0x24   : > { %s256_s15 = sshll.u32 %s246_s11, 4  ;;  %s243_s2 = scalar_lea.sflag [#allocation6], %s3969_s9  ;;  %s257_s15 = int_to_ptr.vmem [resolvable:$true] %s256_s15 }
  0x25   : > { %s3868_s20 = smov 64   ;;  %268 = sbr.rel (%p265_p3) target bundleno = 507 (0x1fb), region = 36 }
  0x26   : > { %3359 = dma.hbm_to_vmem [thread:$0]  (!%p3975_p0), %s255_s16, 2048, %s257_s15, %s243_s2, %s3867_s7, %s3867_s7, %s3868_s20  }
  0x27   : > { %s3996_s17 = sand.u32 (!%p265_p3), 1, %s3847_s19  }
  0x28   : > { %s3344_s24 = smul.u32 (!%p265_p3), 768, %s3996_s17  ;;  %s271_s25 = scalar_lea.sflag (!%p265_p3), [#allocation3], %s3996_s17 }
  0x2a   : > { %s4000_s26 = scalar_lea.vmem [#allocation2], %s3344_s24 }
  0x2b   : > { %3826 = dma.done.wait (%p3951_p8), %s271_s25, 12288  }
  0x2c   : > { %3828 = vsyncadd (%p3951_p8), %s271_s25, 4294955008  ;;  %s2728_s2 = sshll.u32 %s3996_s17, 7  ;;  %s281_s20 = scalar_lea.sflag [#allocation6], %s3996_s17 }
  0x2d   : > { %s4010_s7 = scalar_lea.vmem [#allocation5], %s2728_s2 }
  0x2e   : > { %3830 = dma.done.wait (%p3951_p8), %s281_s20, 2048  }
  0x2f   : > { %3832 = vsyncadd (%p3951_p8), %s281_s20, 4294965248  ;;  %v2989_v0 = vld [vmem:[%s4000_s26 + $0x1c0] sm:$0xf]  ;;  %v3300_v5 = vld [vmem:[%s4000_s26 + $0x1c4] sm:$0xf]  ;;  %vm995_vm0 = vcmask 523264  }
  0x30   : > { %v3304_v1 = vld [vmem:[%s4000_s26 + $0x1dc] sm:$0xf0]  ;;  %v2991_v6 = vld [vmem:[%s4000_s26 + $0x1e0] sm:$0xf0]  ;;  %v2735_v48 = vld [vmem:[%s5967_s0 + $0x8] sm:$0xf0] }
  0x31   : > { %v3117_v2 = vld [vmem:[%s4000_s26 + $0x2c0] sm:$0xf]  ;;  %v2990_v3 = vor.u32 %v3304_v1, %v2989_v0  ;;  %v2994_v8 = vor.u32 %v3300_v5, %v2991_v6  ;;  %v3332_v9 = vld [vmem:[%s4000_s26 + $0x2c4] sm:$0xf]  ;;  %v3125_v61 = vld [vmem:[%s4000_s26 + $0x2c8] sm:$0xf] }
  0x32   : > { %v3336_v4 = vld [vmem:[%s4000_s26 + $0x2dc] sm:$0xf0]  ;;  %v3119_v10 = vld [vmem:[%s4000_s26 + $0x2e0] sm:$0xf0]  ;;  %v3337_v62 = vld [vmem:[%s4000_s26 + $0x2e4] sm:$0xf0] }
  0x33   : > { %v3118_v7 = vor.u32 %v3336_v4, %v3117_v2  ;;  %v2957_v11 = vld [vmem:[%s4000_s26 + $0x180] sm:$0xf]  ;;  %1008 = vmatpush.bf16.msra.mxu0 %v2990_v3  ;;  %v3122_v12 = vor.u32 %v3332_v9, %v3119_v10  ;;  %1066 = vmatpush.bf16.msra.mxu2 %v2994_v8  ;;  %v3292_v18 = vld [vmem:[%s4000_s26 + $0x184] sm:$0xf]  ;;  %v3126_v1 = vor.u32 %v3337_v62, %v3125_v61  ;;  %v2997_v2 = vld [vmem:[%s4000_s26 + $0x1c8] sm:$0xf] }
  0x34   : > { %v3296_v13 = vld [vmem:[%s4000_s26 + $0x19c] sm:$0xf0]  ;;  %v2959_v19 = vld [vmem:[%s4000_s26 + $0x1a0] sm:$0xf0]  ;;  %v3305_v3 = vld [vmem:[%s4000_s26 + $0x1e4] sm:$0xf0] }
  0x35   : > { %v3085_v14 = vld [vmem:[%s4000_s26 + $0x280] sm:$0xf]  ;;  %1041 = vmatpush.bf16.msra.mxu1 %v3118_v7  ;;  %v2958_v16 = vor.u32 %v3296_v13, %v2957_v11  ;;  %v3324_v20 = vld [vmem:[%s4000_s26 + $0x284] sm:$0xf]  ;;  %1099 = vmatpush.bf16.msra.mxu3 %v3122_v12  ;;  %v2962_v21 = vor.u32 %v3292_v18, %v2959_v19  ;;  %v2998_v7 = vor.u32 %v3305_v3, %v2997_v2  ;;  %v3869_v10 = vmov 0   ;;  %s4737_s27 = scalar_lea.vmem [#allocation8], %s2728_s2 }
  0x36   : > { %v3328_v15 = vld [vmem:[%s4000_s26 + $0x29c] sm:$0xf0]  ;;  %v3087_v22 = vld [vmem:[%s4000_s26 + $0x2a0] sm:$0xf0]  ;;  %3426 = vset.pattern.permute.xlu0 %v3869_v10  ;;  %v2965_v11 = vld [vmem:[%s4000_s26 + $0x188] sm:$0xf]  ;;  %3427 = vset.pattern.permute.xlu1 %v3869_v10 }
  0x37   : > { %v3086_v17 = vor.u32 %v3328_v15, %v3085_v14  ;;  %v2925_v23 = vld [vmem:[%s4000_s26 + $0x140] sm:$0xf]  ;;  %v3090_v25 = vor.u32 %v3324_v20, %v3087_v22  ;;  %v3284_v28 = vld [vmem:[%s4000_s26 + $0x144] sm:$0xf]  ;;  %1009 = vmatpush.bf16.msra.mxu0 %v2958_v16  ;;  %1067 = vmatpush.bf16.msra.mxu2 %v2962_v21  ;;  %v3297_v12 = vld [vmem:[%s4000_s26 + $0x1a4] sm:$0xf0] }
  0x38   : > { %v3288_v24 = vld [vmem:[%s4000_s26 + $0x15c] sm:$0xf0]  ;;  %v2927_v30 = vld [vmem:[%s4000_s26 + $0x160] sm:$0xf0]  ;;  %v2966_v14 = vor.u32 %v3297_v12, %v2965_v11  ;;  %v3093_v18 = vld [vmem:[%s4000_s26 + $0x288] sm:$0xf]  ;;  %3428 = vset.pattern.permute.xlu2 %v3869_v10 }
  0x39   : > { %v3053_v26 = vld [vmem:[%s4000_s26 + $0x240] sm:$0xf]  ;;  %v2926_v29 = vor.u32 %v3288_v24, %v2925_v23  ;;  %v3316_v31 = vld [vmem:[%s4000_s26 + $0x244] sm:$0xf]  ;;  %1042 = vmatpush.bf16.msra.mxu1 %v3086_v17  ;;  %v2930_v34 = vor.u32 %v3284_v28, %v2927_v30  ;;  %1100 = vmatpush.bf16.msra.mxu3 %v3090_v25  ;;  %v3301_v21 = vld [vmem:[%s4000_s26 + $0x1cc] sm:$0xf] }
  0x3a   : > { %v3320_v27 = vld [vmem:[%s4000_s26 + $0x25c] sm:$0xf0]  ;;  %v3055_v32 = vld [vmem:[%s4000_s26 + $0x260] sm:$0xf0]  ;;  %v3329_v22 = vld [vmem:[%s4000_s26 + $0x2a4] sm:$0xf0] }
  0x3b   : > { %v3054_v33 = vor.u32 %v3320_v27, %v3053_v26  ;;  %v2893_v35 = vld [vmem:[%s4000_s26 + $0x100] sm:$0xf]  ;;  %v3058_v38 = vor.u32 %v3316_v31, %v3055_v32  ;;  %v3276_v40 = vld [vmem:[%s4000_s26 + $0x104] sm:$0xf]  ;;  %1010 = vmatpush.bf16.msra.mxu0 %v2926_v29  ;;  %1068 = vmatpush.bf16.msra.mxu2 %v2930_v34  ;;  %v3237_v24 = vld [vmem:[%s5967_s0 + $0x4] sm:$0xf0]  ;;  %v3094_v26 = vor.u32 %v3329_v22, %v3093_v18 }
  0x3c   : > { %v3280_v36 = vld [vmem:[%s4000_s26 + $0x11c] sm:$0xf0]  ;;  %v2895_v41 = vld [vmem:[%s4000_s26 + $0x120] sm:$0xf0]  ;;  %v2999_v25 = vld [vmem:[%s4000_s26 + $0x1e8] sm:$0xf0] }
  0x3d   : > { %v3021_v37 = vld [vmem:[%s4000_s26 + $0x200] sm:$0xf]  ;;  %v3308_v42 = vld [vmem:[%s4000_s26 + $0x204] sm:$0xf]  ;;  %v2894_v44 = vor.u32 %v3280_v36, %v2893_v35  ;;  %1043 = vmatpush.bf16.msra.mxu1 %v3054_v33  ;;  %v2898_v47 = vor.u32 %v3276_v40, %v2895_v41  ;;  %1101 = vmatpush.bf16.msra.mxu3 %v3058_v38  ;;  %v2933_v27 = vld [vmem:[%s4000_s26 + $0x148] sm:$0xf]  ;;  %v3002_v40 = vor.u32 %v3301_v21, %v2999_v25 }
  0x3e   : > { %v3312_v39 = vld [vmem:[%s4000_s26 + $0x21c] sm:$0xf0]  ;;  %v3023_v43 = vld [vmem:[%s4000_s26 + $0x220] sm:$0xf0]  ;;  %v3289_v28 = vld [vmem:[%s4000_s26 + $0x164] sm:$0xf0] }
  0x3f   : > { %v3236_v45 = vld [vmem:[%s5967_s0 + $0x4] sm:$0xf]  ;;  %v3022_v46 = vor.u32 %v3312_v39, %v3021_v37  ;;  %v2861_v49 = vld [vmem:[%s4000_s26 + $0xc0] sm:$0xf]  ;;  %v3026_v51 = vor.u32 %v3308_v42, %v3023_v43  ;;  %1011 = vmatpush.bf16.msra.mxu0 %v2894_v44  ;;  %1069 = vmatpush.bf16.msra.mxu2 %v2898_v47  ;;  %v3333_v29 = vld [vmem:[%s4000_s26 + $0x2cc] sm:$0xf]  ;;  %v2934_v31 = vor.u32 %v3289_v28, %v2933_v27 }
  0x40   : > { %v3272_v50 = vld [vmem:[%s4000_s26 + $0xdc] sm:$0xf0]  ;;  %v3268_v52 = vld [vmem:[%s4000_s26 + $0xc4] sm:$0xf]  ;;  %v4058_v54 = vor.u32 %v3236_v45, %v2735_v48  ;;  %v3127_v30 = vld [vmem:[%s4000_s26 + $0x2e8] sm:$0xf0] }
  0x41   : > { %v2863_v53 = vld [vmem:[%s4000_s26 + $0xe0] sm:$0xf0]  ;;  %v2862_v55 = vor.u32 %v3272_v50, %v2861_v49  ;;  %1044 = vmatpush.bf16.msra.mxu1 %v3022_v46  ;;  %v2829_v57 = vld [vmem:[%s4000_s26 + $0x80] sm:$0xf]  ;;  %1102 = vmatpush.bf16.msra.mxu3 %v3026_v51  ;;  %v433_v32 = vld [vmem:[%s5968_s1 + $0x10] sm:$0xff]  ;;  %v3130_v41 = vor.u32 %v3333_v29, %v3127_v30  ;;  %s3341_s28 = sshll.u32 %s3855_s21, 7 }
  0x42   : > { %v2866_v56 = vor.u32 %v3268_v52, %v2863_v53  ;;  %v3264_v58 = vld [vmem:[%s4000_s26 + $0x9c] sm:$0xf0]  ;;  %v3260_v59 = vld [vmem:[%s4000_s26 + $0x84] sm:$0xf]  ;;  %v432_v34 = vld [vmem:[%s5968_s1 + $0x8] sm:$0xff]  ;;  %451 = vperm.xlu1 %3427, %v433_v32   ;;  %s2566_s14 = scalar_lea.hbm %s5972_s5, %s3341_s28  ;;  %s2567_s10 = sshll.u32 %s4737_s27, 4  ;;  %s5882_s10 = int_to_ptr.vmem [resolvable:$true] %s2567_s10 }
  0x43   : > { %v2831_v60 = vld [vmem:[%s4000_s26 + $0xa0] sm:$0xf0]  ;;  %1012 = vmatpush.bf16.msra.mxu0 %v2862_v55  ;;  %v2830_v63 = vor.u32 %v3264_v58, %v2829_v57  ;;  %v2797_v0 = vld [vmem:[%s4000_s26 + $0x40] sm:$0xf]  ;;  %v2901_v35 = vld [vmem:[%s4000_s26 + $0x108] sm:$0xf] }
  0x44   : > { %3147 = vmatmul.msk.bf16.vlgmr.msra.gmra.mxu1 %vm995_vm0, %v4058_v54  ;;  %3151 = vmatmul.msk.bf16.vlgmr.msra.gmra.mxu3 %vm995_vm0, %v4058_v54  ;;  %v2834_v4 = vor.u32 %v3260_v59, %v2831_v60  ;;  %v3256_v5 = vld [vmem:[%s4000_s26 + $0x5c] sm:$0xf0]  ;;  %v3252_v6 = vld [vmem:[%s4000_s26 + $0x44] sm:$0xf]  ;;  %v3281_v36 = vld [vmem:[%s4000_s26 + $0x124] sm:$0xf0] }
  0x45   : > { %1070 = vmatpush.bf16.msra.mxu2 %v2866_v56  ;;  %v431_v8 = vld [vmem:[%s5968_s1] sm:$0xff]  ;;  %1157 = vmatpush.bf16.msrb.mxu3 %v3126_v1  ;;  %v2798_v15 = vor.u32 %v3256_v5, %v2797_v0  ;;  %v3238_v38 = vld [vmem:[%s5967_s0 + $0x14] sm:$0xf]  ;;  %v2743_v39 = vld [vmem:[%s5967_s0 + $0x18] sm:$0xf0]  ;;  %v2902_v47 = vor.u32 %v3281_v36, %v2901_v35  ;;  %s2569_s11 = sshll.u32 %s2566_s14, 4  ;;  %s5887_s11 = int_to_ptr.hbm [resolvable:$true] %s2569_s11 }
  0x46   : > { %v2799_v9 = vld [vmem:[%s4000_s26 + $0x60] sm:$0xf0]  ;;  %v2765_v13 = vld [vmem:[%s4000_s26] sm:$0xf]  ;;  %1124 = vmatpush.bf16.msrb.mxu1 %v2998_v7  ;;  %441 = vperm.xlu0 %3426, %v431_v8   ;;  %v3293_v42 = vld [vmem:[%s4000_s26 + $0x18c] sm:$0xf]  ;;  %v4119_v48 = vor.u32 %v3238_v38, %v2743_v39 }
  0x47   : > { %1013 = vmatpush.bf16.msra.mxu0 %v2830_v63  ;;  %v3248_v16 = vld [vmem:[%s4000_s26 + $0x1c] sm:$0xf0]  ;;  %v3244_v17 = vld [vmem:[%s4000_s26 + $0x4] sm:$0xf]  ;;  %v2802_v19 = vor.u32 %v3252_v6, %v2799_v9  ;;  %v2967_v43 = vld [vmem:[%s4000_s26 + $0x1a8] sm:$0xf0] }
  0x48   : > { %v2767_v20 = vld [vmem:[%s4000_s26 + $0x20] sm:$0xf0]  ;;  %v2733_v23 = vld [vmem:[%s5967_s0] sm:$0xf]  ;;  %v2766_v33 = vor.u32 %v3248_v16, %v2765_v13  ;;  %v3325_v45 = vld [vmem:[%s4000_s26 + $0x28c] sm:$0xf]  ;;  %v2970_v49 = vor.u32 %v3293_v42, %v2967_v43 }
  0x49   : > { %1071 = vmatpush.bf16.msra.mxu2 %v2834_v4  ;;  %1158 = vmatpush.bf16.msrb.mxu3 %v3094_v26  ;;  %v2770_v37 = vor.u32 %v3244_v17, %v2767_v20  ;;  %v4115_v44 = vor.u32 %v3237_v24, %v2733_v23  ;;  %v3095_v46 = vld [vmem:[%s4000_s26 + $0x2a8] sm:$0xf0]  ;;  %v2869_v53 = vld [vmem:[%s4000_s26 + $0xc8] sm:$0xf]  ;;  %v434_v1 = vld [vmem:[%s5968_s1 + $0x18] sm:$0xff]  ;;  %s2534_s15 = scalar_lea.sflag [#allocation9], %s3996_s17 }
  0x4a   : > { %1125 = vmatpush.bf16.msrb.mxu1 %v2966_v14  ;;  %v3098_v50 = vor.u32 %v3325_v45, %v3095_v46  ;;  %v3285_v51 = vld [vmem:[%s4000_s26 + $0x14c] sm:$0xf]  ;;  %v3273_v55 = vld [vmem:[%s4000_s26 + $0xe4] sm:$0xf0]  ;;  %456 = vperm.xlu1 %3427, %v434_v1   ;;  %v2741_v13 = vld [vmem:[%s5967_s0 + $0x10] sm:$0xf] }
  0x4b   : > { %1014 = vmatpush.bf16.msra.mxu0 %v2798_v15  ;;  %v2935_v52 = vld [vmem:[%s4000_s26 + $0x168] sm:$0xf0]  ;;  %v2870_v57 = vor.u32 %v3273_v55, %v2869_v53  ;;  %v3061_v59 = vld [vmem:[%s4000_s26 + $0x248] sm:$0xf]  ;;  %v3239_v16 = vld [vmem:[%s5967_s0 + $0x14] sm:$0xf0] }
  0x4c   : > { %v3277_v56 = vld [vmem:[%s4000_s26 + $0x10c] sm:$0xf]  ;;  %v2938_v58 = vor.u32 %v3285_v51, %v2935_v52  ;;  %v3321_v60 = vld [vmem:[%s4000_s26 + $0x264] sm:$0xf0]  ;;  %v4164_v24 = vor.u32 %v3239_v16, %v2741_v13  ;;  %v2749_v38 = vld [vmem:[%s5967_s0 + $0x20] sm:$0xf] }
  0x4d   : > { %1072 = vmatpush.bf16.msra.mxu2 %v2802_v19  ;;  %v3317_v61 = vld [vmem:[%s4000_s26 + $0x24c] sm:$0xf]  ;;  %v3062_v63 = vor.u32 %v3321_v60, %v3061_v59  ;;  %v2837_v3 = vld [vmem:[%s4000_s26 + $0x88] sm:$0xf]  ;;  %v3240_v19 = vld [vmem:[%s5967_s0 + $0x24] sm:$0xf] }
  0x4e   : > { %446 = vperm.xlu0 %3426, %v432_v34   ;;  %1126 = vmatpush.bf16.msrb.mxu1 %v2934_v31  ;;  %v2903_v62 = vld [vmem:[%s4000_s26 + $0x128] sm:$0xf0]  ;;  %v3265_v4 = vld [vmem:[%s4000_s26 + $0xa4] sm:$0xf0]  ;;  %v3133_v45 = vld [vmem:[%s4000_s26 + $0x2d0] sm:$0xf] }
  0x4f   : > { %1015 = vmatpush.bf16.msra.mxu0 %v2766_v33  ;;  %v3063_v0 = vld [vmem:[%s4000_s26 + $0x268] sm:$0xf0]  ;;  %1159 = vmatpush.bf16.msrb.mxu3 %v3062_v63  ;;  %v2838_v5 = vor.u32 %v3265_v4, %v2837_v3  ;;  %v2805_v6 = vld [vmem:[%s4000_s26 + $0x48] sm:$0xf]  ;;  %v2906_v8 = vor.u32 %v3277_v56, %v2903_v62  ;;  %v437_v33 = vld [vmem:[%s5968_s1 + $0x30] sm:$0xff]  ;;  %s3759_s16 = sshra.s32 %s5887_s11, 4  ;;  %s3760_s16 = int_to_ptr.hbm [resolvable:$true] %s3759_s16 }
  0x50   : > { %v3066_v2 = vor.u32 %v3317_v61, %v3063_v0  ;;  %v3257_v7 = vld [vmem:[%s4000_s26 + $0x64] sm:$0xf0]  ;;  %v3269_v9 = vld [vmem:[%s4000_s26 + $0xcc] sm:$0xf]  ;;  %v3338_v46 = vld [vmem:[%s4000_s26 + $0x2ec] sm:$0xf0]  ;;  %p3766_p7 = scmp.lt.s32.totalorder %s3760_s16, %s5972_s5 }
  0x51   : > { %1073 = vmatpush.bf16.msra.mxu2 %v2770_v37  ;;  %v2871_v10 = vld [vmem:[%s4000_s26 + $0xe8] sm:$0xf0]  ;;  %v3029_v11 = vld [vmem:[%s4000_s26 + $0x208] sm:$0xf]  ;;  %v2806_v14 = vor.u32 %v3257_v7, %v2805_v6  ;;  %v435_v51 = vld [vmem:[%s5968_s1 + $0x20] sm:$0xff]  ;;  %s3761_s24 = scalar_lea.hbm %s3760_s16, 128 }
  0x52   : > { %1016 = vmatmul.bf16.vlgmr.msra.gmra.mxu0 %v4115_v44  ;;  %1127 = vmatpush.bf16.msrb.mxu1 %v2902_v47  ;;  %v3313_v12 = vld [vmem:[%s4000_s26 + $0x224] sm:$0xf0]  ;;  %v2751_v20 = vld [vmem:[%s5967_s0 + $0x28] sm:$0xf0]  ;;  %v2874_v21 = vor.u32 %v3269_v9, %v2871_v10  ;;  %v3334_v47 = vld [vmem:[%s4000_s26 + $0x2d4] sm:$0xf]  ;;  %p3762_p4 = scmp.ne.s32.totalorder %s3760_s16, %s3761_s24 }
  0x53   : > { %1182 = vmatpush.bf16.msrb.mxu0 %v3002_v40  ;;  %v3030_v15 = vor.u32 %v3313_v12, %v3029_v11  ;;  %v2773_v17 = vld [vmem:[%s4000_s26 + $0x8] sm:$0xf]  ;;  %v3261_v22 = vld [vmem:[%s4000_s26 + $0x8c] sm:$0xf]  ;;  %v4166_v26 = vor.u32 %v3240_v19, %v2751_v20  ;;  %v3242_v40 = vld [vmem:[%s5967_s0 + $0x34] sm:$0xf]  ;;  %461 = vperm.xlu2 %3428, %v435_v51  }
  0x54   : > { %3148 = vmatmul.msk.bf16.gmra.mxu1 %vm995_vm0, %v4119_v48  ;;  %1074 = vmatmul.bf16.vlgmr.msra.gmra.mxu2 %v4115_v44  ;;  %v3249_v18 = vld [vmem:[%s4000_s26 + $0x24] sm:$0xf0]  ;;  %v2839_v23 = vld [vmem:[%s4000_s26 + $0xa8] sm:$0xf0]  ;;  %v438_v52 = vld [vmem:[%s5968_s1 + $0x38] sm:$0xff]  ;;  %p3763_p5 = pnand %p3762_p4, %p3955_p9  ;;  %s3765_s30 = scalar_lea.hbm %s5972_s5, 256 }
  0x55   : > { %1215 = vmatpush.bf16.msrb.mxu2 %v3130_v41  ;;  %3152 = vmatmul.msk.bf16.gmra.mxu3 %vm995_vm0, %v4119_v48  ;;  %v2774_v25 = vor.u32 %v3249_v18, %v2773_v17  ;;  %v2842_v27 = vor.u32 %v3261_v22, %v2839_v23  ;;  %v3309_v28 = vld [vmem:[%s4000_s26 + $0x20c] sm:$0xf]  ;;  %v3241_v39 = vld [vmem:[%s5967_s0 + $0x24] sm:$0xf0]  ;;  %v2759_v41 = vld [vmem:[%s5967_s0 + $0x38] sm:$0xf0]  ;;  %p3767_p8 = scmp.lt.s32.totalorder %s3765_s30, %s3761_s24 }
  0x56   : > { %1128 = vmatpush.bf16.msrb.mxu1 %v2870_v57  ;;  %1160 = vmatpush.bf16.msrb.mxu3 %v3030_v15  ;;  %v3031_v29 = vld [vmem:[%s4000_s26 + $0x228] sm:$0xf0]  ;;  %v4195_v42 = vor.u32 %v3241_v39, %v2749_v38  ;;  %v4197_v43 = vor.u32 %v3242_v40, %v2759_v41  ;;  %v3005_v55 = vld [vmem:[%s4000_s26 + $0x1d0] sm:$0xf]  ;;  %v3302_v57 = vld [vmem:[%s4000_s26 + $0x1d4] sm:$0xf]  ;;  %p3764_p6 = pneg %p3763_p5 }
  0x57   : > { %1183 = vmatpush.bf16.msrb.mxu0 %v2970_v49  ;;  %v3253_v30 = vld [vmem:[%s4000_s26 + $0x4c] sm:$0xf]  ;;  %v3034_v31 = vor.u32 %v3309_v28, %v3031_v29  ;;  %471 = vperm.xlu0 %3426, %v437_v33   ;;  %v3134_v49 = vor.u32 %v3338_v46, %v3133_v45  ;;  %v3306_v56 = vld [vmem:[%s4000_s26 + $0x1ec] sm:$0xf0]  ;;  %v3007_v59 = vld [vmem:[%s4000_s26 + $0x1f0] sm:$0xf0]  ;;  %p3768_p10 = por %p3767_p8, %p3766_p7 }
  0x58   : > { %v2807_v32 = vld [vmem:[%s4000_s26 + $0x68] sm:$0xf0]  ;;  %476 = vperm.xlu1 %3427, %v438_v52   ;;  %v2973_v60 = vld [vmem:[%s4000_s26 + $0x190] sm:$0xf]  ;;  %v3010_v61 = vor.u32 %v3302_v57, %v3007_v59  ;;  %v3294_v63 = vld [vmem:[%s4000_s26 + $0x194] sm:$0xf] }
  0x59   : > { %1216 = vmatpush.bf16.msrb.mxu2 %v3098_v50  ;;  %v3245_v34 = vld [vmem:[%s4000_s26 + $0xc] sm:$0xf]  ;;  %v2810_v35 = vor.u32 %v3253_v30, %v2807_v32  ;;  %v3135_v50 = vld [vmem:[%s4000_s26 + $0x2f0] sm:$0xf0]  ;;  %v3298_v62 = vld [vmem:[%s4000_s26 + $0x1ac] sm:$0xf0]  ;;  %p3769_p13 = pnand %p3768_p10, %p3764_p6 }
  0x5a   : > { %1129 = vmatpush.bf16.msrb.mxu1 %v2838_v5  ;;  %v2775_v36 = vld [vmem:[%s4000_s26 + $0x28] sm:$0xf0]  ;;  %v3138_v53 = vor.u32 %v3334_v47, %v3135_v50  ;;  %1273 = vmatpush.bf16.msra.mxu3 %v3134_v49  ;;  %v2975_v0 = vld [vmem:[%s4000_s26 + $0x1b0] sm:$0xf0]  ;;  %v2974_v1 = vor.u32 %v3298_v62, %v2973_v60  ;;  %v2757_v3 = vld [vmem:[%s5967_s0 + $0x30] sm:$0xf] }
  0x5b   : > { %1184 = vmatpush.bf16.msrb.mxu0 %v2938_v58  ;;  %v2778_v37 = vor.u32 %v3245_v34, %v2775_v36  ;;  %v3006_v58 = vor.u32 %v3306_v56, %v3005_v55  ;;  %v3243_v4 = vld [vmem:[%s5967_s0 + $0x34] sm:$0xf0]  ;;  %v436_v5 = vld [vmem:[%s5968_s1 + $0x28] sm:$0xff]  ;;  %v3101_v7 = vld [vmem:[%s4000_s26 + $0x290] sm:$0xf] }
  0x5c   : > { %v4232_v6 = vor.u32 %v3243_v4, %v2757_v3  ;;  %466 = vperm.xlu2 %3428, %v436_v5   ;;  %v3326_v9 = vld [vmem:[%s4000_s26 + $0x294] sm:$0xf]  ;;  %v2941_v12 = vld [vmem:[%s4000_s26 + $0x150] sm:$0xf]  ;;  %v3013_v5 = vld [vmem:[%s4000_s26 + $0x1d8] sm:$0xf] }
  0x5d   : > { %1217 = vmatpush.bf16.msrb.mxu2 %v3066_v2  ;;  %v2978_v2 = vor.u32 %v3294_v63, %v2975_v0  ;;  %v3103_v11 = vld [vmem:[%s4000_s26 + $0x2b0] sm:$0xf0]  ;;  %v3290_v13 = vld [vmem:[%s4000_s26 + $0x16c] sm:$0xf0] }
  0x5e   : > { %1130 = vmatpush.bf16.msrb.mxu1 %v2806_v14  ;;  %v3106_v14 = vor.u32 %v3326_v9, %v3103_v11  ;;  %v2942_v15 = vor.u32 %v3290_v13, %v2941_v12  ;;  %v3286_v16 = vld [vmem:[%s4000_s26 + $0x154] sm:$0xf]  ;;  %v2909_v18 = vld [vmem:[%s4000_s26 + $0x110] sm:$0xf]  ;;  %v2981_v9 = vld [vmem:[%s4000_s26 + $0x198] sm:$0xf] }
  0x5f   : > { %1185 = vmatpush.bf16.msrb.mxu0 %v2906_v8  ;;  %v3330_v8 = vld [vmem:[%s4000_s26 + $0x2ac] sm:$0xf0]  ;;  %v2943_v17 = vld [vmem:[%s4000_s26 + $0x170] sm:$0xf0] }
  0x60   : > { %v3102_v10 = vor.u32 %v3330_v8, %v3101_v7  ;;  %v2946_v19 = vor.u32 %v3286_v16, %v2943_v17  ;;  %v3282_v20 = vld [vmem:[%s4000_s26 + $0x12c] sm:$0xf0]  ;;  %v2911_v22 = vld [vmem:[%s4000_s26 + $0x130] sm:$0xf0]  ;;  %v3307_v7 = vld [vmem:[%s4000_s26 + $0x1f4] sm:$0xf0] }
  0x61   : > { %1218 = vmatpush.bf16.msrb.mxu2 %v3034_v31  ;;  %v2910_v23 = vor.u32 %v3282_v20, %v2909_v18  ;;  %v3274_v28 = vld [vmem:[%s4000_s26 + $0xec] sm:$0xf0]  ;;  %v3318_v32 = vld [vmem:[%s4000_s26 + $0x254] sm:$0xf]  ;;  %v3014_v8 = vor.u32 %v3307_v7, %v3013_v5  ;;  %v3335_v16 = vld [vmem:[%s4000_s26 + $0x2dc] sm:$0xf] }
  0x62   : > { %1021 = vmatmul.bf16.gmra.mxu0 %v4164_v24  ;;  %1131 = vmatpush.bf16.msrb.mxu1 %v2774_v25  ;;  %v3069_v30 = vld [vmem:[%s4000_s26 + $0x250] sm:$0xf]  ;;  %v3071_v34 = vld [vmem:[%s4000_s26 + $0x270] sm:$0xf0]  ;;  %v3143_v18 = vld [vmem:[%s4000_s26 + $0x2f8] sm:$0xf0] }
  0x63   : > { %1186 = vmatpush.bf16.msrb.mxu0 %v2874_v21  ;;  %1274 = vmatpush.bf16.msra.mxu3 %v3102_v10  ;;  %v3278_v21 = vld [vmem:[%s4000_s26 + $0x114] sm:$0xf]  ;;  %v3322_v31 = vld [vmem:[%s4000_s26 + $0x26c] sm:$0xf0]  ;;  %v3299_v10 = vld [vmem:[%s4000_s26 + $0x1b4] sm:$0xf0] }
  0x64   : > { %3149 = vmatmul.msk.bf16.gmra.mxu1 %vm995_vm0, %v4166_v26  ;;  %1079 = vmatmul.bf16.gmra.mxu2 %v4164_v24  ;;  %v2914_v25 = vor.u32 %v3278_v21, %v2911_v22  ;;  %v3070_v33 = vor.u32 %v3322_v31, %v3069_v30  ;;  %v2879_v36 = vld [vmem:[%s4000_s26 + $0xf0] sm:$0xf0]  ;;  %v2845_v39 = vld [vmem:[%s4000_s26 + $0x90] sm:$0xf]  ;;  %v2982_v12 = vor.u32 %v3299_v10, %v2981_v9  ;;  %v2949_v20 = vld [vmem:[%s4000_s26 + $0x158] sm:$0xf] }
  0x65   : > { %3153 = vmatmul.msk.bf16.gmra.mxu3 %vm995_vm0, %v4166_v26  ;;  %1331 = vmatpush.bf16.msra.mxu2 %v3138_v53  ;;  %v3266_v40 = vld [vmem:[%s4000_s26 + $0xac] sm:$0xf0]  ;;  %v3262_v47 = vld [vmem:[%s4000_s26 + $0x94] sm:$0xf]  ;;  %v3291_v21 = vld [vmem:[%s4000_s26 + $0x174] sm:$0xf0] }
  0x66   : > { %1240 = vmatpush.bf16.msra.mxu1 %v3006_v58  ;;  %v2813_v41 = vld [vmem:[%s4000_s26 + $0x50] sm:$0xf]  ;;  %v2846_v45 = vor.u32 %v3266_v40, %v2845_v39  ;;  %v2847_v49 = vld [vmem:[%s4000_s26 + $0xb0] sm:$0xf0]  ;;  %v3303_v30 = vld [vmem:[%s4000_s26 + $0x1dc] sm:$0xf] }
  0x67   : > { %1187 = vmatpush.bf16.msrb.mxu0 %v2842_v27  ;;  %v2877_v27 = vld [vmem:[%s4000_s26 + $0xd0] sm:$0xf]  ;;  %1275 = vmatpush.bf16.msra.mxu3 %v3070_v33  ;;  %v2850_v50 = vor.u32 %v3262_v47, %v2847_v49  ;;  %v3310_v59 = vld [vmem:[%s4000_s26 + $0x214] sm:$0xf]  ;;  %v3015_v31 = vld [vmem:[%s4000_s26 + $0x1f8] sm:$0xf0] }
  0x68   : > { %v2878_v29 = vor.u32 %v3274_v28, %v2877_v27  ;;  %v3258_v46 = vld [vmem:[%s4000_s26 + $0x6c] sm:$0xf0]  ;;  %v3039_v60 = vld [vmem:[%s4000_s26 + $0x230] sm:$0xf0]  ;;  %v3283_v27 = vld [vmem:[%s4000_s26 + $0x134] sm:$0xf0] }
  0x69   : > { %1332 = vmatpush.bf16.msra.mxu2 %v3106_v14  ;;  %v2814_v51 = vor.u32 %v3258_v46, %v2813_v41  ;;  %v2781_v52 = vld [vmem:[%s4000_s26 + $0x10] sm:$0xf]  ;;  %v3254_v62 = vld [vmem:[%s4000_s26 + $0x54] sm:$0xf]  ;;  %v3141_v14 = vld [vmem:[%s4000_s26 + $0x2d8] sm:$0xf] }
  0x6a   : > { %1241 = vmatpush.bf16.msra.mxu1 %v2974_v1  ;;  %v3250_v53 = vld [vmem:[%s4000_s26 + $0x2c] sm:$0xf0]  ;;  %v2815_v63 = vld [vmem:[%s4000_s26 + $0x70] sm:$0xf0]  ;;  %v3295_v46 = vld [vmem:[%s4000_s26 + $0x19c] sm:$0xf] }
  0x6b   : > { %1188 = vmatpush.bf16.msrb.mxu0 %v2810_v35  ;;  %v3270_v35 = vld [vmem:[%s4000_s26 + $0xd4] sm:$0xf]  ;;  %v3037_v55 = vld [vmem:[%s4000_s26 + $0x210] sm:$0xf]  ;;  %v2782_v56 = vor.u32 %v3250_v53, %v2781_v52  ;;  %v2818_v0 = vor.u32 %v3254_v62, %v2815_v63  ;;  %v2983_v47 = vld [vmem:[%s4000_s26 + $0x1b8] sm:$0xf0] }
  0x6c   : > { %v2882_v38 = vor.u32 %v3270_v35, %v2879_v36  ;;  %v3314_v57 = vld [vmem:[%s4000_s26 + $0x22c] sm:$0xf0]  ;;  %v3246_v1 = vld [vmem:[%s4000_s26 + $0x14] sm:$0xf]  ;;  %v3018_v35 = vor.u32 %v3303_v30, %v3015_v31  ;;  %v3109_v49 = vld [vmem:[%s4000_s26 + $0x298] sm:$0xf]  ;;  %v2986_v53 = vor.u32 %v3295_v46, %v2983_v47 }
  0x6d   : > { %v3038_v58 = vor.u32 %v3314_v57, %v3037_v55  ;;  %v3331_v55 = vld [vmem:[%s4000_s26 + $0x2b4] sm:$0xf0] }
  0x6e   : > { %1242 = vmatpush.bf16.msra.mxu1 %v2942_v15  ;;  %v3339_v15 = vld [vmem:[%s4000_s26 + $0x2f4] sm:$0xf0] }
  0x6f   : > { %1189 = vmatpush.bf16.msrb.mxu0 %v2778_v37  ;;  %v3074_v37 = vor.u32 %v3318_v32, %v3071_v34  ;;  %1276 = vmatpush.bf16.msra.mxu3 %v3038_v58  ;;  %v3142_v17 = vor.u32 %v3339_v15, %v3141_v14  ;;  %v3267_v57 = vld [vmem:[%s4000_s26 + $0xb4] sm:$0xf0] }
  0x70   : > { %v3323_v7 = vld [vmem:[%s4000_s26 + $0x274] sm:$0xf0] }
  0x71   : > { %1333 = vmatpush.bf16.msra.mxu2 %v3074_v37  ;;  %v2885_v37 = vld [vmem:[%s4000_s26 + $0xd8] sm:$0xf] }
  0x72   : > { %1026 = vmatmul.bf16.gmra.mxu0 %v4195_v42  ;;  %1243 = vmatpush.bf16.msra.mxu1 %v2910_v23  ;;  %v2950_v23 = vor.u32 %v3291_v21, %v2949_v20  ;;  %v3259_v15 = vld [vmem:[%s4000_s26 + $0x74] sm:$0xf0] }
  0x73   : > { %1298 = vmatpush.bf16.msra.mxu0 %v3010_v61  ;;  %v3042_v61 = vor.u32 %v3310_v59, %v3039_v60  ;;  %v3110_v60 = vor.u32 %v3331_v55, %v3109_v49  ;;  %v3251_v46 = vld [vmem:[%s4000_s26 + $0x34] sm:$0xf0] }
  0x74   : > { %3150 = vmatmul.msk.bf16.gmra.mxu1 %vm995_vm0, %v4197_v43  ;;  %1084 = vmatmul.bf16.gmra.mxu2 %v4195_v42  ;;  %v3045_v47 = vld [vmem:[%s4000_s26 + $0x218] sm:$0xf] }
  0x75   : > { %3154 = vmatmul.msk.bf16.gmra.mxu3 %vm995_vm0, %v4197_v43  ;;  %1334 = vmatpush.bf16.msra.mxu2 %v3042_v61 }
  0x76   : > { %1244 = vmatpush.bf16.msra.mxu1 %v2878_v29 }
  0x77   : > { %1299 = vmatpush.bf16.msra.mxu0 %v2978_v2  ;;  %v2783_v2 = vld [vmem:[%s4000_s26 + $0x30] sm:$0xf0] }
  0x78   : > { %v2786_v3 = vor.u32 %v3246_v1, %v2783_v2  ;;  %v2951_v1 = vld [vmem:[%s4000_s26 + $0x178] sm:$0xf0]  ;;  %v3077_v2 = vld [vmem:[%s4000_s26 + $0x258] sm:$0xf] }
  0x79   : > { %v3078_v14 = vor.u32 %v3323_v7, %v3077_v2 }
  0x7a   : > { %1245 = vmatpush.bf16.msra.mxu1 %v2846_v45 }
  0x7b   : > { %1300 = vmatpush.bf16.msra.mxu0 %v2946_v19  ;;  %v3146_v19 = vor.u32 %v3335_v16, %v3143_v18  ;;  %v3279_v18 = vld [vmem:[%s4000_s26 + $0x11c] sm:$0xf] }
  0x7e   : > { %1246 = vmatpush.bf16.msra.mxu1 %v2814_v51 }
  0x7f   : > { %1301 = vmatpush.bf16.msra.mxu0 %v2914_v25  ;;  %v2917_v25 = vld [vmem:[%s4000_s26 + $0x118] sm:$0xf] }
  0x80   : > { %v2918_v32 = vor.u32 %v3283_v27, %v2917_v25 }
  0x82   : > { %1031 = vmatmul.bf16.gmra.mxu0 %v4232_v6  ;;  %1247 = vmatpush.bf16.msra.mxu1 %v2782_v56  ;;  %v2853_v56 = vld [vmem:[%s4000_s26 + $0x98] sm:$0xf] }
  0x83   : > { %1302 = vmatpush.bf16.msra.mxu0 %v2882_v38  ;;  %v3275_v38 = vld [vmem:[%s4000_s26 + $0xf4] sm:$0xf0]  ;;  %v2854_v61 = vor.u32 %v3267_v57, %v2853_v56 }
  0x84   : > { %1089 = vmatmul.bf16.gmra.mxu2 %v4232_v6  ;;  %1132 = vmatmul.bf16.vlgmr.msrb.gmra.mxu1 %v4115_v44  ;;  %v2886_v39 = vor.u32 %v3275_v38, %v2885_v37 }
  0x85   : > { %3155 = vmatmul.msk.bf16.vlgmr.msrb.gmra.mxu3 %vm995_vm0, %v4058_v54 }
  0x86   : > { %1356 = vmatpush.bf16.msrb.mxu1 %v3014_v8  ;;  %1389 = vmatpush.bf16.msrb.mxu3 %v3142_v17  ;;  %v2821_v8 = vld [vmem:[%s4000_s26 + $0x58] sm:$0xf] }
  0x87   : > { %1303 = vmatpush.bf16.msra.mxu0 %v2850_v50  ;;  %v2822_v20 = vor.u32 %v3259_v15, %v2821_v8 }
  0x8a   : > { %1357 = vmatpush.bf16.msrb.mxu1 %v2982_v12  ;;  %1390 = vmatpush.bf16.msrb.mxu3 %v3110_v60  ;;  %v3111_v12 = vld [vmem:[%s4000_s26 + $0x2b8] sm:$0xf0] }
  0x8b   : > { %1304 = vmatpush.bf16.msra.mxu0 %v2818_v0  ;;  %v3287_v0 = vld [vmem:[%s4000_s26 + $0x15c] sm:$0xf] }
  0x8c   : > { %v2954_v5 = vor.u32 %v3287_v0, %v2951_v1  ;;  %v3263_v0 = vld [vmem:[%s4000_s26 + $0x9c] sm:$0xf] }
  0x8d   : > { %v2855_v1 = vld [vmem:[%s4000_s26 + $0xb8] sm:$0xf0] }
  0x8e   : > { %1358 = vmatpush.bf16.msrb.mxu1 %v2950_v23  ;;  %1391 = vmatpush.bf16.msrb.mxu3 %v3078_v14  ;;  %v2858_v7 = vor.u32 %v3263_v0, %v2855_v1 }
  0x8f   : > { %1305 = vmatpush.bf16.msra.mxu0 %v2786_v3 }
  0x92   : > { %1190 = vmatmul.bf16.vlgmr.msrb.gmra.mxu0 %v4115_v44  ;;  %1359 = vmatpush.bf16.msrb.mxu1 %v2918_v32 }
  0x93   : > { %1414 = vmatpush.bf16.msrb.mxu0 %v3018_v35  ;;  %v2887_v35 = vld [vmem:[%s4000_s26 + $0xf8] sm:$0xf0] }
  0x94   : > { %1137 = vmatmul.bf16.gmra.mxu1 %v4164_v24  ;;  %3159 = vmatmul.msk.bf16.vlgmr.msrb.gmra.mxu2 %vm995_vm0, %v4058_v54 }
  0x95   : > { %3156 = vmatmul.msk.bf16.gmra.mxu3 %vm995_vm0, %v4119_v48  ;;  %1447 = vmatpush.bf16.msrb.mxu2 %v3146_v19  ;;  %v2919_v19 = vld [vmem:[%s4000_s26 + $0x138] sm:$0xf0] }
  0x96   : > { %1360 = vmatpush.bf16.msrb.mxu1 %v2886_v39  ;;  %v2922_v27 = vor.u32 %v3279_v18, %v2919_v19 }
  0x97   : > { %1415 = vmatpush.bf16.msrb.mxu0 %v2986_v53 }
  0x9a   : > { %1361 = vmatpush.bf16.msrb.mxu1 %v2854_v61 }
  0x9b   : > { %1416 = vmatpush.bf16.msrb.mxu0 %v2954_v5  ;;  %v3079_v5 = vld [vmem:[%s4000_s26 + $0x278] sm:$0xf0] }
  0x9e   : > { %1362 = vmatpush.bf16.msrb.mxu1 %v2822_v20 }
  0x9f   : > { %1417 = vmatpush.bf16.msrb.mxu0 %v2922_v27 }
  0xa2   : > { %1195 = vmatmul.bf16.gmra.mxu0 %v4164_v24 }
  0xa4   : > { %1142 = vmatmul.bf16.gmra.mxu1 %v4195_v42  ;;  %3160 = vmatmul.msk.bf16.gmra.mxu2 %vm995_vm0, %v4119_v48 }
  0xa5   : > { %3157 = vmatmul.msk.bf16.gmra.mxu3 %vm995_vm0, %v4166_v26 }
  0xad   : > { %v4401_v14 = vpop.permute.xlu2 %461 }
  0xb2   : > { %1200 = vmatmul.bf16.gmra.mxu0 %v4195_v42 }
  0xb4   : > { %1147 = vmatmul.bf16.gmra.mxu1 %v4232_v6  ;;  %3161 = vmatmul.msk.bf16.gmra.mxu2 %vm995_vm0, %v4166_v26 }
  0xb5   : > { %3158 = vmatmul.msk.bf16.gmra.mxu3 %vm995_vm0, %v4197_v43 }
  0xb8   : > { %v4309_v22 = vpop.permute.xlu0 %441 }
  0xc0   : > { %v4328_v41 = vpop.permute.xlu0 %446 }
  0xc1   : > { %v1046_v4 = vpop.f32.mrf.mxu1 }
  0xc2   : > { %1205 = vmatmul.bf16.gmra.mxu0 %v4232_v6 }
  0xc4   : > { %3162 = vmatmul.msk.bf16.gmra.mxu2 %vm995_vm0, %v4197_v43  ;;  %1248 = vmatmul.bf16.vlgmr.msra.gmra.mxu1 %v4115_v44 }
  0xc5   : > { %3163 = vmatmul.msk.bf16.vlgmr.msra.gmra.mxu3 %vm995_vm0, %v4058_v54 }
  0xc7   : > { %v1104_v11 = vpop.f32.mrf.mxu3 }
  0xc9   : > { %v1048_v13 = vpop.f32.mrf.mxu1 }
  0xcf   : > { %v4313_v28 = vpop.f32.mrf.mxu3  ;;  %v1017_v29 = vpop.f32.mrf.mxu0 }
  0xd0   : > { %v1018_v33 = vadd.f32 %v1017_v29, %v4309_v22 }
  0xd1   : > { %v4318_v34 = vpop.f32.mrf.mxu1 }
  0xd2   : > { %v1047_v36 = vadd.f32 %v1046_v4, %v1018_v33  ;;  %1306 = vmatmul.bf16.vlgmr.msra.gmra.mxu0 %v4115_v44  ;;  %v4345_v4 = vpop.permute.xlu1 %451  ;;  %v3271_v33 = vld [vmem:[%s4000_s26 + $0xdc] sm:$0xf] }
  0xd4   : > { %1253 = vmatmul.bf16.gmra.mxu1 %v4164_v24  ;;  %3167 = vmatmul.msk.bf16.vlgmr.msra.gmra.mxu2 %vm995_vm0, %v4058_v54  ;;  %v3179_v40 = vmul.f32 -1.442695, %v1047_v36 }
  0xd5   : > { %3164 = vmatmul.msk.bf16.gmra.mxu3 %vm995_vm0, %v4119_v48 }
  0xd6   : > { %3429 = vpow2.f32 %v3179_v40 }
  0xd7   : > { %v1075_v45 = vpop.f32.mrf.mxu2  ;;  %v1019_v52 = vpop.f32.mrf.mxu0 }
  0xd8   : > { %v1076_v50 = vadd.f32 %v1075_v45, %v4309_v22  ;;  %v4334_v51 = vpop.f32.mrf.mxu3  ;;  %v1020_v58 = vadd.f32 %v1019_v52, %v4328_v41  ;;  %v3315_v52 = vld [vmem:[%s4000_s26 + $0x234] sm:$0xf0] }
  0xd9   : > { %v4340_v59 = vpop.f32.mrf.mxu1 }
  0xda   : > { %v1105_v62 = vadd.f32 %v1104_v11, %v1076_v50  ;;  %v1049_v63 = vadd.f32 %v1048_v13, %v1020_v58  ;;  %v3327_v11 = vld [vmem:[%s4000_s26 + $0x29c] sm:$0xf]  ;;  %v4376_v45 = vpop.permute.xlu1 %456  ;;  %v3046_v58 = vor.u32 %v3315_v52, %v3045_v47 }
  0xdb   : > { %v3114_v13 = vor.u32 %v3327_v11, %v3111_v12 }
  0xdc   : > { %v3180_v3 = vmul.f32 -1.442695, %v1105_v62  ;;  %v3430_v9 = vpop.eup %3429  ;;  %v3187_v10 = vmul.f32 -1.442695, %v1049_v63  ;;  %1392 = vmatpush.bf16.msrb.mxu3 %v3046_v58  ;;  %v4442_v58 = vpop.permute.xlu2 %466 }
  0xdd   : > { %v4352_v16 = vadd.f32 1.0, %v3430_v9  ;;  %1448 = vmatpush.bf16.msrb.mxu2 %v3114_v13 }
  0xde   : > { %3431 = vpow2.f32 %v3180_v3  ;;  %v3319_v3 = vld [vmem:[%s4000_s26 + $0x25c] sm:$0xf] }
  0xdf   : > { %3433 = vpow2.f32 %v3187_v10  ;;  %v1077_v17 = vpop.f32.mrf.mxu2  ;;  %v1022_v25 = vpop.f32.mrf.mxu0  ;;  %v3082_v10 = vor.u32 %v3319_v3, %v3079_v5  ;;  %vm1541_vm1 = vweird.f32 %v4352_v16 }
  0xe0   : > { %v1078_v21 = vadd.f32 %v1077_v17, %v4328_v41  ;;  %v4357_v23 = vpop.f32.mrf.mxu3  ;;  %v1023_v29 = vadd.f32 %v1022_v25, %v4345_v4  ;;  %3435 = vrcp.f32 %v4352_v16 }
  0xe1   : > { %v4360_v30 = vpop.f32.mrf.mxu1  ;;  %1449 = vmatpush.bf16.msrb.mxu2 %v3082_v10 }
  0xe2   : > { %v1107_v31 = vadd.f32 %v4313_v28, %v1078_v21  ;;  %v1052_v32 = vadd.f32 %v4318_v34, %v1023_v29  ;;  %1311 = vmatmul.bf16.gmra.mxu0 %v4164_v24  ;;  %v2890_v28 = vor.u32 %v3271_v33, %v2887_v35  ;;  %v2789_v34 = vld [vmem:[%s4000_s26 + $0x18] sm:$0xf]  ;;  %v3255_v29 = vld [vmem:[%s4000_s26 + $0x5c] sm:$0xf] }
  0xe3   : > { %v2790_v50 = vor.u32 %v3251_v46, %v2789_v34 }
  0xe4   : > { %v3432_v36 = vpop.eup %3431  ;;  %v3188_v37 = vmul.f32 -1.442695, %v1107_v31  ;;  %1258 = vmatmul.bf16.gmra.mxu1 %v4195_v42  ;;  %3168 = vmatmul.msk.bf16.gmra.mxu2 %vm995_vm0, %v4119_v48  ;;  %v3195_v40 = vmul.f32 -1.442695, %v1052_v32  ;;  %v2823_v31 = vld [vmem:[%s4000_s26 + $0x78] sm:$0xf0] }
  0xe5   : > { %v3434_v38 = vpop.eup %3433  ;;  %v4371_v39 = vadd.f32 1.0, %v3432_v36  ;;  %3165 = vmatmul.msk.bf16.gmra.mxu3 %vm995_vm0, %v4166_v26  ;;  %1418 = vmatpush.bf16.msrb.mxu0 %v2890_v28  ;;  %v1547_v28 = vand.u32 2147483648, %v4352_v16 }
  0xe6   : > { %3437 = vpow2.f32 %v3188_v37  ;;  %v4382_v53 = vadd.f32 1.0, %v3434_v38  ;;  %v4387_v60 = vpop.eup %3435  ;;  %1363 = vmatpush.bf16.msrb.mxu1 %v2790_v50  ;;  %v1545_v37 = vand.u32 2147483647, %v4352_v16  ;;  %v2826_v38 = vor.u32 %v3255_v29, %v2823_v31 }
  0xe7   : > { %v1080_v49 = vpop.f32.mrf.mxu2  ;;  %3439 = vrcp.f32 %v4371_v39  ;;  %v1024_v57 = vpop.f32.mrf.mxu0  ;;  %v1537_v8 = vmul.f32 %v4387_v60, %v4352_v16  ;;  %v1562_v0 = vand.u32 2147483648, %v4371_v39  ;;  %vm1542_vm3 = vweird.f32 %v4387_v60 }
  0xe8   : > { %v1081_v55 = vadd.f32 %v1080_v49, %v4345_v4  ;;  %v4385_v56 = vpop.f32.mrf.mxu3  ;;  %3441 = vpow2.f32 %v3195_v40  ;;  %v1025_v61 = vadd.f32 %v1024_v57, %v4376_v45  ;;  %v3311_v49 = vld [vmem:[%s4000_s26 + $0x21c] sm:$0xf]  ;;  %vm4444_vm2 = vcmp.eq.f32.partialorder %v1545_v37, 8.507059e+37  ;;  %vm4480_vm6 = vmor %vm1541_vm1, %vm1542_vm3 }
  0xe9   : > { %v4390_v62 = vpop.f32.mrf.mxu1  ;;  %3443 = vrcp.f32 %v4382_v53  ;;  %1419 = vmatpush.bf16.msrb.mxu0 %v2858_v7  ;;  %v1538_v15 = vsub.f32 1.0, %v1537_v8  ;;  %v1667_v1 = vand.u32 2147483648, %v4382_v53  ;;  %vm1556_vm4 = vweird.f32 %v4371_v39 }
  0xea   : > { %v1110_v63 = vadd.f32 %v4334_v51, %v1081_v55  ;;  %v1054_v2 = vadd.f32 %v4340_v59, %v1025_v61  ;;  %v3047_v55 = vld [vmem:[%s4000_s26 + $0x238] sm:$0xf0]  ;;  %v4470_v29 = vor.u32 1.1754944e-38, %v1562_v0  ;;  %vm1661_vm5 = vweird.f32 %v4382_v53 }
  0xeb   : > { %v1665_v31 = vand.u32 2147483647, %v4382_v53  ;;  %v4484_v37 = vor.u32 1.1754944e-38, %v1667_v1 }
  0xec   : > { %v3196_v9 = vmul.f32 -1.442695, %v1110_v63  ;;  %v3438_v11 = vpop.eup %3437  ;;  %v3203_v12 = vmul.f32 -1.442695, %v1054_v2  ;;  %v1548_v63 = vor.u32 1.1754944e-38, %v1547_v28 }
  0xed   : > { %v4403_v51 = vpop.eup %3439  ;;  %v4410_v21 = vadd.f32 1.0, %v3438_v11  ;;  %1420 = vmatpush.bf16.msrb.mxu0 %v2826_v38  ;;  %vm4508_vm10 = vcmp.eq.f32.partialorder %v1665_v31, 8.507059e+37 }
  0xee   : > { %3445 = vpow2.f32 %v3196_v9  ;;  %v3442_v59 = vpop.eup %3441  ;;  %v1552_v33 = vmul.f32 %v4403_v51, %v4371_v39  ;;  %v3050_v9 = vor.u32 %v3311_v49, %v3047_v55  ;;  %vm1557_vm7 = vweird.f32 %v4403_v51  ;;  %v4506_v55 = vpop.permute.xlu0 %471 }
  0xef   : > { %v1082_v13 = vpop.f32.mrf.mxu2  ;;  %v4405_v17 = vadd.f32 1.0, %v3442_v59  ;;  %3447 = vpow2.f32 %v3203_v12  ;;  %v1027_v20 = vpop.f32.mrf.mxu0  ;;  %v1560_v59 = vand.u32 2147483647, %v4371_v39  ;;  %vm4532_vm12 = vmor %vm1556_vm4, %vm1557_vm7 }
  0xf0   : > { %v1083_v18 = vadd.f32 %v1082_v13, %v4376_v45  ;;  %v4408_v19 = vpop.f32.mrf.mxu3  ;;  %v1028_v25 = vadd.f32 %v1027_v20, %v4401_v14  ;;  %v4417_v32 = vpop.eup %3443  ;;  %v1553_v52 = vsub.f32 1.0, %v1552_v33  ;;  %1450 = vmatpush.bf16.msrb.mxu2 %v3050_v9 }
  0xf1   : > { %v4413_v27 = vpop.f32.mrf.mxu1  ;;  %3449 = vrcp.f32 %v4405_v17  ;;  %v1851_v38 = vand.u32 2147483648, %v4405_v17  ;;  %vm4493_vm8 = vcmp.eq.f32.partialorder %v1560_v59, 8.507059e+37  ;;  %vm1662_vm9 = vweird.f32 %v4417_v32 }
  0xf2   : > { %v1112_v35 = vadd.f32 %v4357_v23, %v1083_v18  ;;  %v1057_v36 = vadd.f32 %v4360_v30, %v1028_v25  ;;  %1316 = vmatmul.bf16.gmra.mxu0 %v4195_v42  ;;  %v1539_v23 = vmul.f32 %v4387_v60, %v1538_v15  ;;  %v1657_v30 = vmul.f32 %v4417_v32, %v4382_v53  ;;  %vm4561_vm14 = vmor %vm1661_vm5, %vm1662_vm9 }
  0xf3   : > { %3451 = vrcp.f32 %v4410_v21  ;;  %v1554_v18 = vmul.f32 %v4403_v51, %v1553_v52  ;;  %vm1845_vm11 = vweird.f32 %v4405_v17 }
  0xf4   : > { %v3446_v40 = vpop.eup %3445  ;;  %v3204_v34 = vmul.f32 -1.442695, %v1112_v35  ;;  %1263 = vmatmul.bf16.gmra.mxu1 %v4232_v6  ;;  %3169 = vmatmul.msk.bf16.gmra.mxu2 %vm995_vm0, %v4166_v26  ;;  %v3211_v47 = vmul.f32 -1.442695, %v1057_v36  ;;  %v1658_v10 = vsub.f32 1.0, %v1657_v30  ;;  %v1540_v12 = vadd.f32 %v4387_v60, %v1539_v23 }
  0xf5   : > { %v4434_v46 = vadd.f32 1.0, %v3446_v40  ;;  %3166 = vmatmul.msk.bf16.gmra.mxu3 %vm995_vm0, %v4197_v43  ;;  %v3448_v50 = vpop.eup %3447  ;;  %v1555_v30 = vadd.f32 %v4403_v51, %v1554_v18 }
  0xf6   : > { %3453 = vpow2.f32 %v3204_v34  ;;  %v4452_v3 = vadd.f32 1.0, %v3448_v50  ;;  %v1544_v40 = vsel %vm4480_vm6, %v4387_v60, %v1540_v12  ;;  %v1659_v16 = vmul.f32 %v4417_v32, %v1658_v10 }
  0xf7   : > { %3455 = vrcp.f32 %v4434_v46  ;;  %v1085_v57 = vpop.f32.mrf.mxu2  ;;  %v4450_v2 = vpop.eup %3449  ;;  %v1866_v1 = vand.u32 2147483648, %v4434_v46  ;;  %v4521_v9 = vsel %vm4444_vm2, %v1548_v63, %v1544_v40  ;;  %v4524_v10 = vor.u32 1.1754944e-38, %v1851_v38 }
  0xf8   : > { %3457 = vpow2.f32 %v3211_v47  ;;  %v1086_v5 = vadd.f32 %v1085_v57, %v4401_v14  ;;  %v4455_v7 = vpop.f32.mrf.mxu3  ;;  %v1029_v8 = vpop.f32.mrf.mxu0  ;;  %v1841_v25 = vmul.f32 %v4450_v2, %v4405_v17  ;;  %v1849_v12 = vand.u32 2147483647, %v4405_v17 }
  0xf9   : > { %v4457_v11 = vpop.f32.mrf.mxu1  ;;  %v1030_v15 = vadd.f32 %v1029_v8, %v4442_v58  ;;  %v4466_v20 = vpop.eup %3451  ;;  %3459 = vrcp.f32 %v4452_v3  ;;  %v1660_v61 = vadd.f32 %v4417_v32, %v1659_v16  ;;  %vm1846_vm13 = vweird.f32 %v4450_v2 }
  0xfa   : > { %v1115_v13 = vadd.f32 %v4385_v56, %v1086_v5  ;;  %v1842_v47 = vsub.f32 1.0, %v1841_v25  ;;  %v4514_v0 = vmul.f32 %v4466_v20, %v4410_v21  ;;  %v1559_v25 = vsel %vm4532_vm12, %v4403_v51, %v1555_v30  ;;  %vm4620_vm4 = vmor %vm1845_vm11, %vm1846_vm13 }
  0xfb   : > { %v1059_v35 = vadd.f32 %v4390_v62, %v1030_v15  ;;  %v1971_v15 = vand.u32 2147483648, %v4452_v3  ;;  %v4551_v38 = vor.u32 1.1754944e-38, %v1866_v1  ;;  %vm1860_vm15 = vweird.f32 %v4434_v46 }
  0xfc   : > { %v3454_v33 = vpop.eup %3453  ;;  %v3212_v56 = vmul.f32 -1.442695, %v1115_v13  ;;  %v1843_v39 = vmul.f32 %v4450_v2, %v1842_v47  ;;  %v1673_v36 = vsub.f32 1.0, %v4514_v0  ;;  %vm4570_vm1 = vcmp.eq.f32.partialorder %v1849_v12, 8.507059e+37 }
  0xfd   : > { %v4486_v28 = vpop.eup %3455  ;;  %v3219_v23 = vmul.f32 -1.442695, %v1059_v35  ;;  %v4502_v60 = vadd.f32 1.0, %v3454_v33  ;;  %v1864_v53 = vand.u32 2147483647, %v4434_v46  ;;  %v4580_v47 = vor.u32 1.1754944e-38, %v1971_v15 }
  0xfe   : > { %v3458_v34 = vpop.eup %3457  ;;  %3461 = vpow2.f32 %v3212_v56  ;;  %v1856_v49 = vmul.f32 %v4486_v28, %v4434_v46  ;;  %v4586_v1 = vsel %vm4493_vm8, %v4470_v29, %v1559_v25  ;;  %v4599_v25 = vpop.permute.xlu1 %476  ;;  %vm1861_vm2 = vweird.f32 %v4486_v28 }
  0xff   : > { %v4504_v50 = vadd.f32 1.0, %v3458_v34  ;;  %v1087_v52 = vpop.f32.mrf.mxu2  ;;  %3463 = vpow2.f32 %v3219_v23  ;;  %v4537_v63 = vpop.eup %3459  ;;  %v1664_v23 = vsel %vm4561_vm14, %v4417_v32, %v1660_v61  ;;  %v1844_v32 = vadd.f32 %v4450_v2, %v1843_v39  ;;  %vm4649_vm8 = vmor %vm1860_vm15, %vm1861_vm2 }
 0x100   : > { %v4517_v5 = vpop.f32.mrf.mxu3  ;;  %v1032_v8 = vpop.f32.mrf.mxu0  ;;  %v1088_v18 = vadd.f32 %v1087_v52, %v4442_v58  ;;  %v1857_v33 = vsub.f32 1.0, %v1856_v49  ;;  %v1961_v16 = vmul.f32 %v4537_v63, %v4452_v3  ;;  %v1986_v49 = vand.u32 2147483648, %v4502_v60 }
 0x101   : > { %3465 = vrcp.f32 %v4504_v50  ;;  %v1133_v59 = vpop.f32.mrf.mxu1  ;;  %v1033_v56 = vadd.f32 %v1032_v8, %v4506_v55  ;;  %v2155_v39 = vand.u32 2147483648, %v4504_v50  ;;  %vm4610_vm3 = vcmp.eq.f32.partialorder %v1864_v53, 8.507059e+37 }
 0x102   : > { %3467 = vrcp.f32 %v4502_v60  ;;  %1321 = vmatmul.bf16.gmra.mxu0 %v4232_v6  ;;  %v1117_v51 = vadd.f32 %v4408_v19, %v1088_v18  ;;  %v1858_v12 = vmul.f32 %v4486_v28, %v1857_v33  ;;  %v1134_v62 = vadd.f32 %v1133_v59, %v4309_v22 }
 0x103   : > { %v1062_v13 = vadd.f32 %v4413_v27, %v1033_v56  ;;  %v4604_v33 = vsel %vm4508_vm10, %v4484_v37, %v1664_v23  ;;  %v1962_v27 = vsub.f32 1.0, %v1961_v16  ;;  %vm1966_vm5 = vweird.f32 %v4537_v63 }
 0x104   : > { %v3462_v35 = vpop.eup %3461  ;;  %3170 = vmatmul.msk.bf16.gmra.mxu2 %vm995_vm0, %v4197_v43  ;;  %1364 = vmatmul.bf16.vlgmr.msrb.gmra.mxu1 %v4115_v44  ;;  %v3220_v52 = vmul.f32 -1.442695, %v1117_v51  ;;  %v4625_v57 = vor.u32 1.1754944e-38, %v1986_v49  ;;  %vm1965_vm6 = vweird.f32 %v4452_v3  ;;  %v1848_v16 = vsel %vm4620_vm4, %v4450_v2, %v1844_v32 }
 0x105   : > { %v4568_v34 = vadd.f32 1.0, %v3462_v35  ;;  %3171 = vmatmul.msk.bf16.vlgmr.msrb.gmra.mxu3 %vm995_vm0, %v4058_v54  ;;  %v3464_v30 = vpop.eup %3463  ;;  %v1859_v53 = vadd.f32 %v4486_v28, %v1858_v12  ;;  %v1963_v31 = vmul.f32 %v4537_v63, %v1962_v27  ;;  %vm2149_vm7 = vweird.f32 %v4504_v50  ;;  %vm4701_vm15 = vmor %vm1965_vm6, %vm1966_vm5 }
 0x106   : > { %v4596_v18 = vadd.f32 1.0, %v3464_v30  ;;  %v2153_v30 = vand.u32 2147483647, %v4504_v50  ;;  %v4642_v2 = vor.u32 1.1754944e-38, %v2155_v39  ;;  %vm1980_vm12 = vweird.f32 %v4502_v60 }
 0x107   : > { %v4588_v8 = vpop.eup %3465  ;;  %3469 = vrcp.f32 %v4568_v34  ;;  %v1090_v61 = vpop.f32.mrf.mxu2  ;;  %v2168_v27 = vand.u32 2147483647, %v4568_v34  ;;  %v1863_v46 = vsel %vm4649_vm8, %v4486_v28, %v1859_v53  ;;  %vm1677_vm13 = vweird.f32 %v4466_v20 }
 0x108   : > { %v2145_v15 = vmul.f32 %v4588_v8, %v4504_v50  ;;  %v1162_v29 = vpop.f32.mrf.mxu3  ;;  %v4606_v35 = vpop.eup %3467  ;;  %3471 = vpow2.f32 %v3220_v52  ;;  %v1091_v17 = vadd.f32 %v1090_v61, %v4506_v55  ;;  %vm4667_vm10 = vcmp.eq.f32.partialorder %v2153_v30, 8.507059e+37 }
 0x109   : > { %v1034_v59 = vpop.f32.mrf.mxu0  ;;  %v4614_v51 = vpop.f32.mrf.mxu1  ;;  %3473 = vrcp.f32 %v4596_v18  ;;  %v1976_v23 = vmul.f32 %v4606_v35, %v4502_v60  ;;  %v1163_v49 = vadd.f32 %v1162_v29, %v1134_v62  ;;  %v1853_v62 = vsel %vm4570_vm1, %v4524_v10, %v1848_v16 }
 0x10a   : > { %v2146_v40 = vsub.f32 1.0, %v2145_v15  ;;  %3475 = vtanh.f32 %v1062_v13  ;;  %v1035_v52 = vadd.f32 %v1034_v59, %v4599_v25  ;;  %v1120_v13 = vadd.f32 %v4455_v7, %v1091_v17  ;;  %v2400_v17 = vld [vmem:[%s4010_s7] sm:$0xff] }
 0x10b   : > { %v1969_v7 = vand.u32 2147483647, %v4452_v3  ;;  %v3181_v39 = vmul.f32 -1.442695, %v1163_v49  ;;  %vm1981_vm9 = vweird.f32 %v4606_v35  ;;  %vm2150_vm11 = vweird.f32 %v4588_v8 }
 0x10c   : > { %v2147_v32 = vmul.f32 %v4588_v8, %v2146_v40  ;;  %3477 = vtanh.f32 %v1120_v13  ;;  %v1977_v40 = vsub.f32 1.0, %v1976_v23  ;;  %v1064_v12 = vadd.f32 %v4457_v11, %v1035_v52  ;;  %v2401_v52 = vld [vmem:[%s4010_s7 + $0x8] sm:$0xff]  ;;  %vm4719_vm4 = vmor %vm2149_vm7, %vm2150_vm11 }
 0x10d   : > { %v4638_v15 = vpop.eup %3469  ;;  %3479 = vpow2.f32 %v3181_v39  ;;  %v1964_v23 = vadd.f32 %v4537_v63, %v1963_v31  ;;  %v1868_v11 = vsel %vm4610_vm3, %v4551_v38, %v1863_v46  ;;  %vm2164_vm14 = vweird.f32 %v4568_v34  ;;  %vm4778_vm7 = vmor %vm1980_vm12, %vm1981_vm9 }
 0x10e   : > { %v2160_v61 = vmul.f32 %v4638_v15, %v4568_v34  ;;  %v3472_v29 = vpop.eup %3471  ;;  %v2148_v30 = vadd.f32 %v4588_v8, %v2147_v32  ;;  %v2170_v31 = vand.u32 2147483648, %v4568_v34  ;;  %v1978_v56 = vmul.f32 %v4606_v35, %v1977_v40 }
 0x10f   : > { %v1092_v59 = vpop.f32.mrf.mxu2  ;;  %v4664_v37 = vpop.eup %3473  ;;  %v4671_v16 = vadd.f32 1.0, %v3472_v29  ;;  %vm2165_vm1 = vweird.f32 %v4638_v15  ;;  %vm4707_vm2 = vcmp.eq.f32.partialorder %v2168_v27, 8.507059e+37  ;;  %vm1676_vm3 = vweird.f32 %v4410_v21 }
 0x110   : > { %v2161_v19 = vsub.f32 1.0, %v2160_v61  ;;  %v3476_v28 = vpop.eup %3475  ;;  %v2265_v53 = vmul.f32 %v4664_v37, %v4596_v18  ;;  %v4688_v13 = vpop.f32.mrf.mxu3  ;;  %v2416_v61 = vmul.f32 %v2400_v17, %v1853_v62  ;;  %v2417_v40 = vmul.f32 %v2401_v52, %v1868_v11  ;;  %vm4755_vm6 = vmor %vm2164_vm14, %vm2165_vm1 }
 0x111   : > { %3481 = vrcp.f32 %v4671_v16  ;;  %v2432_v32 = vmul.f32 %v3476_v28, %v4521_v9  ;;  %v4693_v29 = vpop.f32.mrf.mxu1  ;;  %v4695_v39 = vpop.f32.mrf.mxu0  ;;  %v2275_v11 = vand.u32 2147483648, %v4596_v18  ;;  %vm1970_vm5 = vcmp.eq.f32.partialorder %v1969_v7, 8.507059e+37  ;;  %vm4796_vm8 = vmor %vm1676_vm3, %vm1677_vm13 }
 0x112   : > { %v2162_v49 = vmul.f32 %v4638_v15, %v2161_v19  ;;  %3483 = vtanh.f32 %v1064_v12  ;;  %v3478_v3 = vpop.eup %3477  ;;  %v2266_v27 = vsub.f32 1.0, %v2265_v53  ;;  %v1968_v19 = vsel %vm4701_vm15, %v4537_v63, %v1964_v23  ;;  %v2408_v23 = vld [vmem:[%s4010_s7 + $0x40] sm:$0xff] }
 0x113   : > { %v2448_v46 = vadd.f32 %v2432_v32, %v2416_v61  ;;  %v2433_v17 = vmul.f32 %v3478_v3, %v4586_v1  ;;  %v1093_v12 = vadd.f32 %v1092_v59, %v4599_v25  ;;  %v3480_v28 = vpop.eup %3479  ;;  %v2171_v53 = vor.u32 1.1754944e-38, %v2170_v31  ;;  %v3247_v31 = vld [vmem:[%s4000_s26 + $0x1c] sm:$0xf] }
 0x114   : > { %1369 = vmatmul.bf16.gmra.mxu1 %v4164_v24  ;;  %3175 = vmatmul.msk.bf16.vlgmr.msrb.gmra.mxu2 %vm995_vm0, %v4058_v54  ;;  %v2152_v54 = vsel %vm4719_vm4, %v4588_v8, %v2148_v30  ;;  %v2163_v50 = vadd.f32 %v4638_v15, %v2162_v49  ;;  %v1674_v63 = vmul.f32 %v4466_v20, %v1673_v36  ;;  %v2791_v61 = vld [vmem:[%s4000_s26 + $0x38] sm:$0xf0]  ;;  %v4782_v38 = vadd.f32 1.0, %v3480_v28  ;;  %s2729_s26 = sshll.u32 %s3996_s17, 6 }
 0x115   : > { %3172 = vmatmul.msk.bf16.gmra.mxu3 %vm995_vm0, %v4119_v48  ;;  %2464 = vst [vmem:[%s4737_s27] sm:$0xff] %v2448_v46  ;;  %3485 = vtanh.f32 %v2448_v46  ;;  %v2449_v1 = vadd.f32 %v2433_v17, %v2417_v40  ;;  %v1973_v59 = vsel %vm1970_vm5, %v4580_v47, %v1968_v19  ;;  %v1122_v30 = vadd.f32 %v4517_v5, %v1093_v12  ;;  %s4837_s2 = scalar_lea.vmem [#allocation7], %s2729_s26 }
 0x116   : > { %v2157_v7 = vsel %vm4667_vm10, %v4642_v2, %v2152_v54  ;;  %v4760_v36 = vmul.f32 %v4664_v37, %v2266_v27  ;;  %v1136_v5 = vadd.f32 %v4614_v51, %v4328_v41  ;;  %v2167_v2 = vsel %vm4755_vm6, %v4638_v15, %v2163_v50 }
 0x117   : > { %v4743_v8 = vpop.eup %3481  ;;  %v1220_v49 = vpop.f32.mrf.mxu2  ;;  %2465 = vst [vmem:[%s4737_s27 + $0x8] sm:$0xff] %v2449_v1  ;;  %3487 = vtanh.f32 %v2449_v1  ;;  %v1675_v34 = vadd.f32 %v4466_v20, %v1674_v63  ;;  %v1979_v10 = vadd.f32 %v4606_v35, %v1978_v56  ;;  %v2424_v15 = vmul.f32 %v2408_v23, %v1973_v59 }
 0x118   : > { %v2280_v47 = vmul.f32 %v4743_v8, %v4671_v16  ;;  %v3484_v52 = vpop.eup %3483  ;;  %v1167_v32 = vpop.f32.mrf.mxu3  ;;  %v1682_v9 = vand.u32 2147483648, %v4410_v21  ;;  %v1984_v19 = vand.u32 2147483647, %v4502_v60  ;;  %3489 = vtanh.f32 %v1122_v30 }
 0x119   : > { %v2440_v3 = vmul.f32 %v3484_v52, %v4604_v33  ;;  %v1140_v27 = vpop.f32.mrf.mxu1  ;;  %v1193_v56 = vpop.f32.mrf.mxu0  ;;  %v1983_v40 = vsel %vm4778_vm7, %v4606_v35, %v1979_v10  ;;  %v2172_v54 = vsel %vm4707_vm2, %v2171_v53, %v2167_v2  ;;  %v1165_v17 = vadd.f32 %v4688_v13, %v1136_v5 }
 0x11a   : > { %v2281_v46 = vsub.f32 1.0, %v2280_v47  ;;  %v2794_v35 = vor.u32 %v3247_v31, %v2791_v61  ;;  %v1679_v60 = vsel %vm4796_vm8, %v4466_v20, %v1675_v34  ;;  %v6019_v62 = vand.u32 2147483647, %v4410_v21  ;;  %v2409_v20 = vld [vmem:[%s4010_s7 + $0x48] sm:$0xff] }
 0x11b   : > { %v2456_v50 = vadd.f32 %v2440_v3, %v2424_v15  ;;  %v3486_v12 = vpop.eup %3485  ;;  %vm1985_vm10 = vcmp.eq.f32.partialorder %v1984_v19, 8.507059e+37  ;;  %v1139_v53 = vadd.f32 %v4693_v29, %v4345_v4  ;;  %vm2269_vm11 = vweird.f32 %v4596_v18 }
 0x11c   : > { %vm4806_vm9 = vcmp.eq.f32.partialorder %v6019_v62, 8.507059e+37  ;;  %3491 = vrcp.f32 %v4782_v38  ;;  %v1683_v13 = vor.u32 1.1754944e-38, %v1682_v9  ;;  %v1988_v63 = vsel %vm1985_vm10, %v4625_v57, %v1983_v40  ;;  %1421 = vmatpush.bf16.msrb.mxu0 %v2794_v35 }
 0x11d   : > { %2472 = vst [vmem:[%s4737_s27 + $0x40] sm:$0xff] %v2456_v50  ;;  %v3189_v1 = vmul.f32 -1.442695, %v1165_v17  ;;  %v3488_v21 = vpop.eup %3487  ;;  %v2282_v59 = vmul.f32 %v4743_v8, %v2281_v46  ;;  %v1192_v23 = vadd.f32 %v4695_v39, %v4309_v22  ;;  %v1168_v30 = vadd.f32 %v1167_v32, %v1139_v53 }
 0x11e   : > { %v1141_v29 = vadd.f32 %v1140_v27, %v4376_v45  ;;  %v2496_v47 = vmul.f32 %v3486_v12, %v2157_v7  ;;  %v2497_v5 = vmul.f32 %v3488_v21, %v2172_v54  ;;  %v1684_v52 = vsel %vm4806_vm9, %v1683_v13, %v1679_v60  ;;  %v3490_v2 = vpop.eup %3489 }
 0x11f   : > { %v1222_v0 = vpop.f32.mrf.mxu2  ;;  %v1194_v57 = vadd.f32 %v1193_v56, %v4328_v41  ;;  %v2425_v34 = vmul.f32 %v2409_v20, %v1988_v63  ;;  %3493 = vpow2.f32 %v3189_v1  ;;  %1422 = vmatmul.bf16.vlgmr.msrb.gmra.mxu0 %v4115_v44  ;;  %v3197_v10 = vmul.f32 -1.442695, %v1168_v30 }
 0x120   : > { %v1221_v31 = vadd.f32 %v1220_v49, %v1192_v23  ;;  %v1169_v39 = vpop.f32.mrf.mxu3  ;;  %v2512_v61 = vpack.c.bf16 %v2497_v5, %v2496_v47  ;;  %v2441_v32 = vmul.f32 %v3490_v2, %v1684_v52  ;;  %v2268_v9 = vadd.f32 %v4664_v37, %v4760_v36 }
 0x121   : > { %v1170_v51 = vadd.f32 %v1169_v39, %v1141_v29  ;;  %v1223_v15 = vadd.f32 %v1222_v0, %v1194_v57  ;;  %v1143_v7 = vpop.f32.mrf.mxu1  ;;  %v1196_v3 = vpop.f32.mrf.mxu0  ;;  %vm2270_vm12 = vweird.f32 %v4664_v37  ;;  %3495 = vpow2.f32 %v3197_v10 }
 0x122   : > { %v3182_v27 = vmul.f32 -1.442695, %v1221_v31  ;;  %v4832_v44 = vpop.eup %3491  ;;  %vm2285_vm13 = vweird.f32 %v4743_v8  ;;  %2520 = vst [vmem:[%s4837_s2] sm:$0xff] %v2512_v61  ;;  %3497 = vtanh.f32 %v2456_v50  ;;  %v2457_v49 = vadd.f32 %v2441_v32, %v2425_v34  ;;  %vm4852_vm14 = vmor %vm2269_vm11, %vm2270_vm12 }
 0x123   : > { %v3205_v36 = vmul.f32 -1.442695, %v1170_v51  ;;  %v2283_v56 = vadd.f32 %v4743_v8, %v2282_v59  ;;  %v3190_v46 = vmul.f32 -1.442695, %v1223_v15  ;;  %v2273_v40 = vand.u32 2147483647, %v4596_v18 }
 0x124   : > { %1374 = vmatmul.bf16.gmra.mxu1 %v4195_v42  ;;  %3176 = vmatmul.msk.bf16.gmra.mxu2 %vm995_vm0, %v4119_v48  ;;  %3499 = vpow2.f32 %v3182_v27  ;;  %v1197_v48 = vadd.f32 %v1196_v3, %v4345_v4  ;;  %v2290_v19 = vand.u32 2147483648, %v4671_v16  ;;  %2473 = vst [vmem:[%s4737_s27 + $0x48] sm:$0xff] %v2457_v49  ;;  %v1144_v54 = vadd.f32 %v1143_v7, %v4401_v14 }
 0x125   : > { %3173 = vmatmul.msk.bf16.gmra.mxu3 %vm995_vm0, %v4166_v26  ;;  %3501 = vtanh.f32 %v2457_v49  ;;  %v3494_v50 = vpop.eup %3493  ;;  %vm2284_vm15 = vweird.f32 %v4671_v16  ;;  %v2288_v17 = vand.u32 2147483647, %v4671_v16  ;;  %v2272_v35 = vsel %vm4852_vm14, %v4664_v37, %v2268_v9 }
 0x126   : > { %3503 = vpow2.f32 %v3205_v36  ;;  %vm4863_vm1 = vmor %vm2284_vm15, %vm2285_vm13  ;;  %v2276_v28 = vor.u32 1.1754944e-38, %v2275_v11  ;;  %vm2274_vm2 = vcmp.eq.f32.partialorder %v2273_v40, 8.507059e+37  ;;  %v2291_v37 = vor.u32 1.1754944e-38, %v2290_v19 }
 0x127   : > { %v1225_v60 = vpop.f32.mrf.mxu2  ;;  %v3496_v62 = vpop.eup %3495  ;;  %v2287_v16 = vsel %vm4863_vm1, %v4743_v8, %v2283_v56  ;;  %3505 = vpow2.f32 %v3190_v46  ;;  %vm2289_vm3 = vcmp.eq.f32.partialorder %v2288_v17, 8.507059e+37  ;;  %v1567_v8 = vmul.f32 %v4832_v44, %v4782_v38 }
 0x128   : > { %v1172_v53 = vpop.f32.mrf.mxu3  ;;  %v1226_v13 = vadd.f32 %v1225_v60, %v1197_v48  ;;  %v3498_v63 = vpop.eup %3497  ;;  %v4872_v20 = vadd.f32 1.0, %v3496_v62  ;;  %v2277_v30 = vsel %vm2274_vm2, %v2276_v28, %v2272_v35  ;;  %v2292_v29 = vsel %vm2289_vm3, %v2291_v37, %v2287_v16 }
 0x129   : > { %v1173_v1 = vadd.f32 %v1172_v53, %v1144_v54  ;;  %v1145_v21 = vpop.f32.mrf.mxu1  ;;  %v1198_v59 = vpop.f32.mrf.mxu0  ;;  %v4876_v0 = vadd.f32 1.0, %v3494_v50  ;;  %v2504_v5 = vmul.f32 %v3498_v63, %v2277_v30  ;;  %v1568_v61 = vsub.f32 1.0, %v1567_v8 }
 0x12a   : > { %v3500_v23 = vpop.eup %3499  ;;  %v3198_v18 = vmul.f32 -1.442695, %v1226_v13  ;;  %3507 = vrcp.f32 %v4872_v20  ;;  %v1146_v10 = vadd.f32 %v1145_v21, %v4442_v58  ;;  %v1199_v32 = vadd.f32 %v1198_v59, %v4376_v45 }
 0x12b   : > { %v3502_v11 = vpop.eup %3501  ;;  %v3213_v57 = vmul.f32 -1.442695, %v1173_v1  ;;  %v4879_v2 = vadd.f32 1.0, %v3500_v23  ;;  %vm1875_vm4 = vweird.f32 %v4872_v20  ;;  %v1881_v19 = vand.u32 2147483648, %v4872_v20 }
 0x12c   : > { %v3504_v47 = vpop.eup %3503  ;;  %v2505_v52 = vmul.f32 %v3502_v11, %v2292_v29  ;;  %3509 = vpow2.f32 %v3198_v18  ;;  %v1569_v50 = vmul.f32 %v4832_v44, %v1568_v61  ;;  %vm1571_vm5 = vweird.f32 %v4782_v38 }
 0x12d   : > { %v4881_v34 = vadd.f32 1.0, %v3504_v47  ;;  %v3506_v31 = vpop.eup %3505  ;;  %3511 = vpow2.f32 %v3213_v57  ;;  %vm1572_vm6 = vweird.f32 %v4832_v44  ;;  %v1577_v16 = vand.u32 2147483648, %v4782_v38 }
 0x12e   : > { %v2516_v39 = vpack.c.bf16 %v2505_v52, %v2504_v5  ;;  %3513 = vrcp.f32 %v4876_v0  ;;  %v4892_v7 = vadd.f32 1.0, %v3506_v31  ;;  %v1570_v37 = vadd.f32 %v4832_v44, %v1569_v50  ;;  %vm4932_vm8 = vmor %vm1571_vm5, %vm1572_vm6 }
 0x12f   : > { %3515 = vrcp.f32 %v4881_v34  ;;  %1427 = vmatmul.bf16.gmra.mxu0 %v4164_v24  ;;  %v1227_v9 = vpop.f32.mrf.mxu2  ;;  %v2001_v13 = vand.u32 2147483648, %v4881_v34  ;;  %v1575_v11 = vand.u32 2147483647, %v4782_v38  ;;  %v1882_v47 = vor.u32 1.1754944e-38, %v1881_v19 }
 0x130   : > { %2524 = vst [vmem:[%s4837_s2 + $0x20] sm:$0xff] %v2516_v39  ;;  %v1174_v51 = vpop.f32.mrf.mxu3  ;;  %v4889_v15 = vpop.eup %3507  ;;  %3517 = vrcp.f32 %v4879_v2  ;;  %v1228_v36 = vadd.f32 %v1227_v9, %v1199_v32  ;;  %v1879_v5 = vand.u32 2147483647, %v4872_v20  ;;  %vm1995_vm10 = vweird.f32 %v4881_v34 }
 0x131   : > { %v1175_v3 = vadd.f32 %v1174_v51, %v1146_v10  ;;  %v1871_v49 = vmul.f32 %v4889_v15, %v4872_v20  ;;  %v1148_v56 = vpop.f32.mrf.mxu1  ;;  %v1201_v46 = vpop.f32.mrf.mxu0  ;;  %3519 = vrcp.f32 %v4892_v7  ;;  %vm1876_vm7 = vweird.f32 %v4889_v15 }
 0x132   : > { %v3510_v27 = vpop.eup %3509  ;;  %v3206_v17 = vmul.f32 -1.442695, %v1228_v36  ;;  %v1149_v35 = vadd.f32 %v1148_v56, %v4506_v55  ;;  %v1202_v28 = vadd.f32 %v1201_v46, %v4401_v14  ;;  %vm4938_vm9 = vmor %vm1875_vm4, %vm1876_vm7  ;;  %v4954_v31 = vor.u32 1.1754944e-38, %v2001_v13 }
 0x133   : > { %v4900_v24 = vadd.f32 1.0, %v3510_v27  ;;  %v3512_v48 = vpop.eup %3511  ;;  %v1872_v40 = vsub.f32 1.0, %v1871_v49  ;;  %v3221_v54 = vmul.f32 -1.442695, %v1175_v3  ;;  %v1574_v38 = vsel %vm4932_vm8, %v4832_v44, %v1570_v37 }
 0x134   : > { %1379 = vmatmul.bf16.gmra.mxu1 %v4232_v6  ;;  %3177 = vmatmul.msk.bf16.gmra.mxu2 %vm995_vm0, %v4166_v26  ;;  %v4906_v33 = vpop.eup %3513  ;;  %v4909_v26 = vadd.f32 1.0, %v3512_v48  ;;  %v1578_v39 = vor.u32 1.1754944e-38, %v1577_v16  ;;  %vm4964_vm11 = vcmp.eq.f32.partialorder %v1879_v5, 8.507059e+37  ;;  %vm4972_vm12 = vcmp.eq.f32.partialorder %v1575_v11, 8.507059e+37 }
 0x135   : > { %3174 = vmatmul.msk.bf16.gmra.mxu3 %vm995_vm0, %v4197_v43  ;;  %v4912_v12 = vpop.eup %3515  ;;  %v1873_v60 = vmul.f32 %v4889_v15, %v1872_v40  ;;  %3521 = vrcp.f32 %v4900_v24  ;;  %v1687_v53 = vmul.f32 %v4906_v33, %v4876_v0  ;;  %v1896_v56 = vand.u32 2147483648, %v4900_v24 }
 0x136   : > { %v4918_v62 = vpop.eup %3517  ;;  %3523 = vrcp.f32 %v4909_v26  ;;  %v1991_v1 = vmul.f32 %v4912_v12, %v4881_v34  ;;  %vm1996_vm13 = vweird.f32 %v4912_v12  ;;  %vm2179_vm14 = vweird.f32 %v4909_v26 }
 0x137   : > { %3525 = vpow2.f32 %v3221_v54  ;;  %v1230_v23 = vpop.f32.mrf.mxu2  ;;  %v4944_v18 = vmul.f32 %v4918_v62, %v4879_v2  ;;  %v1874_v29 = vadd.f32 %v4889_v15, %v1873_v60  ;;  %v4948_v8 = vpop.eup %3519  ;;  %v1688_v10 = vsub.f32 1.0, %v1687_v53 }
 0x138   : > { %v1177_v63 = vpop.f32.mrf.mxu3  ;;  %3527 = vpow2.f32 %v3206_v17  ;;  %v1231_v52 = vadd.f32 %v1230_v23, %v1202_v28  ;;  %v1992_v32 = vsub.f32 1.0, %v1991_v1  ;;  %v4991_v53 = vmul.f32 %v4948_v8, %v4892_v7 }
 0x139   : > { %v1178_v21 = vadd.f32 %v1177_v63, %v1149_v35  ;;  %v1878_v20 = vsel %vm4938_vm9, %v4889_v15, %v1874_v29  ;;  %v1150_v9 = vpop.f32.mrf.mxu1  ;;  %v1203_v27 = vpop.f32.mrf.mxu0  ;;  %v1583_v36 = vsub.f32 1.0, %v4944_v18  ;;  %v2402_v35 = vld [vmem:[%s4010_s7 + $0x10] sm:$0xff]  ;;  %v1689_v13 = vmul.f32 %v4906_v33, %v1688_v10 }
 0x13a   : > { %v3214_v3 = vmul.f32 -1.442695, %v1231_v52  ;;  %v1151_v40 = vadd.f32 %v1150_v9, %v4599_v25  ;;  %v1883_v17 = vsel %vm4964_vm11, %v1882_v47, %v1878_v20  ;;  %v1993_v16 = vmul.f32 %v4912_v12, %v1992_v32 }
 0x13b   : > { %3529 = vtanh.f32 %v1178_v21  ;;  %v4951_v57 = vpop.eup %3521  ;;  %v2185_v37 = vand.u32 2147483648, %v4909_v26  ;;  %v1579_v1 = vsel %vm4972_vm12, %v1578_v39, %v1574_v38  ;;  %v2418_v21 = vmul.f32 %v2402_v35, %v1883_v17 }
 0x13c   : > { %v4959_v61 = vpop.eup %3523  ;;  %3531 = vpow2.f32 %v3214_v3  ;;  %v1886_v54 = vmul.f32 %v4951_v57, %v4900_v24  ;;  %vm1691_vm15 = vweird.f32 %v4876_v0  ;;  %v1690_v5 = vadd.f32 %v4906_v33, %v1689_v13 }
 0x13d   : > { %v3526_v49 = vpop.eup %3525  ;;  %v2175_v44 = vmul.f32 %v4959_v61, %v4909_v26  ;;  %vm2180_vm1 = vweird.f32 %v4959_v61  ;;  %vm1692_vm2 = vweird.f32 %v4906_v33  ;;  %v1697_v10 = vand.u32 2147483648, %v4876_v0 }
 0x13e   : > { %v3528_v15 = vpop.eup %3527  ;;  %v4977_v48 = vadd.f32 1.0, %v3526_v49  ;;  %v1887_v11 = vsub.f32 1.0, %v1886_v54  ;;  %v1999_v38 = vand.u32 2147483647, %v4881_v34  ;;  %v1703_v20 = vsub.f32 1.0, %v4991_v53  ;;  %vm5039_vm4 = vmor %vm1691_vm15, %vm1692_vm2 }
 0x13f   : > { %v2176_v19 = vsub.f32 1.0, %v2175_v44  ;;  %v4982_v50 = vadd.f32 1.0, %v3528_v15  ;;  %1432 = vmatmul.bf16.gmra.mxu0 %v4195_v42  ;;  %v1232_v63 = vpop.f32.mrf.mxu2  ;;  %v2183_v42 = vand.u32 2147483647, %v4909_v26  ;;  %v5028_v3 = vor.u32 1.1754944e-38, %v1896_v56  ;;  %vm5050_vm5 = vmor %vm2179_vm14, %vm2180_vm1 }
 0x140   : > { %v1179_v60 = vpop.f32.mrf.mxu3  ;;  %3533 = vrcp.f32 %v4977_v48  ;;  %v1695_v9 = vand.u32 2147483647, %v4876_v0  ;;  %v1204_v34 = vadd.f32 %v1203_v27, %v4442_v58  ;;  %v2186_v27 = vor.u32 1.1754944e-38, %v2185_v37 }
 0x141   : > { %v3530_v28 = vpop.eup %3529  ;;  %v1180_v23 = vadd.f32 %v1179_v60, %v1151_v40  ;;  %v2177_v30 = vmul.f32 %v4959_v61, %v2176_v19  ;;  %3535 = vrcp.f32 %v4982_v50  ;;  %vm5024_vm3 = vcmp.eq.f32.partialorder %v2183_v42, 8.507059e+37  ;;  %v1206_v49 = vpop.f32.mrf.mxu0  ;;  %v2410_v60 = vld [vmem:[%s4010_s7 + $0x50] sm:$0xff] }
 0x142   : > { %v2434_v59 = vmul.f32 %v3530_v28, %v1579_v1  ;;  %v3532_v29 = vpop.eup %3531  ;;  %v1249_v44 = vpop.f32.mrf.mxu1  ;;  %v1888_v19 = vmul.f32 %v4951_v57, %v1887_v11  ;;  %vm1891_vm6 = vweird.f32 %v4951_v57  ;;  %v1694_v0 = vsel %vm5039_vm4, %v4906_v33, %v1690_v5 }
 0x143   : > { %v5009_v52 = vadd.f32 1.0, %v3532_v29  ;;  %3537 = vtanh.f32 %v1180_v23  ;;  %v2178_v46 = vadd.f32 %v4959_v61, %v2177_v30  ;;  %vm1890_vm7 = vweird.f32 %v4900_v24 }
 0x144   : > { %3178 = vmatmul.msk.bf16.gmra.mxu2 %vm995_vm0, %v4197_v43  ;;  %v2450_v47 = vadd.f32 %v2434_v59, %v2418_v21  ;;  %v1994_v43 = vadd.f32 %v4912_v12, %v1993_v16  ;;  %vm5019_vm0 = vmor %vm1995_vm10, %vm1996_vm13  ;;  %v1698_v35 = vor.u32 1.1754944e-38, %v1697_v10  ;;  %vm2000_vm8 = vcmp.eq.f32.partialorder %v1999_v38, 8.507059e+37 }
 0x145   : > { %3539 = vrcp.f32 %v5009_v52  ;;  %v1233_v28 = vadd.f32 %v1232_v63, %v1204_v34  ;;  %v2303_v16 = vand.u32 2147483647, %v4977_v48  ;;  %v2016_v13 = vand.u32 2147483648, %v4982_v50  ;;  %vm5109_vm14 = vmor %vm1890_vm7, %vm1891_vm6 }
 0x146   : > { %v5013_v39 = vpop.eup %3533  ;;  %2466 = vst [vmem:[%s4737_s27 + $0x10] sm:$0xff] %v2450_v47  ;;  %v1998_v56 = vsel %vm5019_vm0, %v4912_v12, %v1994_v43  ;;  %vm1696_vm9 = vcmp.eq.f32.partialorder %v1695_v9, 8.507059e+37  ;;  %v2182_v37 = vsel %vm5050_vm5, %v4959_v61, %v2178_v46  ;;  %v1207_v59 = vadd.f32 %v1206_v49, %v4506_v55 }
 0x147   : > { %v1235_v54 = vpop.f32.mrf.mxu2  ;;  %v5059_v12 = vpop.eup %3535  ;;  %v2295_v26 = vmul.f32 %v5013_v39, %v4977_v48  ;;  %v2003_v33 = vsel %vm2000_vm8, %v4954_v31, %v1998_v56  ;;  %v1699_v1 = vsel %vm1696_vm9, %v1698_v35, %v1694_v0  ;;  %v3222_v21 = vmul.f32 -1.442695, %v1233_v28 }
 0x148   : > { %v1278_v17 = vpop.f32.mrf.mxu3  ;;  %v2006_v23 = vmul.f32 %v5059_v12, %v4982_v50  ;;  %v2200_v63 = vand.u32 2147483648, %v5009_v52  ;;  %v2426_v30 = vmul.f32 %v2410_v60, %v2003_v33  ;;  %v2305_v31 = vand.u32 2147483648, %v4977_v48 }
 0x149   : > { %v3538_v42 = vpop.eup %3537  ;;  %v2296_v5 = vsub.f32 1.0, %v2295_v26  ;;  %3541 = vpow2.f32 %v3222_v21  ;;  %v1584_v61 = vmul.f32 %v4918_v62, %v1583_v36  ;;  %v1250_v38 = vadd.f32 %v1249_v44, %v4309_v22  ;;  %v1208_v9 = vpop.f32.mrf.mxu0 }
 0x14a   : > { %v2442_v11 = vmul.f32 %v3538_v42, %v1699_v1  ;;  %v1236_v32 = vadd.f32 %v1235_v54, %v1207_v59  ;;  %v1251_v49 = vpop.f32.mrf.mxu1  ;;  %v5088_v46 = vsel %vm5024_vm3, %v2186_v27, %v2182_v37  ;;  %vm2011_vm10 = vweird.f32 %v5059_v12  ;;  %v2403_v59 = vld [vmem:[%s4010_s7 + $0x18] sm:$0xff] }
 0x14b   : > { %v5075_v29 = vpop.eup %3539  ;;  %v5091_v18 = vor.u32 1.1754944e-38, %v2016_v13  ;;  %3543 = vtanh.f32 %v2450_v47  ;;  %v2007_v36 = vsub.f32 1.0, %v2006_v23  ;;  %vm2010_vm11 = vweird.f32 %v4982_v50 }
 0x14c   : > { %v2190_v43 = vmul.f32 %v5075_v29, %v5009_v52  ;;  %v5083_v10 = vadd.f32 %v2442_v11, %v2426_v30  ;;  %v2198_v44 = vand.u32 2147483647, %v5009_v52  ;;  %v5096_v15 = vor.u32 1.1754944e-38, %v2200_v63  ;;  %vm5156_vm5 = vmor %vm2010_vm11, %vm2011_vm10 }
 0x14d   : > { %vm2194_vm12 = vweird.f32 %v5009_v52  ;;  %v1585_v40 = vadd.f32 %v4918_v62, %v1584_v61  ;;  %vm1587_vm13 = vweird.f32 %v4918_v62  ;;  %v1894_v47 = vand.u32 2147483647, %v4900_v24 }
 0x14e   : > { %v2191_v34 = vsub.f32 1.0, %v2190_v43  ;;  %2474 = vst [vmem:[%s4737_s27 + $0x50] sm:$0xff] %v5083_v10  ;;  %v2297_v0 = vmul.f32 %v5013_v39, %v2296_v5  ;;  %v1592_v54 = vand.u32 2147483648, %v4879_v2  ;;  %3545 = vtanh.f32 %v1236_v32 }
 0x14f   : > { %1437 = vmatmul.bf16.gmra.mxu0 %v4232_v6  ;;  %v1237_v51 = vpop.f32.mrf.mxu2  ;;  %v1889_v6 = vadd.f32 %v4951_v57, %v1888_v19  ;;  %v1279_v26 = vadd.f32 %v1278_v17, %v1250_v38  ;;  %v3542_v35 = vpop.eup %3541  ;;  %vm1586_vm15 = vweird.f32 %v4879_v2  ;;  %v1590_v19 = vand.u32 2147483647, %v4879_v2 }
 0x150   : > { %v1280_v56 = vpop.f32.mrf.mxu3  ;;  %v2192_v60 = vmul.f32 %v5075_v29, %v2191_v34  ;;  %v2008_v28 = vmul.f32 %v5059_v12, %v2007_v36  ;;  %vm2195_vm1 = vweird.f32 %v5075_v29  ;;  %v5123_v13 = vadd.f32 1.0, %v3542_v35  ;;  %vm5127_vm2 = vmor %vm1586_vm15, %vm1587_vm13 }
 0x151   : > { %v1893_v24 = vsel %vm5109_vm14, %v4951_v57, %v1889_v6  ;;  %v1209_v33 = vadd.f32 %v1208_v9, %v4599_v25  ;;  %v5132_v42 = vpop.eup %3543  ;;  %v1589_v2 = vsel %vm5127_vm2, %v4918_v62, %v1585_v40  ;;  %vm1895_vm0 = vcmp.eq.f32.partialorder %v1894_v47, 8.507059e+37  ;;  %v1307_v30 = vpop.f32.mrf.mxu0  ;;  %vm5170_vm8 = vmor %vm2194_vm12, %vm2195_vm1 }
 0x152   : > { %v3183_v57 = vmul.f32 -1.442695, %v1279_v26  ;;  %v1704_v37 = vmul.f32 %v4948_v8, %v1703_v20  ;;  %3547 = vrcp.f32 %v5123_v13  ;;  %v1593_v1 = vor.u32 1.1754944e-38, %v1592_v54  ;;  %v1254_v63 = vpop.f32.mrf.mxu1 }
 0x153   : > { %v1898_v21 = vsel %vm1895_vm0, %v5028_v3, %v1893_v24  ;;  %v1238_v23 = vadd.f32 %v1237_v51, %v1209_v33  ;;  %v5144_v11 = vadd.f32 %v5075_v29, %v2192_v60  ;;  %vm1591_vm3 = vcmp.eq.f32.partialorder %v1590_v19, 8.507059e+37 }
 0x154   : > { %3549 = vpow2.f32 %v3183_v57  ;;  %v1252_v62 = vadd.f32 %v1251_v49, %v4328_v41  ;;  %v3546_v5 = vpop.eup %3545  ;;  %v5148_v53 = vadd.f32 %v5013_v39, %v2297_v0  ;;  %v1594_v20 = vsel %vm1591_vm3, %v1593_v1, %v1589_v2 }
 0x155   : > { %v1705_v61 = vadd.f32 %v4948_v8, %v1704_v37  ;;  %vm1707_vm4 = vweird.f32 %v4948_v8  ;;  %vm5160_vm6 = vcmp.eq.f32.partialorder %v2198_v44, 8.507059e+37  ;;  %v2419_v9 = vmul.f32 %v2403_v59, %v1898_v21 }
 0x156   : > { %v2435_v49 = vmul.f32 %v3546_v5, %v1594_v20  ;;  %vm1706_vm7 = vweird.f32 %v4892_v7  ;;  %v1710_v36 = vand.u32 2147483647, %v4892_v7  ;;  %v1712_v51 = vand.u32 2147483648, %v4892_v7 }
 0x157   : > { %v1336_v43 = vpop.f32.mrf.mxu2  ;;  %v2009_v44 = vadd.f32 %v5059_v12, %v2008_v28  ;;  %v2014_v40 = vand.u32 2147483647, %v4982_v50  ;;  %3551 = vtanh.f32 %v1238_v23  ;;  %vm2299_vm9 = vweird.f32 %v4977_v48  ;;  %vm5186_vm11 = vmor %vm1706_vm7, %vm1707_vm4 }
 0x158   : > { %v1283_v3 = vpop.f32.mrf.mxu3  ;;  %vm2300_vm10 = vweird.f32 %v5013_v39  ;;  %v2197_v52 = vsel %vm5170_vm8, %v5075_v29, %v5144_v11  ;;  %3553 = vtanh.f32 %v5083_v10  ;;  %v2451_v6 = vadd.f32 %v2435_v49, %v2419_v9  ;;  %v5190_v47 = vpop.eup %3547 }
 0x159   : > { %v1281_v50 = vadd.f32 %v1280_v56, %v1252_v62  ;;  %v1709_v27 = vsel %vm5186_vm11, %v4948_v8, %v1705_v61  ;;  %v2013_v29 = vsel %vm5156_vm5, %v5059_v12, %v2009_v44  ;;  %v1255_v10 = vadd.f32 %v1254_v63, %v4345_v4  ;;  %v2411_v56 = vld [vmem:[%s4010_s7 + $0x58] sm:$0xff]  ;;  %v1309_v24 = vpop.f32.mrf.mxu0  ;;  %vm5226_vm15 = vmor %vm2299_vm9, %vm2300_vm10 }
 0x15a   : > { %v1308_v0 = vadd.f32 %v1307_v30, %v4309_v22  ;;  %v3550_v54 = vpop.eup %3549  ;;  %v2310_v26 = vmul.f32 %v5190_v47, %v5123_v13  ;;  %2467 = vst [vmem:[%s4737_s27 + $0x18] sm:$0xff] %v2451_v6  ;;  %3555 = vtanh.f32 %v2451_v6  ;;  %vm1711_vm12 = vcmp.eq.f32.partialorder %v1710_v36, 8.507059e+37  ;;  %v1256_v12 = vpop.f32.mrf.mxu1 }
 0x15b   : > { %vm2015_vm13 = vcmp.eq.f32.partialorder %v2014_v40, 8.507059e+37  ;;  %v5204_v35 = vadd.f32 1.0, %v3550_v54  ;;  %v1713_v8 = vor.u32 1.1754944e-38, %v1712_v51  ;;  %v1284_v19 = vadd.f32 %v1283_v3, %v1255_v10 }
 0x15c   : > { %v2018_v60 = vsel %vm2015_vm13, %v5091_v18, %v2013_v29  ;;  %v2311_v28 = vsub.f32 1.0, %v2310_v26  ;;  %v3191_v17 = vmul.f32 -1.442695, %v1281_v50  ;;  %v1337_v33 = vadd.f32 %v1336_v43, %v1308_v0 }
 0x15d   : > { %v1257_v2 = vadd.f32 %v1256_v12, %v4376_v45  ;;  %v3552_v57 = vpop.eup %3551  ;;  %3557 = vrcp.f32 %v5204_v35  ;;  %v1714_v37 = vsel %vm1711_vm12, %v1713_v8, %v1709_v27  ;;  %v2427_v1 = vmul.f32 %v2411_v56, %v2018_v60 }
 0x15e   : > { %v3199_v21 = vmul.f32 -1.442695, %v1284_v19  ;;  %v3554_v63 = vpop.eup %3553  ;;  %v2312_v30 = vmul.f32 %v5190_v47, %v2311_v28  ;;  %v2443_v18 = vmul.f32 %v3552_v57, %v1714_v37  ;;  %v3184_v11 = vmul.f32 -1.442695, %v1337_v33 }
 0x15f   : > { %v1338_v23 = vpop.f32.mrf.mxu2  ;;  %v1310_v62 = vadd.f32 %v1309_v24, %v4328_v41  ;;  %v2498_v5 = vmul.f32 %v5132_v42, %v5088_v46  ;;  %v2202_v20 = vsel %vm5160_vm6, %v5096_v15, %v2197_v52  ;;  %vm2315_vm14 = vweird.f32 %v5190_v47 }
 0x160   : > { %v1285_v59 = vpop.f32.mrf.mxu3  ;;  %3559 = vpow2.f32 %v3199_v21  ;;  %v3556_v3 = vpop.eup %3555  ;;  %v2459_v43 = vadd.f32 %v2443_v18, %v2427_v1  ;;  %v2313_v9 = vadd.f32 %v5190_v47, %v2312_v30  ;;  %v2320_v34 = vand.u32 2147483648, %v5123_v13 }
 0x161   : > { %v1286_v61 = vadd.f32 %v1285_v59, %v1257_v2  ;;  %3561 = vpow2.f32 %v3191_v17  ;;  %v1339_v38 = vadd.f32 %v1338_v23, %v1310_v62  ;;  %v2499_v49 = vmul.f32 %v3556_v3, %v2202_v20  ;;  %v1312_v44 = vpop.f32.mrf.mxu0 }
 0x162   : > { %3563 = vpow2.f32 %v3184_v11  ;;  %2475 = vst [vmem:[%s4737_s27 + $0x58] sm:$0xff] %v2459_v43  ;;  %vm2314_vm1 = vweird.f32 %v5123_v13  ;;  %v2318_v42 = vand.u32 2147483647, %v5123_v13  ;;  %v1259_v51 = vpop.f32.mrf.mxu1  ;;  %v2302_v40 = vsel %vm5226_vm15, %v5013_v39, %v5148_v53 }
 0x163   : > { %v3207_v36 = vmul.f32 -1.442695, %v1286_v61  ;;  %3565 = vtanh.f32 %v2459_v43  ;;  %v5220_v46 = vpop.eup %3557  ;;  %v2513_v32 = vpack.c.bf16 %v2499_v49, %v2498_v5  ;;  %vm5238_vm2 = vmor %vm2314_vm1, %vm2315_vm14  ;;  %v1260_v6 = vadd.f32 %v1259_v51, %v4401_v14 }
 0x164   : > { %v1313_v7 = vadd.f32 %v1312_v44, %v4345_v4  ;;  %vm2304_vm0 = vcmp.eq.f32.partialorder %v2303_v16, 8.507059e+37  ;;  %v2306_v50 = vor.u32 1.1754944e-38, %v2305_v31  ;;  %v2317_v39 = vsel %vm5238_vm2, %v5190_v47, %v2313_v9 }
 0x165   : > { %3567 = vpow2.f32 %v3207_v36  ;;  %2521 = vst [vmem:[%s4837_s2 + $0x8] sm:$0xff] %v2513_v32  ;;  %v3192_v53 = vmul.f32 -1.442695, %v1339_v38  ;;  %v2321_v0 = vor.u32 1.1754944e-38, %v2320_v34  ;;  %vm2319_vm3 = vcmp.eq.f32.partialorder %v2318_v42, 8.507059e+37 }
 0x166   : > { %v3560_v13 = vpop.eup %3559  ;;  %v2307_v60 = vsel %vm2304_vm0, %v2306_v50, %v2302_v40  ;;  %v1597_v37 = vmul.f32 %v5220_v46, %v5204_v35  ;;  %vm1601_vm4 = vweird.f32 %v5204_v35  ;;  %vm1602_vm5 = vweird.f32 %v5220_v46 }
 0x167   : > { %v1341_v29 = vpop.f32.mrf.mxu2  ;;  %v3562_v10 = vpop.eup %3561  ;;  %v5252_v54 = vadd.f32 1.0, %v3560_v13  ;;  %v2506_v48 = vmul.f32 %v3554_v63, %v2307_v60  ;;  %v2322_v31 = vsel %vm2319_vm3, %v2321_v0, %v2317_v39  ;;  %vm5309_vm8 = vmor %vm1601_vm4, %vm1602_vm5  ;;  %v1605_v60 = vand.u32 2147483647, %v5204_v35 }
 0x168   : > { %v1288_v27 = vpop.f32.mrf.mxu3  ;;  %v1342_v56 = vadd.f32 %v1341_v29, %v1313_v7  ;;  %v3564_v8 = vpop.eup %3563  ;;  %v5255_v24 = vadd.f32 1.0, %v3562_v10  ;;  %v1598_v61 = vsub.f32 1.0, %v1597_v37 }
 0x169   : > { %v1289_v26 = vadd.f32 %v1288_v27, %v1260_v6  ;;  %v3566_v16 = vpop.eup %3565  ;;  %3569 = vrcp.f32 %v5252_v54  ;;  %v1314_v57 = vpop.f32.mrf.mxu0  ;;  %v5261_v1 = vadd.f32 1.0, %v3564_v8  ;;  %v1911_v40 = vand.u32 2147483648, %v5252_v54 }
 0x16a   : > { %v2507_v12 = vmul.f32 %v3566_v16, %v2322_v31  ;;  %3571 = vpow2.f32 %v3192_v53  ;;  %v3200_v28 = vmul.f32 -1.442695, %v1342_v56  ;;  %v1261_v2 = vpop.f32.mrf.mxu1  ;;  %v1315_v59 = vadd.f32 %v1314_v57, %v4376_v45 }
 0x16b   : > { %v3215_v47 = vmul.f32 -1.442695, %v1289_v26  ;;  %v3568_v19 = vpop.eup %3567  ;;  %v1262_v21 = vadd.f32 %v1261_v2, %v4442_v58  ;;  %v1599_v51 = vmul.f32 %v5220_v46, %v1598_v61  ;;  %vm1905_vm6 = vweird.f32 %v5252_v54 }
 0x16c   : > { %v2517_v17 = vpack.c.bf16 %v2507_v12, %v2506_v48  ;;  %v5257_v33 = vadd.f32 1.0, %v3568_v19  ;;  %v1607_v16 = vand.u32 2147483648, %v5204_v35  ;;  %v1912_v31 = vor.u32 1.1754944e-38, %v1911_v40 }
 0x16d   : > { %3573 = vpow2.f32 %v3215_v47  ;;  %v1600_v0 = vadd.f32 %v5220_v46, %v1599_v51  ;;  %vm5341_vm12 = vcmp.eq.f32.partialorder %v1605_v60, 8.507059e+37  ;;  %vm1721_vm15 = vweird.f32 %v5255_v24 }
 0x16e   : > { %3575 = vpow2.f32 %v3200_v28  ;;  %2525 = vst [vmem:[%s4837_s2 + $0x28] sm:$0xff] %v2517_v17  ;;  %v2031_v10 = vand.u32 2147483648, %v5257_v33  ;;  %vm2025_vm9 = vweird.f32 %v5257_v33  ;;  %v1909_v17 = vand.u32 2147483647, %v5252_v54 }
 0x16f   : > { %3577 = vrcp.f32 %v5255_v24  ;;  %v1343_v63 = vpop.f32.mrf.mxu2  ;;  %v5267_v30 = vpop.eup %3569  ;;  %v2029_v8 = vand.u32 2147483647, %v5257_v33 }
 0x170   : > { %v1290_v23 = vpop.f32.mrf.mxu3  ;;  %v3572_v11 = vpop.eup %3571  ;;  %v1901_v62 = vmul.f32 %v5267_v30, %v5252_v54  ;;  %3579 = vrcp.f32 %v5257_v33  ;;  %v1344_v5 = vadd.f32 %v1343_v63, %v1315_v59  ;;  %vm1906_vm7 = vweird.f32 %v5267_v30 }
 0x171   : > { %v1291_v18 = vadd.f32 %v1290_v23, %v1262_v21  ;;  %3581 = vrcp.f32 %v5261_v1  ;;  %v5279_v15 = vadd.f32 1.0, %v3572_v11  ;;  %v1317_v32 = vpop.f32.mrf.mxu0  ;;  %vm5326_vm10 = vmor %vm1905_vm6, %vm1906_vm7  ;;  %v5330_v23 = vor.u32 1.1754944e-38, %v2031_v10 }
 0x172   : > { %v3208_v49 = vmul.f32 -1.442695, %v1344_v5  ;;  %v1902_v34 = vsub.f32 1.0, %v1901_v62  ;;  %v1264_v42 = vpop.f32.mrf.mxu1  ;;  %v1318_v53 = vadd.f32 %v1317_v32, %v4401_v14  ;;  %v1608_v5 = vor.u32 1.1754944e-38, %v1607_v16 }
 0x173   : > { %v3574_v20 = vpop.eup %3573  ;;  %v3223_v3 = vmul.f32 -1.442695, %v1291_v18  ;;  %v1265_v39 = vadd.f32 %v1264_v42, %v4506_v55  ;;  %v1604_v18 = vsel %vm5309_vm8, %v5220_v46, %v1600_v0  ;;  %vm1910_vm13 = vcmp.eq.f32.partialorder %v1909_v17, 8.507059e+37 }
 0x174   : > { %v3576_v43 = vpop.eup %3575  ;;  %v5273_v38 = vadd.f32 1.0, %v3574_v20  ;;  %v1903_v50 = vmul.f32 %v5267_v30, %v1902_v34  ;;  %v1727_v10 = vand.u32 2147483648, %v5255_v24  ;;  %vm2030_vm5 = vcmp.eq.f32.partialorder %v2029_v8, 8.507059e+37 }
 0x175   : > { %v5275_v9 = vadd.f32 1.0, %v3576_v43  ;;  %3583 = vpow2.f32 %v3223_v3  ;;  %v5277_v36 = vpop.eup %3577 }
 0x176   : > { %3585 = vrcp.f32 %v5273_v38  ;;  %v5283_v44 = vpop.eup %3579  ;;  %v1717_v13 = vmul.f32 %v5277_v36, %v5255_v24  ;;  %v1904_v28 = vadd.f32 %v5267_v30, %v1903_v50  ;;  %vm2209_vm14 = vweird.f32 %v5273_v38 }
 0x177   : > { %3587 = vrcp.f32 %v5275_v9  ;;  %v1346_v6 = vpop.f32.mrf.mxu2  ;;  %v5287_v7 = vpop.eup %3581  ;;  %v2021_v29 = vmul.f32 %v5283_v44, %v5257_v33  ;;  %vm2026_vm11 = vweird.f32 %v5283_v44  ;;  %vm1722_vm1 = vweird.f32 %v5277_v36 }
 0x178   : > { %v1293_v52 = vpop.f32.mrf.mxu3  ;;  %3589 = vpow2.f32 %v3208_v49  ;;  %v5307_v56 = vmul.f32 %v5287_v7, %v5261_v1  ;;  %v1718_v48 = vsub.f32 1.0, %v1717_v13  ;;  %v1347_v2 = vadd.f32 %v1346_v6, %v1318_v53  ;;  %v2404_v13 = vld [vmem:[%s4010_s7 + $0x20] sm:$0xff]  ;;  %vm5377_vm2 = vmor %vm2025_vm9, %vm2026_vm11 }
 0x179   : > { %3591 = vrcp.f32 %v5279_v15  ;;  %v1294_v19 = vadd.f32 %v1293_v52, %v1265_v39  ;;  %v1319_v37 = vpop.f32.mrf.mxu0  ;;  %v2022_v59 = vsub.f32 1.0, %v2021_v29  ;;  %v1908_v34 = vsel %vm5326_vm10, %v5267_v30, %v1904_v28  ;;  %vm5391_vm0 = vmor %vm1721_vm15, %vm1722_vm1 }
 0x17a   : > { %v1266_v57 = vpop.f32.mrf.mxu1  ;;  %v1613_v62 = vsub.f32 1.0, %v5307_v56  ;;  %v1719_v49 = vmul.f32 %v5277_v36, %v1718_v48  ;;  %v3216_v42 = vmul.f32 -1.442695, %v1347_v2  ;;  %v1609_v52 = vsel %vm5341_vm12, %v1608_v5, %v1604_v18 }
 0x17b   : > { %v3584_v27 = vpop.eup %3583  ;;  %3593 = vtanh.f32 %v1294_v19  ;;  %v2023_v32 = vmul.f32 %v5283_v44, %v2022_v59  ;;  %v1267_v40 = vadd.f32 %v1266_v57, %v4599_v25  ;;  %v1913_v6 = vsel %vm1910_vm13, %v1912_v31, %v1908_v34 }
 0x17c   : > { %v5302_v26 = vpop.eup %3585  ;;  %v5332_v63 = vadd.f32 1.0, %v3584_v27  ;;  %v1320_v53 = vadd.f32 %v1319_v37, %v4442_v58  ;;  %v1720_v27 = vadd.f32 %v5277_v36, %v1719_v49  ;;  %v2420_v16 = vmul.f32 %v2404_v13, %v1913_v6 }
 0x17d   : > { %v2205_v47 = vmul.f32 %v5302_v26, %v5273_v38  ;;  %v5317_v12 = vpop.eup %3587  ;;  %v2024_v0 = vadd.f32 %v5283_v44, %v2023_v32  ;;  %v1725_v31 = vand.u32 2147483647, %v5255_v24  ;;  %v2213_v2 = vand.u32 2147483647, %v5273_v38  ;;  %v2405_v32 = vld [vmem:[%s4010_s7 + $0x28] sm:$0xff] }
 0x17e   : > { %v3590_v21 = vpop.eup %3589  ;;  %v1916_v46 = vmul.f32 %v5317_v12, %v5275_v9  ;;  %3595 = vrcp.f32 %v5332_v63  ;;  %v2215_v57 = vand.u32 2147483648, %v5273_v38  ;;  %v1926_v33 = vand.u32 2147483648, %v5275_v9 }
 0x17f   : > { %v5337_v11 = vpop.eup %3591  ;;  %v1348_v20 = vpop.f32.mrf.mxu2  ;;  %v2206_v61 = vsub.f32 1.0, %v2205_v47  ;;  %v5345_v3 = vadd.f32 1.0, %v3590_v21  ;;  %3597 = vpow2.f32 %v3216_v42  ;;  %v2028_v21 = vsel %vm5377_vm2, %v5283_v44, %v2024_v0 }
 0x180   : > { %v1295_v43 = vpop.f32.mrf.mxu3  ;;  %v5356_v51 = vmul.f32 %v5337_v11, %v5279_v15  ;;  %v1917_v39 = vsub.f32 1.0, %v1916_v46  ;;  %v1349_v47 = vadd.f32 %v1348_v20, %v1320_v53  ;;  %vm2210_vm3 = vweird.f32 %v5302_v26 }
 0x181   : > { %v2207_v30 = vmul.f32 %v5302_v26, %v2206_v61  ;;  %3599 = vrcp.f32 %v5345_v3  ;;  %v1296_v50 = vadd.f32 %v1295_v43, %v1267_v40  ;;  %v3594_v29 = vpop.eup %3593  ;;  %v1322_v19 = vpop.f32.mrf.mxu0  ;;  %vm1920_vm4 = vweird.f32 %v5275_v9  ;;  %v2412_v61 = vld [vmem:[%s4010_s7 + $0x60] sm:$0xff]  ;;  %vm5420_vm7 = vmor %vm2209_vm14, %vm2210_vm3 }
 0x182   : > { %v2436_v48 = vmul.f32 %v3594_v29, %v1609_v52  ;;  %v1365_v28 = vpop.f32.mrf.mxu1  ;;  %v1724_v24 = vsel %vm5391_vm0, %v5277_v36, %v1720_v27  ;;  %v1728_v20 = vor.u32 1.1754944e-38, %v1727_v10  ;;  %v2033_v44 = vsel %vm2030_vm5, %v5330_v23, %v2028_v21 }
 0x183   : > { %3601 = vtanh.f32 %v1296_v50  ;;  %v3224_v43 = vmul.f32 -1.442695, %v1349_v47  ;;  %v1733_v46 = vsub.f32 1.0, %v5356_v51  ;;  %v2208_v34 = vadd.f32 %v5302_v26, %v2207_v30 }
 0x184   : > { %v5382_v17 = vpop.eup %3595  ;;  %v5400_v18 = vadd.f32 %v2436_v48, %v2420_v16  ;;  %v1918_v42 = vmul.f32 %v5317_v12, %v1917_v39  ;;  %vm1726_vm6 = vcmp.eq.f32.partialorder %v1725_v31, 8.507059e+37  ;;  %v1323_v40 = vadd.f32 %v1322_v19, %v4506_v55 }
 0x185   : > { %v3598_v59 = vpop.eup %3597  ;;  %v2325_v23 = vmul.f32 %v5382_v17, %v5332_v63  ;;  %v1729_v51 = vsel %vm1726_vm6, %v1728_v20, %v1724_v24  ;;  %vm5428_vm8 = vcmp.eq.f32.partialorder %v2213_v2, 8.507059e+37  ;;  %v2428_v38 = vmul.f32 %v2412_v61, %v2033_v44 }
 0x186   : > { %v5407_v5 = vadd.f32 1.0, %v3598_v59  ;;  %2468 = vst [vmem:[%s4737_s27 + $0x20] sm:$0xff] %v5400_v18  ;;  %v2216_v13 = vor.u32 1.1754944e-38, %v2215_v57  ;;  %v2046_v50 = vand.u32 2147483648, %v5345_v3  ;;  %v1614_v39 = vmul.f32 %v5287_v7, %v1613_v62 }
 0x187   : > { %v1351_v35 = vpop.f32.mrf.mxu2  ;;  %v5405_v54 = vpop.eup %3599  ;;  %v2212_v53 = vsel %vm5420_vm7, %v5302_v26, %v2208_v34  ;;  %vm1921_vm9 = vweird.f32 %v5317_v12  ;;  %v1366_v29 = vadd.f32 %v1365_v28, %v4309_v22  ;;  %v2326_v0 = vsub.f32 1.0, %v2325_v23 }
 0x188   : > { %v1394_v49 = vpop.f32.mrf.mxu3  ;;  %3603 = vrcp.f32 %v5407_v5  ;;  %v2036_v30 = vmul.f32 %v5405_v54, %v5345_v3  ;;  %v2333_v8 = vand.u32 2147483647, %v5332_v63  ;;  %v1352_v60 = vadd.f32 %v1351_v35, %v1323_v40  ;;  %vm5461_vm10 = vmor %vm1920_vm4, %vm1921_vm9 }
 0x189   : > { %v3602_v36 = vpop.eup %3601  ;;  %3605 = vpow2.f32 %v3224_v43  ;;  %v1919_v16 = vadd.f32 %v5317_v12, %v1918_v42  ;;  %v1927_v48 = vor.u32 1.1754944e-38, %v1926_v33  ;;  %v2335_v62 = vand.u32 2147483648, %v5332_v63  ;;  %v1324_v47 = vpop.f32.mrf.mxu0 }
 0x18a   : > { %v2444_v6 = vmul.f32 %v3602_v36, %v1729_v51  ;;  %v1367_v10 = vpop.f32.mrf.mxu1  ;;  %v2037_v31 = vsub.f32 1.0, %v2036_v30  ;;  %v1924_v26 = vand.u32 2147483647, %v5275_v9  ;;  %v5455_v28 = vsel %vm5428_vm8, %v2216_v13, %v2212_v53 }
 0x18b   : > { %v5465_v57 = vor.u32 1.1754944e-38, %v2046_v50  ;;  %v1615_v33 = vadd.f32 %v5287_v7, %v1614_v39  ;;  %vm1617_vm11 = vweird.f32 %v5287_v7  ;;  %vm2040_vm12 = vweird.f32 %v5345_v3 }
 0x18c   : > { %v5442_v27 = vadd.f32 %v2444_v6, %v2428_v38  ;;  %v1622_v35 = vand.u32 2147483648, %v5261_v1  ;;  %v1923_v9 = vsel %vm5461_vm10, %v5317_v12, %v1919_v16  ;;  %v1395_v59 = vadd.f32 %v1394_v49, %v1366_v29 }
 0x18d   : > { %v2327_v20 = vmul.f32 %v5382_v17, %v2326_v0  ;;  %vm1616_vm13 = vweird.f32 %v5261_v1  ;;  %v1620_v44 = vand.u32 2147483647, %v5261_v1  ;;  %3607 = vtanh.f32 %v1352_v60 }
 0x18e   : > { %2476 = vst [vmem:[%s4737_s27 + $0x60] sm:$0xff] %v5442_v27  ;;  %v5451_v19 = vpop.eup %3603  ;;  %v2038_v61 = vmul.f32 %v5405_v54, %v2037_v31  ;;  %vm5484_vm14 = vmor %vm1616_vm13, %vm1617_vm11  ;;  %vm1925_vm15 = vcmp.eq.f32.partialorder %v1924_v26, 8.507059e+37  ;;  %v1325_v12 = vadd.f32 %v1324_v47, %v4599_v25  ;;  %v1734_v1 = vmul.f32 %v5337_v11, %v1733_v46 }
 0x18f   : > { %v1353_v56 = vpop.f32.mrf.mxu2  ;;  %v2220_v21 = vmul.f32 %v5451_v19, %v5407_v5  ;;  %v3606_v24 = vpop.eup %3605  ;;  %v1619_v42 = vsel %vm5484_vm14, %v5287_v7, %v1615_v33  ;;  %v1928_v36 = vsel %vm1925_vm15, %v1927_v48, %v1923_v9  ;;  %vm2041_vm1 = vweird.f32 %v5405_v54 }
 0x190   : > { %v5469_v37 = vpop.f32.mrf.mxu3  ;;  %v5482_v43 = vadd.f32 1.0, %v3606_v24  ;;  %v1623_v23 = vor.u32 1.1754944e-38, %v1622_v35  ;;  %v3185_v51 = vmul.f32 -1.442695, %v1395_v59  ;;  %v5497_v52 = vadd.f32 %v5382_v17, %v2327_v20  ;;  %vm5512_vm4 = vmor %vm2040_vm12, %vm2041_vm1 }
 0x191   : > { %v2221_v49 = vsub.f32 1.0, %v2220_v21  ;;  %vm1621_vm2 = vcmp.eq.f32.partialorder %v1620_v44, 8.507059e+37  ;;  %v1354_v30 = vadd.f32 %v1353_v56, %v1325_v12  ;;  %vm2224_vm0 = vweird.f32 %v5407_v5 }
 0x192   : > { %3609 = vrcp.f32 %v5482_v43  ;;  %v1370_v40 = vpop.f32.mrf.mxu1  ;;  %v1624_v7 = vsel %vm1621_vm2, %v1623_v23, %v1619_v42  ;;  %v2421_v38 = vmul.f32 %v2405_v32, %v1928_v36  ;;  %v1368_v46 = vadd.f32 %v1367_v10, %v4328_v41 }
 0x193   : > { %3611 = vtanh.f32 %v5400_v18  ;;  %v3608_v13 = vpop.eup %3607  ;;  %v2222_v50 = vmul.f32 %v5451_v19, %v2221_v49  ;;  %v1735_v39 = vadd.f32 %v5337_v11, %v1734_v1  ;;  %vm1737_vm3 = vweird.f32 %v5337_v11 }
 0x194   : > { %v2039_v53 = vadd.f32 %v5405_v54, %v2038_v61  ;;  %v2437_v18 = vmul.f32 %v3608_v13, %v1624_v7  ;;  %3613 = vpow2.f32 %v3185_v51  ;;  %v1742_v0 = vand.u32 2147483648, %v5279_v15  ;;  %v2413_v61 = vld [vmem:[%s4010_s7 + $0x68] sm:$0xff] }
 0x195   : > { %v2044_v60 = vand.u32 2147483647, %v5345_v3  ;;  %v2228_v56 = vand.u32 2147483647, %v5407_v5  ;;  %v2230_v48 = vand.u32 2147483648, %v5407_v5  ;;  %vm1736_vm5 = vweird.f32 %v5279_v15 }
 0x196   : > { %3615 = vtanh.f32 %v1354_v30  ;;  %vm2329_vm6 = vweird.f32 %v5332_v63  ;;  %vm2330_vm7 = vweird.f32 %v5382_v17  ;;  %vm2225_vm8 = vweird.f32 %v5451_v19  ;;  %vm5526_vm9 = vmor %vm1736_vm5, %vm1737_vm3 }
 0x197   : > { %v1452_v6 = vpop.f32.mrf.mxu2  ;;  %v2453_v3 = vadd.f32 %v2437_v18, %v2421_v38  ;;  %v1740_v47 = vand.u32 2147483647, %v5279_v15  ;;  %v2043_v2 = vsel %vm5512_vm4, %v5405_v54, %v2039_v53  ;;  %v2223_v21 = vadd.f32 %v5451_v19, %v2222_v50  ;;  %vm5551_vm11 = vmor %vm2224_vm0, %vm2225_vm8 }
 0x198   : > { %v1399_v29 = vpop.f32.mrf.mxu3  ;;  %v5519_v31 = vpop.eup %3609  ;;  %v1739_v9 = vsel %vm5526_vm9, %v5337_v11, %v1735_v39  ;;  %v1397_v59 = vadd.f32 %v5469_v37, %v1368_v46  ;;  %v1743_v24 = vor.u32 1.1754944e-38, %v1742_v0  ;;  %vm2045_vm10 = vcmp.eq.f32.partialorder %v2044_v60, 8.507059e+37  ;;  %vm5579_vm1 = vmor %vm2329_vm6, %vm2330_vm7 }
 0x199   : > { %v3612_v33 = vpop.eup %3611  ;;  %v2340_v35 = vmul.f32 %v5519_v31, %v5482_v43  ;;  %2469 = vst [vmem:[%s4737_s27 + $0x28] sm:$0xff] %v2453_v3  ;;  %3617 = vtanh.f32 %v2453_v3  ;;  %v1371_v15 = vadd.f32 %v1370_v40, %v4345_v4  ;;  %v2048_v44 = vsel %vm2045_vm10, %v5465_v57, %v2043_v2 }
 0x19a   : > { %v1372_v20 = vpop.f32.mrf.mxu1  ;;  %v3614_v49 = vpop.eup %3613  ;;  %vm5555_vm12 = vcmp.eq.f32.partialorder %v2228_v56, 8.507059e+37  ;;  %v2231_v42 = vor.u32 1.1754944e-38, %v2230_v48  ;;  %vm1741_vm13 = vcmp.eq.f32.partialorder %v1740_v47, 8.507059e+37  ;;  %v2227_v32 = vsel %vm5551_vm11, %v5451_v19, %v2223_v21 }
 0x19b   : > { %v2341_v54 = vsub.f32 1.0, %v2340_v35  ;;  %v1373_v12 = vadd.f32 %v1372_v20, %v4376_v45  ;;  %v1400_v57 = vadd.f32 %v1399_v29, %v1371_v15  ;;  %v1744_v5 = vsel %vm1741_vm13, %v1743_v24, %v1739_v9 }
 0x19c   : > { %v1423_v16 = vpop.f32.mrf.mxu0  ;;  %v3193_v23 = vmul.f32 -1.442695, %v1397_v59  ;;  %v2429_v40 = vmul.f32 %v2413_v61, %v2048_v44  ;;  %v2500_v13 = vmul.f32 %v3612_v33, %v5455_v28  ;;  %3619 = vtanh.f32 %v5442_v27 }
 0x19d   : > { %v1424_v34 = vadd.f32 %v1423_v16, %v4309_v22  ;;  %v3616_v22 = vpop.eup %3615  ;;  %v2342_v1 = vmul.f32 %v5519_v31, %v2341_v54  ;;  %v3201_v7 = vmul.f32 -1.442695, %v1400_v57  ;;  %v5565_v50 = vadd.f32 1.0, %v3614_v49 }
 0x19e   : > { %v2445_v30 = vmul.f32 %v3616_v22, %v1744_v5  ;;  %v2232_v19 = vsel %vm5555_vm12, %v2231_v42, %v2227_v32  ;;  %vm2345_vm14 = vweird.f32 %v5519_v31  ;;  %vm2344_vm15 = vweird.f32 %v5482_v43 }
 0x19f   : > { %v1454_v36 = vpop.f32.mrf.mxu2  ;;  %v1453_v39 = vadd.f32 %v1452_v6, %v1424_v34  ;;  %v3618_v53 = vpop.eup %3617  ;;  %3621 = vpow2.f32 %v3201_v7  ;;  %v2343_v0 = vadd.f32 %v5519_v31, %v2342_v1  ;;  %v2348_v27 = vand.u32 2147483647, %v5482_v43  ;;  %vm5585_vm2 = vmor %vm2344_vm15, %vm2345_vm14 }
 0x1a0   : > { %v1401_v51 = vpop.f32.mrf.mxu3  ;;  %v2461_v29 = vadd.f32 %v2445_v30, %v2429_v40  ;;  %v2501_v60 = vmul.f32 %v3618_v53, %v2232_v19  ;;  %3623 = vpow2.f32 %v3193_v23  ;;  %v2350_v28 = vand.u32 2147483648, %v5482_v43 }
 0x1a1   : > { %v1402_v46 = vadd.f32 %v1401_v51, %v1373_v12  ;;  %v3186_v56 = vmul.f32 -1.442695, %v1453_v39  ;;  %v2332_v2 = vsel %vm5579_vm1, %v5382_v17, %v5497_v52  ;;  %v2347_v33 = vsel %vm5585_vm2, %v5519_v31, %v2343_v0 }
 0x1a2   : > { %2477 = vst [vmem:[%s4737_s27 + $0x68] sm:$0xff] %v2461_v29  ;;  %3625 = vtanh.f32 %v2461_v29  ;;  %v1375_v6 = vpop.f32.mrf.mxu1  ;;  %v2514_v10 = vpack.c.bf16 %v2501_v60, %v2500_v13  ;;  %v3620_v47 = vpop.eup %3619  ;;  %vm2334_vm0 = vcmp.eq.f32.partialorder %v2333_v8, 8.507059e+37  ;;  %v2336_v9 = vor.u32 1.1754944e-38, %v2335_v62 }
 0x1a3   : > { %v3209_v18 = vmul.f32 -1.442695, %v1402_v46  ;;  %3627 = vrcp.f32 %v5565_v50  ;;  %v1376_v3 = vadd.f32 %v1375_v6, %v4401_v14  ;;  %v2351_v59 = vor.u32 1.1754944e-38, %v2350_v28 }
 0x1a4   : > { %v1425_v38 = vpop.f32.mrf.mxu0  ;;  %2522 = vst [vmem:[%s4837_s2 + $0x10] sm:$0xff] %v2514_v10  ;;  %vm2349_vm3 = vcmp.eq.f32.partialorder %v2348_v27, 8.507059e+37  ;;  %v2337_v31 = vsel %vm2334_vm0, %v2336_v9, %v2332_v2  ;;  %vm1631_vm6 = vweird.f32 %v5565_v50 }
 0x1a5   : > { %v1426_v48 = vadd.f32 %v1425_v38, %v4328_v41  ;;  %3629 = vpow2.f32 %v3209_v18  ;;  %v3622_v35 = vpop.eup %3621  ;;  %v2352_v54 = vsel %vm2349_vm3, %v2351_v59, %v2347_v33  ;;  %v2508_v8 = vmul.f32 %v3620_v47, %v2337_v31 }
 0x1a6   : > { %v3624_v15 = vpop.eup %3623  ;;  %v5602_v20 = vadd.f32 1.0, %v3622_v35  ;;  %3631 = vpow2.f32 %v3186_v56  ;;  %v1635_v59 = vand.u32 2147483647, %v5565_v50 }
 0x1a7   : > { %v1457_v26 = vpop.f32.mrf.mxu2  ;;  %v1455_v41 = vadd.f32 %v1454_v36, %v1426_v48  ;;  %v5608_v12 = vadd.f32 1.0, %v3624_v15 }
 0x1a8   : > { %v1404_v21 = vpop.f32.mrf.mxu3  ;;  %v3626_v52 = vpop.eup %3625  ;;  %3633 = vrcp.f32 %v5602_v20  ;;  %v1941_v46 = vand.u32 2147483648, %v5602_v20  ;;  %vm1935_vm4 = vweird.f32 %v5602_v20  ;;  %v1939_v2 = vand.u32 2147483647, %v5602_v20 }
 0x1a9   : > { %v1405_v44 = vadd.f32 %v1404_v21, %v1376_v3  ;;  %v5605_v61 = vpop.eup %3627  ;;  %v2509_v34 = vmul.f32 %v3626_v52, %v2352_v54  ;;  %v3194_v63 = vmul.f32 -1.442695, %v1455_v41  ;;  %v1637_v21 = vand.u32 2147483648, %v5565_v50 }
 0x1aa   : > { %v1377_v11 = vpop.f32.mrf.mxu1  ;;  %v1627_v36 = vmul.f32 %v5605_v61, %v5565_v50  ;;  %v1942_v27 = vor.u32 1.1754944e-38, %v1941_v46  ;;  %vm1632_vm7 = vweird.f32 %v5605_v61  ;;  %vm1940_vm10 = vcmp.eq.f32.partialorder %v1939_v2, 8.507059e+37 }
 0x1ab   : > { %v3630_v62 = vpop.eup %3629  ;;  %v2518_v37 = vpack.c.bf16 %v2509_v34, %v2508_v8  ;;  %v3217_v42 = vmul.f32 -1.442695, %v1405_v44  ;;  %3635 = vpow2.f32 %v3194_v63  ;;  %v1378_v7 = vadd.f32 %v1377_v11, %v4442_v58  ;;  %vm5667_vm9 = vmor %vm1631_vm6, %vm1632_vm7 }
 0x1ac   : > { %v1428_v24 = vpop.f32.mrf.mxu0  ;;  %v3632_v57 = vpop.eup %3631  ;;  %v5613_v22 = vadd.f32 1.0, %v3630_v62  ;;  %3637 = vrcp.f32 %v5608_v12  ;;  %v1628_v38 = vsub.f32 1.0, %v1627_v36  ;;  %v1638_v8 = vor.u32 1.1754944e-38, %v1637_v21 }
 0x1ad   : > { %v1429_v17 = vadd.f32 %v1428_v24, %v4345_v4  ;;  %2526 = vst [vmem:[%s4837_s2 + $0x30] sm:$0xff] %v2518_v37  ;;  %v5621_v30 = vadd.f32 1.0, %v3632_v57  ;;  %vm1636_vm11 = vcmp.eq.f32.partialorder %v1635_v59, 8.507059e+37  ;;  %vm1751_vm14 = vweird.f32 %v5608_v12 }
 0x1ae   : > { %v5616_v23 = vpop.eup %3633  ;;  %v1629_v6 = vmul.f32 %v5605_v61, %v1628_v38  ;;  %vm2055_vm12 = vweird.f32 %v5613_v22  ;;  %v1757_v21 = vand.u32 2147483648, %v5608_v12 }
 0x1af   : > { %v1458_v49 = vadd.f32 %v1457_v26, %v1429_v17  ;;  %v1459_v4 = vpop.f32.mrf.mxu2  ;;  %v1931_v40 = vmul.f32 %v5616_v23, %v5602_v20  ;;  %vm1936_vm5 = vweird.f32 %v5616_v23 }
 0x1b0   : > { %v1406_v1 = vpop.f32.mrf.mxu3  ;;  %vm5652_vm8 = vmor %vm1935_vm4, %vm1936_vm5  ;;  %v1630_v9 = vadd.f32 %v5605_v61, %v1629_v6 }
 0x1b1   : > { %v3202_v32 = vmul.f32 -1.442695, %v1458_v49  ;;  %v1932_v39 = vsub.f32 1.0, %v1931_v40  ;;  %v3636_v53 = vpop.eup %3635 }
 0x1b2   : > { %v1380_v29 = vpop.f32.mrf.mxu1  ;;  %v5626_v18 = vpop.eup %3637  ;;  %v5633_v10 = vadd.f32 1.0, %v3636_v53  ;;  %v1634_v50 = vsel %vm5667_vm9, %v5605_v61, %v1630_v9  ;;  %v2061_v61 = vand.u32 2147483648, %v5613_v22 }
 0x1b3   : > { %3639 = vpow2.f32 %v3202_v32  ;;  %v1933_v60 = vmul.f32 %v5616_v23, %v1932_v39  ;;  %v1381_v48 = vadd.f32 %v1380_v29, %v4506_v55  ;;  %v1747_v35 = vmul.f32 %v5626_v18, %v5608_v12 }
 0x1b4   : > { %v1430_v5 = vpop.f32.mrf.mxu0  ;;  %3641 = vpow2.f32 %v3217_v42  ;;  %v2406_v42 = vld [vmem:[%s4010_s7 + $0x30] sm:$0xff]  ;;  %vm1752_vm15 = vweird.f32 %v5626_v18 }
 0x1b5   : > { %v1431_v51 = vadd.f32 %v1430_v5, %v4376_v45  ;;  %3643 = vrcp.f32 %v5613_v22  ;;  %v1407_v45 = vadd.f32 %v1406_v1, %v1378_v7  ;;  %v1934_v24 = vadd.f32 %v5616_v23, %v1933_v60  ;;  %vm5745_vm0 = vmor %vm1751_vm14, %vm1752_vm15 }
 0x1b6   : > { %3645 = vrcp.f32 %v5621_v30  ;;  %v1748_v49 = vsub.f32 1.0, %v1747_v35  ;;  %v1639_v1 = vsel %vm1636_vm11, %v1638_v8, %v1634_v50  ;;  %v2062_v60 = vor.u32 1.1754944e-38, %v2061_v61 }
 0x1b7   : > { %v1460_v13 = vadd.f32 %v1459_v4, %v1431_v51  ;;  %v1462_v3 = vpop.f32.mrf.mxu2  ;;  %v3225_v33 = vmul.f32 -1.442695, %v1407_v45  ;;  %v1938_v34 = vsel %vm5652_vm8, %v5616_v23, %v1934_v24  ;;  %vm1646_vm8 = vweird.f32 %v5621_v30 }
 0x1b8   : > { %v1409_v28 = vpop.f32.mrf.mxu3  ;;  %v1943_v37 = vsel %vm1940_vm10, %v1942_v27, %v1938_v34  ;;  %v1749_v53 = vmul.f32 %v5626_v18, %v1748_v49  ;;  %v1758_v34 = vor.u32 1.1754944e-38, %v1757_v21 }
 0x1b9   : > { %v3210_v19 = vmul.f32 -1.442695, %v1460_v13  ;;  %v3640_v0 = vpop.eup %3639  ;;  %v1410_v41 = vadd.f32 %v1409_v28, %v1381_v48  ;;  %v2422_v7 = vmul.f32 %v2406_v42, %v1943_v37 }
 0x1ba   : > { %v3642_v16 = vpop.eup %3641  ;;  %v5635_v56 = vadd.f32 1.0, %v3640_v0  ;;  %v1382_v4 = vpop.f32.mrf.mxu1 }
 0x1bb   : > { %3647 = vpow2.f32 %v3210_v19  ;;  %v5638_v26 = vpop.eup %3643  ;;  %v5663_v52 = vadd.f32 1.0, %v3642_v16  ;;  %v1383_v46 = vadd.f32 %v1382_v4, %v4599_v25 }
 0x1bc   : > { %v1433_v43 = vpop.f32.mrf.mxu0  ;;  %3649 = vrcp.f32 %v5635_v56  ;;  %v5659_v15 = vpop.eup %3645  ;;  %v2051_v17 = vmul.f32 %v5638_v26, %v5613_v22  ;;  %vm2056_vm13 = vweird.f32 %v5638_v26  ;;  %vm1950_vm2 = vweird.f32 %v5635_v56 }
 0x1bd   : > { %v1434_v47 = vadd.f32 %v1433_v43, %v4401_v14  ;;  %3651 = vtanh.f32 %v1410_v41  ;;  %v5687_v32 = vmul.f32 %v5659_v15, %v5621_v30  ;;  %v2245_v6 = vand.u32 2147483648, %v5663_v52  ;;  %vm5722_vm1 = vmor %vm2055_vm12, %vm2056_vm13 }
 0x1be   : > { %3653 = vrcp.f32 %v5633_v10  ;;  %v2052_v11 = vsub.f32 1.0, %v2051_v17  ;;  %v1755_v14 = vand.u32 2147483647, %v5608_v12  ;;  %v1956_v17 = vand.u32 2147483648, %v5635_v56 }
 0x1bf   : > { %v1463_v31 = vadd.f32 %v1462_v3, %v1434_v47  ;;  %3655 = vpow2.f32 %v3225_v33  ;;  %v1464_v23 = vpop.f32.mrf.mxu2  ;;  %v1643_v0 = vsub.f32 1.0, %v5687_v32  ;;  %v1750_v47 = vadd.f32 %v5626_v18, %v1749_v53  ;;  %v2407_v33 = vld [vmem:[%s4010_s7 + $0x38] sm:$0xff] }
 0x1c0   : > { %3657 = vrcp.f32 %v5663_v52  ;;  %v1411_v5 = vpop.f32.mrf.mxu3  ;;  %v2053_v39 = vmul.f32 %v5638_v26, %v2052_v11  ;;  %vm1756_vm5 = vcmp.eq.f32.partialorder %v1755_v14, 8.507059e+37  ;;  %vm1647_vm6 = vweird.f32 %v5659_v15 }
 0x1c1   : > { %v3648_v54 = vpop.eup %3647  ;;  %v3218_v63 = vmul.f32 -1.442695, %v1463_v31  ;;  %v1412_v29 = vadd.f32 %v1411_v5, %v1383_v46  ;;  %v1754_v31 = vsel %vm5745_vm0, %v5626_v18, %v1750_v47  ;;  %v1644_v18 = vmul.f32 %v5659_v15, %v1643_v0  ;;  %vm5785_vm10 = vmor %vm1646_vm8, %vm1647_vm6 }
 0x1c2   : > { %v5672_v44 = vadd.f32 1.0, %v3648_v54  ;;  %v5680_v62 = vpop.eup %3649  ;;  %v2054_v2 = vadd.f32 %v5638_v26, %v2053_v39  ;;  %v1759_v42 = vsel %vm1756_vm5, %v1758_v34, %v1754_v31  ;;  %v1954_v5 = vand.u32 2147483647, %v5635_v56 }
 0x1c3   : > { %v3652_v36 = vpop.eup %3651  ;;  %v1946_v40 = vmul.f32 %v5680_v62, %v5635_v56  ;;  %vm1951_vm4 = vweird.f32 %v5680_v62  ;;  %vm2239_vm9 = vweird.f32 %v5663_v52  ;;  %v2243_v56 = vand.u32 2147483647, %v5663_v52 }
 0x1c4   : > { %v1435_v57 = vpop.f32.mrf.mxu0  ;;  %3659 = vrcp.f32 %v5672_v44  ;;  %v5690_v51 = vpop.eup %3653  ;;  %v2438_v38 = vmul.f32 %v3652_v36, %v1639_v1  ;;  %v2058_v9 = vsel %vm5722_vm1, %v5638_v26, %v2054_v2  ;;  %v1652_v1 = vand.u32 2147483648, %v5621_v30  ;;  %vm5769_vm7 = vmor %vm1950_vm2, %vm1951_vm4 }
 0x1c5   : > { %3661 = vpow2.f32 %v3218_v63  ;;  %v3656_v13 = vpop.eup %3655  ;;  %v5706_v27 = vmul.f32 %v5690_v51, %v5633_v10  ;;  %v1947_v16 = vsub.f32 1.0, %v1946_v40  ;;  %v1436_v43 = vadd.f32 %v1435_v57, %v4442_v58  ;;  %v2414_v63 = vld [vmem:[%s4010_s7 + $0x70] sm:$0xff] }
 0x1c6   : > { %v5698_v19 = vadd.f32 %v2438_v38, %v2422_v7  ;;  %v5700_v45 = vpop.eup %3657  ;;  %v5711_v48 = vadd.f32 1.0, %v3656_v13  ;;  %v2059_v58 = vand.u32 2147483647, %v5613_v22  ;;  %3663 = vtanh.f32 %v1412_v29 }
 0x1c7   : > { %v2235_v35 = vmul.f32 %v5700_v45, %v5663_v52  ;;  %v1465_v59 = vadd.f32 %v1464_v23, %v1436_v43  ;;  %v1948_v26 = vmul.f32 %v5680_v62, %v1947_v16  ;;  %v1467_v8 = vpop.f32.mrf.mxu2  ;;  %v1650_v38 = vand.u32 2147483647, %v5621_v30 }
 0x1c8   : > { %2470 = vst [vmem:[%s4737_s27 + $0x30] sm:$0xff] %v5698_v19  ;;  %vm2060_vm3 = vcmp.eq.f32.partialorder %v2059_v58, 8.507059e+37  ;;  %v1957_v13 = vor.u32 1.1754944e-38, %v1956_v17  ;;  %v1763_v30 = vsub.f32 1.0, %v5706_v27  ;;  %vm1955_vm11 = vcmp.eq.f32.partialorder %v1954_v5, 8.507059e+37 }
 0x1c9   : > { %v3226_v54 = vmul.f32 -1.442695, %v1465_v59  ;;  %v2063_v50 = vsel %vm2060_vm3, %v2062_v60, %v2058_v9  ;;  %v2236_v49 = vsub.f32 1.0, %v2235_v35  ;;  %v1949_v32 = vadd.f32 %v5680_v62, %v1948_v26 }
 0x1ca   : > { %v5708_v28 = vpop.eup %3659  ;;  %v2430_v57 = vmul.f32 %v2414_v63, %v2063_v50  ;;  %v1653_v47 = vor.u32 1.1754944e-38, %v1652_v1  ;;  %vm1651_vm12 = vcmp.eq.f32.partialorder %v1650_v38, 8.507059e+37  ;;  %vm2240_vm13 = vweird.f32 %v5700_v45 }
 0x1cb   : > { %v3662_v3 = vpop.eup %3661  ;;  %v2066_v22 = vmul.f32 %v5708_v28, %v5672_v44  ;;  %v1953_v53 = vsel %vm5769_vm7, %v5680_v62, %v1949_v32  ;;  %v2237_v43 = vmul.f32 %v5700_v45, %v2236_v49  ;;  %v2246_v62 = vor.u32 1.1754944e-38, %v2245_v6  ;;  %vm5825_vm2 = vmor %vm2239_vm9, %vm2240_vm13 }
 0x1cc   : > { %v5726_v41 = vadd.f32 1.0, %v3662_v3  ;;  %v1438_v24 = vpop.f32.mrf.mxu0  ;;  %v3664_v11 = vpop.eup %3663  ;;  %v1958_v2 = vsel %vm1955_vm11, %v1957_v13, %v1953_v53  ;;  %vm2070_vm14 = vweird.f32 %v5672_v44  ;;  %vm2071_vm15 = vweird.f32 %v5708_v28 }
 0x1cd   : > { %v1439_v12 = vadd.f32 %v1438_v24, %v4506_v55  ;;  %v2067_v37 = vsub.f32 1.0, %v2066_v22  ;;  %v2446_v36 = vmul.f32 %v3664_v11, %v1759_v42  ;;  %v1645_v55 = vadd.f32 %v5659_v15, %v1644_v18  ;;  %vm5839_vm3 = vmor %vm2070_vm14, %vm2071_vm15 }
 0x1ce   : > { %3665 = vrcp.f32 %v5726_v41  ;;  %v2423_v59 = vmul.f32 %v2407_v33, %v1958_v2  ;;  %v1764_v24 = vmul.f32 %v5690_v51, %v1763_v30  ;;  %v2238_v17 = vadd.f32 %v5700_v45, %v2237_v43 }
 0x1cf   : > { %3667 = vrcp.f32 %v5711_v48  ;;  %v1468_v4 = vadd.f32 %v1467_v8, %v1439_v12  ;;  %v5775_v7 = vadd.f32 %v2446_v36, %v2430_v57  ;;  %v1649_v60 = vsel %vm5785_vm10, %v5659_v15, %v1645_v55  ;;  %v1469_v58 = vpop.f32.mrf.mxu2  ;;  %v2415_v55 = vld [vmem:[%s4010_s7 + $0x78] sm:$0xff]  ;;  %s3340_s7 = sshll.u32 %s3855_s21, 6 }
 0x1d0   : > { %3669 = vpow2.f32 %v3226_v54  ;;  %v2068_v21 = vmul.f32 %v5708_v28, %v2067_v37  ;;  %v1654_v14 = vsel %vm1651_vm12, %v1653_v47, %v1649_v60  ;;  %v2076_v22 = vand.u32 2147483648, %v5672_v44 }
 0x1d1   : > { %3671 = vtanh.f32 %v1468_v4  ;;  %2478 = vst [vmem:[%s4737_s27 + $0x70] sm:$0xff] %v5775_v7  ;;  %v2260_v8 = vand.u32 2147483648, %v5726_v41  ;;  %vm1767_vm0 = vweird.f32 %v5690_v51  ;;  %v2074_v50 = vand.u32 2147483647, %v5672_v44 }
 0x1d2   : > { %vm2254_vm4 = vweird.f32 %v5726_v41  ;;  %v2258_v12 = vand.u32 2147483647, %v5726_v41  ;;  %v1772_v49 = vand.u32 2147483648, %v5633_v10  ;;  %vm1766_vm6 = vweird.f32 %v5633_v10 }
 0x1d3   : > { %v1770_v37 = vand.u32 2147483647, %v5633_v10  ;;  %v2242_v42 = vsel %vm5825_vm2, %v5700_v45, %v2238_v17  ;;  %vm2244_vm7 = vcmp.eq.f32.partialorder %v2243_v56, 8.507059e+37  ;;  %v2077_v4 = vor.u32 1.1754944e-38, %v2076_v22  ;;  %vm5868_vm8 = vmor %vm1766_vm6, %vm1767_vm0 }
 0x1d4   : > { %v5760_v61 = vpop.eup %3665  ;;  %v1440_v16 = vpop.f32.mrf.mxu0  ;;  %v2261_v36 = vor.u32 1.1754944e-38, %v2260_v8  ;;  %vm2075_vm9 = vcmp.eq.f32.partialorder %v2074_v50, 8.507059e+37  ;;  %vm2259_vm10 = vcmp.eq.f32.partialorder %v2258_v12, 8.507059e+37  ;;  %v1773_v32 = vor.u32 1.1754944e-38, %v1772_v49 }
 0x1d5   : > { %v2250_v40 = vmul.f32 %v5760_v61, %v5726_v41  ;;  %v5779_v46 = vpop.eup %3667  ;;  %v1441_v9 = vadd.f32 %v1440_v16, %v4599_v25  ;;  %v2069_v25 = vadd.f32 %v5708_v28, %v2068_v21  ;;  %vm2255_vm1 = vweird.f32 %v5760_v61 }
 0x1d6   : > { %v3670_v29 = vpop.eup %3669  ;;  %v2355_v27 = vmul.f32 %v5779_v46, %v5711_v48  ;;  %vm5849_vm5 = vmor %vm2254_vm4, %vm2255_vm1  ;;  %v2247_v5 = vsel %vm2244_vm7, %v2246_v62, %v2242_v42  ;;  %vm1771_vm11 = vcmp.eq.f32.partialorder %v1770_v37, 8.507059e+37  ;;  %vm2359_vm12 = vweird.f32 %v5711_v48 }
 0x1d7   : > { %v2251_v0 = vsub.f32 1.0, %v2250_v40  ;;  %v5799_v3 = vadd.f32 1.0, %v3670_v29  ;;  %v3672_v15 = vpop.eup %3671  ;;  %v1470_v20 = vadd.f32 %v1469_v58, %v1441_v9  ;;  %v2073_v41 = vsel %vm5839_vm3, %v5708_v28, %v2069_v25 }
 0x1d8   : > { %v2439_v6 = vmul.f32 %v3672_v15, %v1654_v14  ;;  %v2356_v31 = vsub.f32 1.0, %v2355_v27  ;;  %vm2360_vm13 = vweird.f32 %v5779_v46  ;;  %v2365_v43 = vand.u32 2147483648, %v5711_v48 }
 0x1d9   : > { %v2252_v35 = vmul.f32 %v5760_v61, %v2251_v0  ;;  %3673 = vrcp.f32 %v5799_v3  ;;  %v2380_v47 = vand.u32 2147483648, %v5799_v3  ;;  %vm5897_vm15 = vmor %vm2359_vm12, %vm2360_vm13  ;;  %v2363_v2 = vand.u32 2147483647, %v5711_v48 }
 0x1da   : > { %3675 = vtanh.f32 %v5698_v19  ;;  %v2455_v26 = vadd.f32 %v2439_v6, %v2423_v59  ;;  %v1765_v19 = vadd.f32 %v5690_v51, %v1764_v24  ;;  %v2357_v23 = vmul.f32 %v5779_v46, %v2356_v31 }
 0x1db   : > { %v2253_v54 = vadd.f32 %v5760_v61, %v2252_v35  ;;  %vm2374_vm1 = vweird.f32 %v5799_v3  ;;  %v2378_v33 = vand.u32 2147483647, %v5799_v3 }
 0x1dc   : > { %2471 = vst [vmem:[%s4737_s27 + $0x38] sm:$0xff] %v2455_v26  ;;  %3677 = vtanh.f32 %v2455_v26  ;;  %v1769_v45 = vsel %vm5868_vm8, %v5690_v51, %v1765_v19  ;;  %v2358_v60 = vadd.f32 %v5779_v46, %v2357_v23 }
 0x1dd   : > { %3679 = vtanh.f32 %v1470_v20  ;;  %v2257_v18 = vsel %vm5849_vm5, %v5760_v61, %v2253_v54  ;;  %v2078_v61 = vsel %vm2075_vm9, %v2077_v4, %v2073_v41  ;;  %v1774_v39 = vsel %vm1771_vm11, %v1773_v32, %v1769_v45 }
 0x1de   : > { %v2262_v40 = vsel %vm2259_vm10, %v2261_v36, %v2257_v18  ;;  %v2431_v53 = vmul.f32 %v2415_v55, %v2078_v61  ;;  %3681 = vtanh.f32 %v5775_v7 }
 0x1df   : > { %v5833_v63 = vpop.eup %3673 }
 0x1e0   : > { %v2370_v44 = vmul.f32 %v5833_v63, %v5799_v3  ;;  %v3676_v10 = vpop.eup %3675  ;;  %vm2375_vm14 = vweird.f32 %v5833_v63 }
 0x1e1   : > { %v2502_v56 = vmul.f32 %v3676_v10, %v2247_v5 }
 0x1e2   : > { %v2371_v28 = vsub.f32 1.0, %v2370_v44  ;;  %v3678_v1 = vpop.eup %3677 }
 0x1e3   : > { %v3680_v38 = vpop.eup %3679  ;;  %v2503_v13 = vmul.f32 %v3678_v1, %v2262_v40 }
 0x1e4   : > { %v2372_v51 = vmul.f32 %v5833_v63, %v2371_v28  ;;  %v2447_v29 = vmul.f32 %v3680_v38, %v1774_v39 }
 0x1e5   : > { %v2515_v30 = vpack.c.bf16 %v2503_v13, %v2502_v56 }
 0x1e6   : > { %v2463_v0 = vadd.f32 %v2447_v29, %v2431_v53  ;;  %v2373_v16 = vadd.f32 %v5833_v63, %v2372_v51 }
 0x1e7   : > { %2523 = vst [vmem:[%s4837_s2 + $0x18] sm:$0xff] %v2515_v30 }
 0x1e8   : > { %2479 = vst [vmem:[%s4737_s27 + $0x78] sm:$0xff] %v2463_v0  ;;  %3683 = vtanh.f32 %v2463_v0 }
 0x1e9   : > { %3772 = shalt.err (!%p3769_p13)
}
 0x1ea   : > { %s3870_s27 = smov 1024   ;;  %s3871_s26 = smov 64   ;;  %vm2376_vm2 = vmor %vm2374_vm1, %vm2375_vm14  ;;  %v2362_v48 = vsel %vm5897_vm15, %v5779_v46, %v2358_v60  ;;  %v3682_v27 = vpop.eup %3681  ;;  %v2366_v21 = vor.u32 1.1754944e-38, %v2365_v43  ;;  %v2381_v58 = vor.u32 1.1754944e-38, %v2380_v47  ;;  %vm2364_vm0 = vcmp.eq.f32.partialorder %v2363_v2, 8.507059e+37 }
 0x1eb   : > { %3350 = dma.vmem_to_hbm [thread:$0]  (%p3955_p9), %s5882_s10, 2048, %s5887_s11, %s2534_s15, %s3870_s27, %s3870_s27, %s3871_s26   ;;  %v2377_v62 = vsel %vm2376_vm2, %v5833_v63, %v2373_v16  ;;  %vm2379_vm3 = vcmp.eq.f32.partialorder %v2378_v33, 8.507059e+37 }
 0x1ec   : > { %s2547_s13 = scalar_lea.hbm %s5971_s4, %s3340_s7  ;;  %s2548_s14 = sshll.u32 %s4837_s2, 4  ;;  %v2367_v15 = vsel %vm2364_vm0, %v2366_v21, %v2362_v48  ;;  %v2382_v35 = vsel %vm2379_vm3, %v2381_v58, %v2377_v62  ;;  %s2549_s14 = int_to_ptr.vmem [resolvable:$true] %s2548_s14 }
 0x1ed   : > { %s2550_s21 = sshll.u32 %s2547_s13, 4  ;;  %v2510_v14 = vmul.f32 %v3682_v27, %v2367_v15  ;;  %s2529_s10 = scalar_lea.sflag [#allocation4], %s3996_s17  ;;  %s2551_s21 = int_to_ptr.hbm [resolvable:$true] %s2550_s21 }
 0x1ee   : > { %v3684_v3 = vpop.eup %3683  ;;  %s3787_s11 = sshra.s32 %s2551_s21, 4  ;;  %s3793_s24 = scalar_lea.hbm %s5971_s4, 128  ;;  %s3788_s11 = int_to_ptr.hbm [resolvable:$true] %s3787_s11 }
 0x1ef   : > { %v2511_v9 = vmul.f32 %v3684_v3, %v2382_v35  ;;  %s3789_s7 = scalar_lea.hbm %s3788_s11, 64  ;;  %p3794_p3 = scmp.lt.s32.totalorder %s3788_s11, %s5971_s4 }
 0x1f0   : > { %p3790_p0 = scmp.ne.s32.totalorder %s3788_s11, %s3789_s7  ;;  %p3795_p4 = scmp.lt.s32.totalorder %s3793_s24, %s3789_s7 }
 0x1f1   : > { %v2519_v46 = vpack.c.bf16 %v2511_v9, %v2510_v14 }
 0x1f2   : > { %p3791_p1 = pnand %p3790_p0, %p3955_p9  ;;  %p3796_p5 = por %p3795_p4, %p3794_p3 }
 0x1f3   : > { %2527 = vst [vmem:[%s4837_s2 + $0x38] sm:$0xff] %v2519_v46 }
 0x1f4   : > { %p3792_p2 = pneg %p3791_p1 }
 0x1f6   : > { %p3797_p6 = pnand %p3796_p5, %p3792_p2 }
 0x1f8   : > { %3800 = shalt.err (!%p3797_p6)
}
 0x1f9   : > { %s3872_s17 = smov 512   ;;  %s3873_s2 = smov 32  }
 0x1fa   : > { %3349 = dma.vmem_to_hbm [thread:$0]  (%p3955_p9), %s2549_s14, 1024, %s2551_s21, %s2529_s10, %s3872_s17, %s3872_s17, %s3873_s2  }
 0x1fb PF: > { %s2584_s30 = sand.u32 1, %s3843_s18   ;;  %p3361_p7 = pnand %p2722_p12, %p3962_p11 }
 0x1fc   : > { %s2585_s9 = scalar_lea.sflag [#allocation4], %s2584_s30 }
 0x1fd   : > { %p3362_p8 = pneg %p3361_p7 }
 0x1ff   : > { %3834 = dma.done.wait (%p3362_p8), %s2585_s9, 1024  }
 0x200   : > { %3836 = vsyncadd (%p3362_p8), %s2585_s9, 4294966272  ;;  %s2595_s12 = scalar_lea.sflag [#allocation9], %s2584_s30 }
 0x201   : > { %3838 = dma.done.wait (%p3362_p8), %s2595_s12, 2048  }
 0x202   : > { %3840 = vsyncadd (%p3362_p8), %s2595_s12, 4294965248  ;;  %s28_s23 = sadd.s32 1, %s3863_s23   ;;  %s6110_s6 = sld [smem:[#allocation14_spill]] }
 0x203   : > { %p25_p10 = scmp.ge.s32.totalorder %s28_s23, 4   ;;  %s6111_s20 = sld [smem:[#allocation16_spill]] }
 0x204   : > { %s6112_s27 = sld [smem:[#allocation15_spill]]  ;;  %s6113_s18 = smov %s3847_s19 }
 0x205   : > { %s6115_s21 = smov %s3859_s22 }
 0x206   :  { %27 = sbr.rel (!%p25_p10) target bundleno = 12 (0xc), region = 111 }
 0x208   : > { %s6114_s19 = smov %s6110_s6 }
 0x20a   : > { %s6116_s22 = smov %s6112_s27 }
 0x20b   :  { %2601 = vsyncpa [#allocation3], 1 }
 0x20c   :  { %2603 = vsyncpa [#allocation3 + $0x1], 1 }
 0x20d   :  { %2604 = vsyncpa [#allocation6], 1 }
 0x20e   :  { %2606 = vsyncpa [#allocation6 + $0x1], 1 }
 0x20f   :  { %2607 = vsyncpa [#allocation4], 1 }
 0x210   :  { %2609 = vsyncpa [#allocation4 + $0x1], 1 }
 0x211   :  { %2610 = vsyncpa [#allocation9], 1 }
 0x212   :  { %2612 = vsyncpa [#allocation9 + $0x1], 1 }

</bundles_post_ra>
